<compile_context>
chip_gen: v6e
topology: v6e:2x2x1
jax: 0.10.0
libtpu: 0.0.40
codegen_flags: <defaults>
</compile_context>

<pallas_src>
import functools
import math

import numpy as np
import jax
import jax.numpy as jnp
from jax.experimental import pallas as pl
from jax.experimental.pallas import tpu as pltpu

LANE = 128       # TPU vreg lane width
SUB = 8          # TPU vreg sublane height
NEG_INF = -1e30  # bias baked into padded logit lanes


def _round_up(x, m):
    return ((x + m - 1) // m) * m


# ---------------------------------------------------------------------------
# Kernel: Tc GRU(2-layer)+decoder+log_softmax steps per grid index.
# Hidden state is carried across grid steps in the grid-resident h_ref block.
# ---------------------------------------------------------------------------
def char_rnn2_chunk_kernel(x_ref, hinit_ref,
                           wbig_ref, bbig_ref,
                           wih1_ref, bih1_ref,
                           wdec_ref, bdec_ref,
                           logp_ref, h_ref,
                           *, t_total, guard_tail):
    gidx = pl.program_id(0)
    tc = x_ref.shape[0]
    H = wih1_ref.shape[0]                 # true (unpadded) hidden size

    @pl.when(gidx == 0)
    def _():
        h_ref[...] = hinit_ref[...]

    # State (unpadded lanes) + VMEM-resident weights, read once per grid step.
    h0 = h_ref[0, :, :]                   # (BP, H) f32
    h1 = h_ref[1, :, :]                   # (BP, H) f32
    wbig = wbig_ref[...]                  # (Kc, 9H)  bf16
    bbig = bbig_ref[...]                  # (1, 9H)   f32
    wih1 = wih1_ref[...]                  # (H, 3H)   bf16
    bih1 = bih1_ref[...]                  # (1, 3H)   f32
    wdec = wdec_ref[...]                  # (H, OP)   bf16
    bdec = bdec_ref[...]                  # (1, OP)   f32 (-1e30 in padded lanes)

    def gru_update(gi, gh, h_prev):
        # torch.nn.GRU gate order (r, z, n); compact H-wide gate slabs.
        r = jax.nn.sigmoid(gi[:, 0:H] + gh[:, 0:H])
        z = jax.nn.sigmoid(gi[:, H:2 * H] + gh[:, H:2 * H])
        n = jnp.tanh(gi[:, 2 * H:3 * H] + r * gh[:, 2 * H:3 * H])
        return (1.0 - z) * n + z * h_prev

    # Static (fully unrolled) loop over the Tc steps of this chunk.
    for i in range(tc):
        x = x_ref[i]                                       # (BP, FXP) f32

        # Single-K-tile fused projection: [x@Wih0 | h0@Whh0 | h1@Whh1].
        xh = jnp.concatenate([x, h0, h1], axis=-1).astype(jnp.bfloat16)
        g_all = jnp.dot(xh, wbig,
                        preferred_element_type=jnp.float32) + bbig  # (BP, 9H)
        gi0 = g_all[:, 0:3 * H]
        gh0 = g_all[:, 3 * H:6 * H]
        gh1 = g_all[:, 6 * H:9 * H]

        h0n = gru_update(gi0, gh0, h0)                     # (BP, H)
        gi1 = jnp.dot(h0n.astype(jnp.bfloat16), wih1,
                      preferred_element_type=jnp.float32) + bih1
        h1n = gru_update(gi1, gh1, h1)                     # (BP, H)

        # Decoder + numerically stable log_softmax (f32). Padded logit lanes
        # have -1e30 bias and zero weights -> vanish from max and logsumexp.
        logits = jnp.dot(h1n.astype(jnp.bfloat16), wdec,
                         preferred_element_type=jnp.float32) + bdec
        m = jnp.max(logits, axis=-1, keepdims=True)
        shifted = logits - m
        lse = jnp.log(jnp.sum(jnp.exp(shifted), axis=-1, keepdims=True))
        logp_ref[i] = shifted - lse

        if guard_tail:
            # Only commit the state update for real (non tail-padded) steps.
            valid = (gidx * tc + i) < t_total
            h0 = jnp.where(valid, h0n, h0)
            h1 = jnp.where(valid, h1n, h1)
        else:
            h0, h1 = h0n, h1n

    h_ref[0, :, :] = h0
    h_ref[1, :, :] = h1


# ---------------------------------------------------------------------------
# One-time parameter packing (transpose / pad / fuse / bf16) — at init only.
# ---------------------------------------------------------------------------
def pack_params(params, mxu_dtype=jnp.bfloat16):
    emb = np.asarray(params["emb"], np.float32)
    _, n_fac = emb.shape
    H = np.asarray(params["whh0"]).shape[1]
    O = np.asarray(params["wdec"]).shape[0]

    # Fused K slab: [x_pad | h0 | h1], padded (on the x segment) to a multiple
    # of 128 lanes.  For the demo sizes this is exactly one 128-lane tile.
    Kc = _round_up(n_fac + 2 * H, LANE)
    FXP = Kc - 2 * H                       # padded x-segment width
    OP = _round_up(O, LANE)                # lane-dense logit width

    # Compact-gate fused weight: columns = [gi0 r|z|n | gh0 r|z|n | gh1 r|z|n].
    # TODO(synk): for large H (multiple K tiles) split into 3 separate dots to
    # avoid re-introducing structural-zero K passes.
    wbig = np.zeros((Kc, 9 * H), np.float32)
    bbig = np.zeros((1, 9 * H), np.float32)
    wbig[0:n_fac, 0:3 * H] = np.asarray(params["wih0"], np.float32).T
    wbig[FXP:FXP + H, 3 * H:6 * H] = np.asarray(params["whh0"], np.float32).T
    wbig[FXP + H:FXP + 2 * H, 6 * H:9 * H] = np.asarray(params["whh1"],
                                                        np.float32).T
    bbig[0, 0:3 * H] = np.asarray(params["bih0"], np.float32)
    bbig[0, 3 * H:6 * H] = np.asarray(params["bhh0"], np.float32)
    bbig[0, 6 * H:9 * H] = np.asarray(params["bhh1"], np.float32)

    # Layer-1 input projection (depends on h0_new within the step).
    wih1 = np.asarray(params["wih1"], np.float32).T            # (H, 3H)
    bih1 = np.asarray(params["bih1"], np.float32)[None, :]     # (1, 3H)

    # Decoder: lane-dense output; padded lanes get zero weight / -1e30 bias.
    wdec = np.zeros((H, OP), np.float32)
    wdec[:, 0:O] = np.asarray(params["wdec"], np.float32).T
    bdec = np.full((1, OP), NEG_INF, np.float32)
    bdec[0, 0:O] = np.asarray(params["bdec"], np.float32)

    return {
        "emb": jnp.asarray(emb),                              # f32 (gather table)
        "wbig": jnp.asarray(wbig, mxu_dtype), "bbig": jnp.asarray(bbig),
        "wih1": jnp.asarray(wih1, mxu_dtype), "bih1": jnp.asarray(bih1),
        "wdec": jnp.asarray(wdec, mxu_dtype), "bdec": jnp.asarray(bdec),
    }


# ---------------------------------------------------------------------------
# Fused multi-step forward. input_ids: (T, B) or (B,); hidden: (2, B, H).
# ---------------------------------------------------------------------------
def char_rnn2_forward(input_ids, hidden, packed, chunk=8):
    single_step = (input_ids.ndim == 1)
    ids = input_ids[None, :] if single_step else input_ids
    T, B = ids.shape

    emb = packed["emb"]
    n_fac = emb.shape[1]
    O = emb.shape[0]                       # output_size == input_size
    H = packed["wih1"].shape[0]
    OP = packed["wdec"].shape[1]
    Kc = packed["wbig"].shape[0]
    FXP = Kc - 2 * H
    BP = _round_up(max(B, 1), SUB)

    Tc = min(T, chunk)                     # timesteps per grid iteration
    Tg = pl.cdiv(T, Tc)
    Tpad = Tg * Tc
    guard_tail = (Tpad != T)

    # One XLA gather for the whole sequence; pad time -> chunk multiple,
    # batch -> sublane multiple, features -> fused-K x segment.
    x = jnp.take(emb, ids.reshape(-1), axis=0).reshape(T, B, n_fac)
    x = jnp.pad(x, ((0, Tpad - T), (0, BP - B), (0, FXP - n_fac)))
    h_init = jnp.pad(hidden.astype(jnp.float32), ((0, 0), (0, BP - B), (0, 0)))

    weights = (packed["wbig"], packed["bbig"], packed["wih1"], packed["bih1"],
               packed["wdec"], packed["bdec"])

    def const_spec(a):
        nd = a.ndim
        return pl.BlockSpec(a.shape, lambda t: (0,) * nd)

    in_specs = (
        [pl.BlockSpec((Tc, BP, FXP), lambda t: (t, 0, 0)),  # x chunk (pipelined)
         const_spec(h_init)]                                # initial hidden
        + [const_spec(w) for w in weights]                  # VMEM-resident weights
    )
    out_specs = (
        pl.BlockSpec((Tc, BP, OP), lambda t: (t, 0, 0)),    # lane-dense logp chunk
        pl.BlockSpec((2, BP, H), lambda t: (0, 0, 0)),      # grid-resident state
    )
    out_shape = (
        jax.ShapeDtypeStruct((Tpad, BP, OP), jnp.float32),
        jax.ShapeDtypeStruct((2, BP, H), jnp.float32),
    )

    kernel = functools.partial(char_rnn2_chunk_kernel,
                               t_total=T, guard_tail=guard_tail)

    # TODO(synk): for large-batch multi-sequence decode on v7x, add a leading
    # "parallel" batch grid axis (per-core hidden state) once BP is big enough
    # to fill MXU rows on both TensorCores; at tiny batch it is pure overhead.
    logp_pad, h_pad = pl.pallas_call(
        kernel,
        grid=(Tg,),
        in_specs=in_specs,
        out_specs=out_specs,
        out_shape=out_shape,
        compiler_params=pltpu.CompilerParams(
            dimension_semantics=("arbitrary",)),            # sequential recurrence
    )(x, h_init, *weights)

    logp = logp_pad[:T, :B, :O]
    hidden_out = h_pad[:, :B, :]
    return (logp[0], hidden_out) if single_step else (logp, hidden_out)


# ---------------------------------------------------------------------------
# Raw (PyTorch-layout) parameter init + plain-JAX reference for validation.
# ---------------------------------------------------------------------------
def init_params(key, char_dict, hidden_size):
    input_size = len(char_dict)
    output_size = input_size
    n_fac = math.floor(input_size * 0.7)
    H = hidden_size
    k = 1.0 / math.sqrt(H)

    keys = jax.random.split(key, 12)
    u = lambda kk, shape, bound: jax.random.uniform(
        kk, shape, jnp.float32, -bound, bound)

    return {
        "emb":  jax.random.normal(keys[0], (input_size, n_fac), jnp.float32),
        "wih0": u(keys[1], (3 * H, n_fac), k),
        "whh0": u(keys[2], (3 * H, H), k),
        "bih0": u(keys[3], (3 * H,), k),
        "bhh0": u(keys[4], (3 * H,), k),
        "wih1": u(keys[5], (3 * H, H), k),
        "whh1": u(keys[6], (3 * H, H), k),
        "bih1": u(keys[7], (3 * H,), k),
        "bhh1": u(keys[8], (3 * H,), k),
        "wdec": u(keys[9], (output_size, H), k),
        "bdec": u(keys[10], (output_size,), k),
    }


def reference_forward(input_ids, hidden, params):
    H = hidden.shape[-1]

    def gru_cell(x, h, wih, whh, bih, bhh):
        gi = x @ wih.T + bih
        gh = h @ whh.T + bhh
        r = jax.nn.sigmoid(gi[:, 0:H] + gh[:, 0:H])
        z = jax.nn.sigmoid(gi[:, H:2 * H] + gh[:, H:2 * H])
        n = jnp.tanh(gi[:, 2 * H:] + r * gh[:, 2 * H:])
        return (1.0 - z) * n + z * h

    h0, h1 = hidden[0], hidden[1]
    outs = []
    for t in range(input_ids.shape[0]):
        x = params["emb"][input_ids[t]]
        h0 = gru_cell(x, h0, params["wih0"], params["whh0"],
                      params["bih0"], params["bhh0"])
        h1 = gru_cell(h0, h1, params["wih1"], params["whh1"],
                      params["bih1"], params["bhh1"])
        logits = h1 @ params["wdec"].T + params["bdec"]
        outs.append(jax.nn.log_softmax(logits, axis=-1))
    return jnp.stack(outs), jnp.stack([h0, h1])


if __name__ == "__main__":
    char_dict = "abcdefghijklmnopqrstuvwxyz012345"   # 32 chars
    hidden_size = 32
    n_layers = 2
    batch = 2
    seq_len = 8

    key = jax.random.PRNGKey(0)
    params = init_params(key, char_dict, hidden_size)
    packed = pack_params(params)                      # one-time pack (bf16 MXU weights)

    ids = jax.random.randint(jax.random.PRNGKey(1), (seq_len, batch),
                             0, len(char_dict), dtype=jnp.int32)
    hidden0 = jnp.zeros((n_layers, batch, hidden_size), jnp.float32)

    fwd = jax.jit(char_rnn2_forward)
    logp, hidden_out = fwd(ids, hidden0, packed)
    jax.block_until_ready((logp, hidden_out))

    assert logp.shape == (seq_len, batch, len(char_dict))
    assert hidden_out.shape == (n_layers, batch, hidden_size)
    # log_softmax rows must be normalized (f32 softmax math).
    assert bool(jnp.all(jnp.abs(jnp.sum(jnp.exp(logp), axis=-1) - 1.0) < 1e-4))

    # Validate against a plain-JAX (all-f32) re-implementation of the PyTorch
    # module; tolerance reflects bf16 MXU operands with f32 accumulation.
    ref_logp, ref_hidden = reference_forward(ids, hidden0, params)
    assert bool(jnp.allclose(logp, ref_logp, atol=5e-2, rtol=5e-2))
    assert bool(jnp.allclose(hidden_out, ref_hidden, atol=5e-2, rtol=5e-2))

    # Single-step call (matches the original module's forward signature).
    logp1, hid1 = fwd(ids[0], hidden0, packed)
    jax.block_until_ready((logp1, hid1))
    assert logp1.shape == (batch, len(char_dict))
    assert bool(jnp.allclose(logp1, ref_logp[0], atol=5e-2, rtol=5e-2))

    print("KERNEL_OK")
</pallas_src>

<mosaic_0001>
module attributes {stable_mosaic.version = 11 : i64} {
  func.func @char_rnn2_chunk_kernel(%arg0: i32, %arg1: memref<8x8x64xf32, #tpu.memory_space<vmem>>, %arg2: memref<2x8x32xf32, #tpu.memory_space<vmem>>, %arg3: memref<128x288xbf16, #tpu.memory_space<vmem>>, %arg4: memref<1x288xf32, #tpu.memory_space<vmem>>, %arg5: memref<32x96xbf16, #tpu.memory_space<vmem>>, %arg6: memref<1x96xf32, #tpu.memory_space<vmem>>, %arg7: memref<32x128xbf16, #tpu.memory_space<vmem>>, %arg8: memref<1x128xf32, #tpu.memory_space<vmem>>, %arg9: memref<8x8x128xf32, #tpu.memory_space<vmem>>, %arg10: memref<2x8x32xf32, #tpu.memory_space<vmem>>) attributes {dimension_semantics = [#tpu.dimension_semantics<arbitrary>], iteration_bounds = array<i64: 1>, scalar_prefetch = 0 : i64, scratch_operands = 0 : i64, tpu.core_type = #tpu.core_type<tc>, window_params = [{transform_indices = @transform_0, window_bounds = array<i64: 8, 8, 64>}, {pipeline_mode = #tpu.pipeline_mode<synchronous>, transform_indices = @transform_1, window_bounds = array<i64: 2, 8, 32>}, {pipeline_mode = #tpu.pipeline_mode<synchronous>, transform_indices = @transform_2, window_bounds = array<i64: 128, 288>}, {pipeline_mode = #tpu.pipeline_mode<synchronous>, transform_indices = @transform_3, window_bounds = array<i64: 1, 288>}, {pipeline_mode = #tpu.pipeline_mode<synchronous>, transform_indices = @transform_4, window_bounds = array<i64: 32, 96>}, {pipeline_mode = #tpu.pipeline_mode<synchronous>, transform_indices = @transform_5, window_bounds = array<i64: 1, 96>}, {pipeline_mode = #tpu.pipeline_mode<synchronous>, transform_indices = @transform_6, window_bounds = array<i64: 32, 128>}, {pipeline_mode = #tpu.pipeline_mode<synchronous>, transform_indices = @transform_7, window_bounds = array<i64: 1, 128>}, {transform_indices = @transform_8, window_bounds = array<i64: 8, 8, 128>}, {pipeline_mode = #tpu.pipeline_mode<synchronous>, transform_indices = @transform_9, window_bounds = array<i64: 2, 8, 32>}]} {
    %c0_i32 = arith.constant 0 : i32
    %0 = arith.cmpi eq, %arg0, %c0_i32 : i32
    %1 = arith.extui %0 : i1 to i32
    %c0_i32_0 = arith.constant 0 : i32
    %2 = arith.cmpi ne, %1, %c0_i32_0 : i32
    scf.if %2 {
      %c0_152 = arith.constant 0 : index
      %c0_153 = arith.constant 0 : index
      %c0_154 = arith.constant 0 : index
      %683 = vector.load %arg2[%c0_152, %c0_153, %c0_154] : memref<2x8x32xf32, #tpu.memory_space<vmem>>, vector<2x8x32xf32>
      %c0_155 = arith.constant 0 : index
      %c0_156 = arith.constant 0 : index
      %c0_157 = arith.constant 0 : index
      %684 = vector.load %arg10[%c0_155, %c0_156, %c0_157] : memref<2x8x32xf32, #tpu.memory_space<vmem>>, vector<2x8x32xf32>
      tpu.vector_store %arg10[%c0_155, %c0_156, %c0_157], %683 {strides = array<i32>} : memref<2x8x32xf32, #tpu.memory_space<vmem>>, vector<2x8x32xf32>,
    } else {
    }
    %c0 = arith.constant 0 : index
    %c0_1 = arith.constant 0 : index
    %c0_2 = arith.constant 0 : index
    %3 = vector.load %arg10[%c0, %c0_1, %c0_2] : memref<2x8x32xf32, #tpu.memory_space<vmem>>, vector<1x8x32xf32>
    %4 = vector.shape_cast %3 : vector<1x8x32xf32> to vector<8x32xf32>
    %c1 = arith.constant 1 : index
    %c0_3 = arith.constant 0 : index
    %c0_4 = arith.constant 0 : index
    %5 = vector.load %arg10[%c1, %c0_3, %c0_4] : memref<2x8x32xf32, #tpu.memory_space<vmem>>, vector<1x8x32xf32>
    %6 = vector.shape_cast %5 : vector<1x8x32xf32> to vector<8x32xf32>
    %c0_5 = arith.constant 0 : index
    %c0_6 = arith.constant 0 : index
    %7 = vector.load %arg3[%c0_5, %c0_6] : memref<128x288xbf16, #tpu.memory_space<vmem>>, vector<128x288xbf16>
    %c0_7 = arith.constant 0 : index
    %c0_8 = arith.constant 0 : index
    %8 = vector.load %arg4[%c0_7, %c0_8] : memref<1x288xf32, #tpu.memory_space<vmem>>, vector<1x288xf32>
    %c0_9 = arith.constant 0 : index
    %c0_10 = arith.constant 0 : index
    %9 = vector.load %arg5[%c0_9, %c0_10] : memref<32x96xbf16, #tpu.memory_space<vmem>>, vector<32x96xbf16>
    %c0_11 = arith.constant 0 : index
    %c0_12 = arith.constant 0 : index
    %10 = vector.load %arg6[%c0_11, %c0_12] : memref<1x96xf32, #tpu.memory_space<vmem>>, vector<1x96xf32>
    %c0_13 = arith.constant 0 : index
    %c0_14 = arith.constant 0 : index
    %11 = vector.load %arg7[%c0_13, %c0_14] : memref<32x128xbf16, #tpu.memory_space<vmem>>, vector<32x128xbf16>
    %c0_15 = arith.constant 0 : index
    %c0_16 = arith.constant 0 : index
    %12 = vector.load %arg8[%c0_15, %c0_16] : memref<1x128xf32, #tpu.memory_space<vmem>>, vector<1x128xf32>
    %c0_17 = arith.constant 0 : index
    %c0_18 = arith.constant 0 : index
    %c0_19 = arith.constant 0 : index
    %13 = vector.load %arg1[%c0_17, %c0_18, %c0_19] : memref<8x8x64xf32, #tpu.memory_space<vmem>>, vector<1x8x64xf32>
    %14 = vector.shape_cast %13 : vector<1x8x64xf32> to vector<8x64xf32>
    %15 = tpu.concatenate %14, %4, %6 in 1 : vector<8x64xf32>, vector<8x32xf32>, vector<8x32xf32> -> vector<8x128xf32>
    %16 = arith.truncf %15 : vector<8x128xf32> to vector<8x128xbf16>
    %cst = arith.constant dense<0.000000e+00> : vector<8x288xf32>
    %17 = tpu.matmul %16, %7, %cst {dimension_numbers = #tpu.dot_dimension_numbers<[1], [0], [0], [1], [0, 0, 1, 1], [], []>} : vector<8x128xbf16>, vector<128x288xbf16>, vector<8x288xf32> -> vector<8x288xf32>
    %18 = vector.broadcast %8 : vector<1x288xf32> to vector<8x288xf32>
    %19 = arith.addf %17, %18 : vector<8x288xf32>
    %20 = vector.extract_strided_slice %19 {offsets = [0, 0], sizes = [8, 96], strides = [1, 1]} : vector<8x288xf32> to vector<8x96xf32>
    %21 = vector.extract_strided_slice %19 {offsets = [0, 96], sizes = [8, 96], strides = [1, 1]} : vector<8x288xf32> to vector<8x96xf32>
    %22 = vector.extract_strided_slice %19 {offsets = [0, 192], sizes = [8, 96], strides = [1, 1]} : vector<8x288xf32> to vector<8x96xf32>
    %23 = vector.extract_strided_slice %20 {offsets = [0, 0], sizes = [8, 32], strides = [1, 1]} : vector<8x96xf32> to vector<8x32xf32>
    %24 = vector.extract_strided_slice %21 {offsets = [0, 0], sizes = [8, 32], strides = [1, 1]} : vector<8x96xf32> to vector<8x32xf32>
    %25 = arith.addf %23, %24 : vector<8x32xf32>
    %26 = arith.negf %25 : vector<8x32xf32>
    %27 = math.exp %26 : vector<8x32xf32>
    %cst_20 = arith.constant 1.000000e+00 : f32
    %28 = vector.broadcast %cst_20 : f32 to vector<8x32xf32>
    %29 = arith.addf %28, %27 : vector<8x32xf32>
    %30 = arith.divf %28, %29 : vector<8x32xf32>
    %31 = vector.extract_strided_slice %20 {offsets = [0, 32], sizes = [8, 32], strides = [1, 1]} : vector<8x96xf32> to vector<8x32xf32>
    %32 = vector.extract_strided_slice %21 {offsets = [0, 32], sizes = [8, 32], strides = [1, 1]} : vector<8x96xf32> to vector<8x32xf32>
    %33 = arith.addf %31, %32 : vector<8x32xf32>
    %34 = arith.negf %33 : vector<8x32xf32>
    %35 = math.exp %34 : vector<8x32xf32>
    %cst_21 = arith.constant 1.000000e+00 : f32
    %36 = vector.broadcast %cst_21 : f32 to vector<8x32xf32>
    %37 = arith.addf %36, %35 : vector<8x32xf32>
    %38 = arith.divf %36, %37 : vector<8x32xf32>
    %39 = vector.extract_strided_slice %20 {offsets = [0, 64], sizes = [8, 32], strides = [1, 1]} : vector<8x96xf32> to vector<8x32xf32>
    %40 = vector.extract_strided_slice %21 {offsets = [0, 64], sizes = [8, 32], strides = [1, 1]} : vector<8x96xf32> to vector<8x32xf32>
    %41 = arith.mulf %30, %40 : vector<8x32xf32>
    %42 = arith.addf %39, %41 : vector<8x32xf32>
    %43 = math.tanh %42 : vector<8x32xf32>
    %cst_22 = arith.constant 1.000000e+00 : f32
    %44 = vector.broadcast %cst_22 : f32 to vector<8x32xf32>
    %45 = arith.subf %44, %38 : vector<8x32xf32>
    %46 = arith.mulf %45, %43 : vector<8x32xf32>
    %47 = arith.mulf %38, %4 : vector<8x32xf32>
    %48 = arith.addf %46, %47 : vector<8x32xf32>
    %49 = arith.truncf %48 : vector<8x32xf32> to vector<8x32xbf16>
    %cst_23 = arith.constant dense<0.000000e+00> : vector<8x96xf32>
    %50 = tpu.matmul %49, %9, %cst_23 {dimension_numbers = #tpu.dot_dimension_numbers<[1], [0], [0], [1], [0, 0, 1, 1], [], []>} : vector<8x32xbf16>, vector<32x96xbf16>, vector<8x96xf32> -> vector<8x96xf32>
    %51 = vector.broadcast %10 : vector<1x96xf32> to vector<8x96xf32>
    %52 = arith.addf %50, %51 : vector<8x96xf32>
    %53 = vector.extract_strided_slice %52 {offsets = [0, 0], sizes = [8, 32], strides = [1, 1]} : vector<8x96xf32> to vector<8x32xf32>
    %54 = vector.extract_strided_slice %22 {offsets = [0, 0], sizes = [8, 32], strides = [1, 1]} : vector<8x96xf32> to vector<8x32xf32>
    %55 = arith.addf %53, %54 : vector<8x32xf32>
    %56 = arith.negf %55 : vector<8x32xf32>
    %57 = math.exp %56 : vector<8x32xf32>
    %cst_24 = arith.constant 1.000000e+00 : f32
    %58 = vector.broadcast %cst_24 : f32 to vector<8x32xf32>
    %59 = arith.addf %58, %57 : vector<8x32xf32>
    %60 = arith.divf %58, %59 : vector<8x32xf32>
    %61 = vector.extract_strided_slice %52 {offsets = [0, 32], sizes = [8, 32], strides = [1, 1]} : vector<8x96xf32> to vector<8x32xf32>
    %62 = vector.extract_strided_slice %22 {offsets = [0, 32], sizes = [8, 32], strides = [1, 1]} : vector<8x96xf32> to vector<8x32xf32>
    %63 = arith.addf %61, %62 : vector<8x32xf32>
    %64 = arith.negf %63 : vector<8x32xf32>
    %65 = math.exp %64 : vector<8x32xf32>
    %cst_25 = arith.constant 1.000000e+00 : f32
    %66 = vector.broadcast %cst_25 : f32 to vector<8x32xf32>
    %67 = arith.addf %66, %65 : vector<8x32xf32>
    %68 = arith.divf %66, %67 : vector<8x32xf32>
    %69 = vector.extract_strided_slice %52 {offsets = [0, 64], sizes = [8, 32], strides = [1, 1]} : vector<8x96xf32> to vector<8x32xf32>
    %70 = vector.extract_strided_slice %22 {offsets = [0, 64], sizes = [8, 32], strides = [1, 1]} : vector<8x96xf32> to vector<8x32xf32>
    %71 = arith.mulf %60, %70 : vector<8x32xf32>
    %72 = arith.addf %69, %71 : vector<8x32xf32>
    %73 = math.tanh %72 : vector<8x32xf32>
    %cst_26 = arith.constant 1.000000e+00 : f32
    %74 = vector.broadcast %cst_26 : f32 to vector<8x32xf32>
    %75 = arith.subf %74, %68 : vector<8x32xf32>
    %76 = arith.mulf %75, %73 : vector<8x32xf32>
    %77 = arith.mulf %68, %6 : vector<8x32xf32>
    %78 = arith.addf %76, %77 : vector<8x32xf32>
    %79 = arith.truncf %78 : vector<8x32xf32> to vector<8x32xbf16>
    %cst_27 = arith.constant dense<0.000000e+00> : vector<8x128xf32>
    %80 = tpu.matmul %79, %11, %cst_27 {dimension_numbers = #tpu.dot_dimension_numbers<[1], [0], [0], [1], [0, 0, 1, 1], [], []>} : vector<8x32xbf16>, vector<32x128xbf16>, vector<8x128xf32> -> vector<8x128xf32>
    %81 = vector.broadcast %12 : vector<1x128xf32> to vector<8x128xf32>
    %82 = arith.addf %80, %81 : vector<8x128xf32>
    %cst_28 = arith.constant dense<0xFF800000> : vector<8xf32>
    %83 = vector.multi_reduction <maximumf>, %82, %cst_28 [1] : vector<8x128xf32> to vector<8xf32>
    %84 = vector.shape_cast %83 : vector<8xf32> to vector<8x1xf32>
    %85 = vector.broadcast %84 : vector<8x1xf32> to vector<8x128xf32>
    %86 = arith.subf %82, %85 : vector<8x128xf32>
    %87 = math.exp %86 : vector<8x128xf32>
    %cst_29 = arith.constant dense<0.000000e+00> : vector<8xf32>
    %88 = vector.multi_reduction <add>, %87, %cst_29 [1] : vector<8x128xf32> to vector<8xf32>
    %89 = vector.shape_cast %88 : vector<8xf32> to vector<8x1xf32>
    %90 = math.log %89 : vector<8x1xf32>
    %91 = vector.broadcast %90 : vector<8x1xf32> to vector<8x128xf32>
    %92 = arith.subf %86, %91 : vector<8x128xf32>
    %c0_30 = arith.constant 0 : index
    %c0_31 = arith.constant 0 : index
    %c0_32 = arith.constant 0 : index
    %93 = vector.load %arg9[%c0_30, %c0_31, %c0_32] : memref<8x8x128xf32, #tpu.memory_space<vmem>>, vector<1x8x128xf32>
    %94 = vector.shape_cast %93 : vector<1x8x128xf32> to vector<8x128xf32>
    %95 = vector.shape_cast %92 : vector<8x128xf32> to vector<1x8x128xf32>
    tpu.vector_store %arg9[%c0_30, %c0_31, %c0_32], %95 {strides = array<i32>} : memref<8x8x128xf32, #tpu.memory_space<vmem>>, vector<1x8x128xf32>,
    %c1_33 = arith.constant 1 : index
    %c0_34 = arith.constant 0 : index
    %c0_35 = arith.constant 0 : index
    %96 = vector.load %arg1[%c1_33, %c0_34, %c0_35] : memref<8x8x64xf32, #tpu.memory_space<vmem>>, vector<1x8x64xf32>
    %97 = vector.shape_cast %96 : vector<1x8x64xf32> to vector<8x64xf32>
    %98 = tpu.concatenate %97, %48, %78 in 1 : vector<8x64xf32>, vector<8x32xf32>, vector<8x32xf32> -> vector<8x128xf32>
    %99 = arith.truncf %98 : vector<8x128xf32> to vector<8x128xbf16>
    %cst_36 = arith.constant dense<0.000000e+00> : vector<8x288xf32>
    %100 = tpu.matmul %99, %7, %cst_36 {dimension_numbers = #tpu.dot_dimension_numbers<[1], [0], [0], [1], [0, 0, 1, 1], [], []>} : vector<8x128xbf16>, vector<128x288xbf16>, vector<8x288xf32> -> vector<8x288xf32>
    %101 = vector.broadcast %8 : vector<1x288xf32> to vector<8x288xf32>
    %102 = arith.addf %100, %101 : vector<8x288xf32>
    %103 = vector.extract_strided_slice %102 {offsets = [0, 0], sizes = [8, 96], strides = [1, 1]} : vector<8x288xf32> to vector<8x96xf32>
    %104 = vector.extract_strided_slice %102 {offsets = [0, 96], sizes = [8, 96], strides = [1, 1]} : vector<8x288xf32> to vector<8x96xf32>
    %105 = vector.extract_strided_slice %102 {offsets = [0, 192], sizes = [8, 96], strides = [1, 1]} : vector<8x288xf32> to vector<8x96xf32>
    %106 = vector.extract_strided_slice %103 {offsets = [0, 0], sizes = [8, 32], strides = [1, 1]} : vector<8x96xf32> to vector<8x32xf32>
    %107 = vector.extract_strided_slice %104 {offsets = [0, 0], sizes = [8, 32], strides = [1, 1]} : vector<8x96xf32> to vector<8x32xf32>
    %108 = arith.addf %106, %107 : vector<8x32xf32>
    %109 = arith.negf %108 : vector<8x32xf32>
    %110 = math.exp %109 : vector<8x32xf32>
    %cst_37 = arith.constant 1.000000e+00 : f32
    %111 = vector.broadcast %cst_37 : f32 to vector<8x32xf32>
    %112 = arith.addf %111, %110 : vector<8x32xf32>
    %113 = arith.divf %111, %112 : vector<8x32xf32>
    %114 = vector.extract_strided_slice %103 {offsets = [0, 32], sizes = [8, 32], strides = [1, 1]} : vector<8x96xf32> to vector<8x32xf32>
    %115 = vector.extract_strided_slice %104 {offsets = [0, 32], sizes = [8, 32], strides = [1, 1]} : vector<8x96xf32> to vector<8x32xf32>
    %116 = arith.addf %114, %115 : vector<8x32xf32>
    %117 = arith.negf %116 : vector<8x32xf32>
    %118 = math.exp %117 : vector<8x32xf32>
    %cst_38 = arith.constant 1.000000e+00 : f32
    %119 = vector.broadcast %cst_38 : f32 to vector<8x32xf32>
    %120 = arith.addf %119, %118 : vector<8x32xf32>
    %121 = arith.divf %119, %120 : vector<8x32xf32>
    %122 = vector.extract_strided_slice %103 {offsets = [0, 64], sizes = [8, 32], strides = [1, 1]} : vector<8x96xf32> to vector<8x32xf32>
    %123 = vector.extract_strided_slice %104 {offsets = [0, 64], sizes = [8, 32], strides = [1, 1]} : vector<8x96xf32> to vector<8x32xf32>
    %124 = arith.mulf %113, %123 : vector<8x32xf32>
    %125 = arith.addf %122, %124 : vector<8x32xf32>
    %126 = math.tanh %125 : vector<8x32xf32>
    %cst_39 = arith.constant 1.000000e+00 : f32
    %127 = vector.broadcast %cst_39 : f32 to vector<8x32xf32>
    %128 = arith.subf %127, %121 : vector<8x32xf32>
    %129 = arith.mulf %128, %126 : vector<8x32xf32>
    %130 = arith.mulf %121, %48 : vector<8x32xf32>
    %131 = arith.addf %129, %130 : vector<8x32xf32>
    %132 = arith.truncf %131 : vector<8x32xf32> to vector<8x32xbf16>
    %cst_40 = arith.constant dense<0.000000e+00> : vector<8x96xf32>
    %133 = tpu.matmul %132, %9, %cst_40 {dimension_numbers = #tpu.dot_dimension_numbers<[1], [0], [0], [1], [0, 0, 1, 1], [], []>} : vector<8x32xbf16>, vector<32x96xbf16>, vector<8x96xf32> -> vector<8x96xf32>
    %134 = vector.broadcast %10 : vector<1x96xf32> to vector<8x96xf32>
    %135 = arith.addf %133, %134 : vector<8x96xf32>
    %136 = vector.extract_strided_slice %135 {offsets = [0, 0], sizes = [8, 32], strides = [1, 1]} : vector<8x96xf32> to vector<8x32xf32>
    %137 = vector.extract_strided_slice %105 {offsets = [0, 0], sizes = [8, 32], strides = [1, 1]} : vector<8x96xf32> to vector<8x32xf32>
    %138 = arith.addf %136, %137 : vector<8x32xf32>
    %139 = arith.negf %138 : vector<8x32xf32>
    %140 = math.exp %139 : vector<8x32xf32>
    %cst_41 = arith.constant 1.000000e+00 : f32
    %141 = vector.broadcast %cst_41 : f32 to vector<8x32xf32>
    %142 = arith.addf %141, %140 : vector<8x32xf32>
    %143 = arith.divf %141, %142 : vector<8x32xf32>
    %144 = vector.extract_strided_slice %135 {offsets = [0, 32], sizes = [8, 32], strides = [1, 1]} : vector<8x96xf32> to vector<8x32xf32>
    %145 = vector.extract_strided_slice %105 {offsets = [0, 32], sizes = [8, 32], strides = [1, 1]} : vector<8x96xf32> to vector<8x32xf32>
    %146 = arith.addf %144, %145 : vector<8x32xf32>
    %147 = arith.negf %146 : vector<8x32xf32>
    %148 = math.exp %147 : vector<8x32xf32>
    %cst_42 = arith.constant 1.000000e+00 : f32
    %149 = vector.broadcast %cst_42 : f32 to vector<8x32xf32>
    %150 = arith.addf %149, %148 : vector<8x32xf32>
    %151 = arith.divf %149, %150 : vector<8x32xf32>
    %152 = vector.extract_strided_slice %135 {offsets = [0, 64], sizes = [8, 32], strides = [1, 1]} : vector<8x96xf32> to vector<8x32xf32>
    %153 = vector.extract_strided_slice %105 {offsets = [0, 64], sizes = [8, 32], strides = [1, 1]} : vector<8x96xf32> to vector<8x32xf32>
    %154 = arith.mulf %143, %153 : vector<8x32xf32>
    %155 = arith.addf %152, %154 : vector<8x32xf32>
    %156 = math.tanh %155 : vector<8x32xf32>
    %cst_43 = arith.constant 1.000000e+00 : f32
    %157 = vector.broadcast %cst_43 : f32 to vector<8x32xf32>
    %158 = arith.subf %157, %151 : vector<8x32xf32>
    %159 = arith.mulf %158, %156 : vector<8x32xf32>
    %160 = arith.mulf %151, %78 : vector<8x32xf32>
    %161 = arith.addf %159, %160 : vector<8x32xf32>
    %162 = arith.truncf %161 : vector<8x32xf32> to vector<8x32xbf16>
    %cst_44 = arith.constant dense<0.000000e+00> : vector<8x128xf32>
    %163 = tpu.matmul %162, %11, %cst_44 {dimension_numbers = #tpu.dot_dimension_numbers<[1], [0], [0], [1], [0, 0, 1, 1], [], []>} : vector<8x32xbf16>, vector<32x128xbf16>, vector<8x128xf32> -> vector<8x128xf32>
    %164 = vector.broadcast %12 : vector<1x128xf32> to vector<8x128xf32>
    %165 = arith.addf %163, %164 : vector<8x128xf32>
    %cst_45 = arith.constant dense<0xFF800000> : vector<8xf32>
    %166 = vector.multi_reduction <maximumf>, %165, %cst_45 [1] : vector<8x128xf32> to vector<8xf32>
    %167 = vector.shape_cast %166 : vector<8xf32> to vector<8x1xf32>
    %168 = vector.broadcast %167 : vector<8x1xf32> to vector<8x128xf32>
    %169 = arith.subf %165, %168 : vector<8x128xf32>
    %170 = math.exp %169 : vector<8x128xf32>
    %cst_46 = arith.constant dense<0.000000e+00> : vector<8xf32>
    %171 = vector.multi_reduction <add>, %170, %cst_46 [1] : vector<8x128xf32> to vector<8xf32>
    %172 = vector.shape_cast %171 : vector<8xf32> to vector<8x1xf32>
    %173 = math.log %172 : vector<8x1xf32>
    %174 = vector.broadcast %173 : vector<8x1xf32> to vector<8x128xf32>
    %175 = arith.subf %169, %174 : vector<8x128xf32>
    %c1_47 = arith.constant 1 : index
    %c0_48 = arith.constant 0 : index
    %c0_49 = arith.constant 0 : index
    %176 = vector.load %arg9[%c1_47, %c0_48, %c0_49] : memref<8x8x128xf32, #tpu.memory_space<vmem>>, vector<1x8x128xf32>
    %177 = vector.shape_cast %176 : vector<1x8x128xf32> to vector<8x128xf32>
    %178 = vector.shape_cast %175 : vector<8x128xf32> to vector<1x8x128xf32>
    tpu.vector_store %arg9[%c1_47, %c0_48, %c0_49], %178 {strides = array<i32>} : memref<8x8x128xf32, #tpu.memory_space<vmem>>, vector<1x8x128xf32>,
    %c2 = arith.constant 2 : index
    %c0_50 = arith.constant 0 : index
    %c0_51 = arith.constant 0 : index
    %179 = vector.load %arg1[%c2, %c0_50, %c0_51] : memref<8x8x64xf32, #tpu.memory_space<vmem>>, vector<1x8x64xf32>
    %180 = vector.shape_cast %179 : vector<1x8x64xf32> to vector<8x64xf32>
    %181 = tpu.concatenate %180, %131, %161 in 1 : vector<8x64xf32>, vector<8x32xf32>, vector<8x32xf32> -> vector<8x128xf32>
    %182 = arith.truncf %181 : vector<8x128xf32> to vector<8x128xbf16>
    %cst_52 = arith.constant dense<0.000000e+00> : vector<8x288xf32>
    %183 = tpu.matmul %182, %7, %cst_52 {dimension_numbers = #tpu.dot_dimension_numbers<[1], [0], [0], [1], [0, 0, 1, 1], [], []>} : vector<8x128xbf16>, vector<128x288xbf16>, vector<8x288xf32> -> vector<8x288xf32>
    %184 = vector.broadcast %8 : vector<1x288xf32> to vector<8x288xf32>
    %185 = arith.addf %183, %184 : vector<8x288xf32>
    %186 = vector.extract_strided_slice %185 {offsets = [0, 0], sizes = [8, 96], strides = [1, 1]} : vector<8x288xf32> to vector<8x96xf32>
    %187 = vector.extract_strided_slice %185 {offsets = [0, 96], sizes = [8, 96], strides = [1, 1]} : vector<8x288xf32> to vector<8x96xf32>
    %188 = vector.extract_strided_slice %185 {offsets = [0, 192], sizes = [8, 96], strides = [1, 1]} : vector<8x288xf32> to vector<8x96xf32>
    %189 = vector.extract_strided_slice %186 {offsets = [0, 0], sizes = [8, 32], strides = [1, 1]} : vector<8x96xf32> to vector<8x32xf32>
    %190 = vector.extract_strided_slice %187 {offsets = [0, 0], sizes = [8, 32], strides = [1, 1]} : vector<8x96xf32> to vector<8x32xf32>
    %191 = arith.addf %189, %190 : vector<8x32xf32>
    %192 = arith.negf %191 : vector<8x32xf32>
    %193 = math.exp %192 : vector<8x32xf32>
    %cst_53 = arith.constant 1.000000e+00 : f32
    %194 = vector.broadcast %cst_53 : f32 to vector<8x32xf32>
    %195 = arith.addf %194, %193 : vector<8x32xf32>
    %196 = arith.divf %194, %195 : vector<8x32xf32>
    %197 = vector.extract_strided_slice %186 {offsets = [0, 32], sizes = [8, 32], strides = [1, 1]} : vector<8x96xf32> to vector<8x32xf32>
    %198 = vector.extract_strided_slice %187 {offsets = [0, 32], sizes = [8, 32], strides = [1, 1]} : vector<8x96xf32> to vector<8x32xf32>
    %199 = arith.addf %197, %198 : vector<8x32xf32>
    %200 = arith.negf %199 : vector<8x32xf32>
    %201 = math.exp %200 : vector<8x32xf32>
    %cst_54 = arith.constant 1.000000e+00 : f32
    %202 = vector.broadcast %cst_54 : f32 to vector<8x32xf32>
    %203 = arith.addf %202, %201 : vector<8x32xf32>
    %204 = arith.divf %202, %203 : vector<8x32xf32>
    %205 = vector.extract_strided_slice %186 {offsets = [0, 64], sizes = [8, 32], strides = [1, 1]} : vector<8x96xf32> to vector<8x32xf32>
    %206 = vector.extract_strided_slice %187 {offsets = [0, 64], sizes = [8, 32], strides = [1, 1]} : vector<8x96xf32> to vector<8x32xf32>
    %207 = arith.mulf %196, %206 : vector<8x32xf32>
    %208 = arith.addf %205, %207 : vector<8x32xf32>
    %209 = math.tanh %208 : vector<8x32xf32>
    %cst_55 = arith.constant 1.000000e+00 : f32
    %210 = vector.broadcast %cst_55 : f32 to vector<8x32xf32>
    %211 = arith.subf %210, %204 : vector<8x32xf32>
    %212 = arith.mulf %211, %209 : vector<8x32xf32>
    %213 = arith.mulf %204, %131 : vector<8x32xf32>
    %214 = arith.addf %212, %213 : vector<8x32xf32>
    %215 = arith.truncf %214 : vector<8x32xf32> to vector<8x32xbf16>
    %cst_56 = arith.constant dense<0.000000e+00> : vector<8x96xf32>
    %216 = tpu.matmul %215, %9, %cst_56 {dimension_numbers = #tpu.dot_dimension_numbers<[1], [0], [0], [1], [0, 0, 1, 1], [], []>} : vector<8x32xbf16>, vector<32x96xbf16>, vector<8x96xf32> -> vector<8x96xf32>
    %217 = vector.broadcast %10 : vector<1x96xf32> to vector<8x96xf32>
    %218 = arith.addf %216, %217 : vector<8x96xf32>
    %219 = vector.extract_strided_slice %218 {offsets = [0, 0], sizes = [8, 32], strides = [1, 1]} : vector<8x96xf32> to vector<8x32xf32>
    %220 = vector.extract_strided_slice %188 {offsets = [0, 0], sizes = [8, 32], strides = [1, 1]} : vector<8x96xf32> to vector<8x32xf32>
    %221 = arith.addf %219, %220 : vector<8x32xf32>
    %222 = arith.negf %221 : vector<8x32xf32>
    %223 = math.exp %222 : vector<8x32xf32>
    %cst_57 = arith.constant 1.000000e+00 : f32
    %224 = vector.broadcast %cst_57 : f32 to vector<8x32xf32>
    %225 = arith.addf %224, %223 : vector<8x32xf32>
    %226 = arith.divf %224, %225 : vector<8x32xf32>
    %227 = vector.extract_strided_slice %218 {offsets = [0, 32], sizes = [8, 32], strides = [1, 1]} : vector<8x96xf32> to vector<8x32xf32>
    %228 = vector.extract_strided_slice %188 {offsets = [0, 32], sizes = [8, 32], strides = [1, 1]} : vector<8x96xf32> to vector<8x32xf32>
    %229 = arith.addf %227, %228 : vector<8x32xf32>
    %230 = arith.negf %229 : vector<8x32xf32>
    %231 = math.exp %230 : vector<8x32xf32>
    %cst_58 = arith.constant 1.000000e+00 : f32
    %232 = vector.broadcast %cst_58 : f32 to vector<8x32xf32>
    %233 = arith.addf %232, %231 : vector<8x32xf32>
    %234 = arith.divf %232, %233 : vector<8x32xf32>
    %235 = vector.extract_strided_slice %218 {offsets = [0, 64], sizes = [8, 32], strides = [1, 1]} : vector<8x96xf32> to vector<8x32xf32>
    %236 = vector.extract_strided_slice %188 {offsets = [0, 64], sizes = [8, 32], strides = [1, 1]} : vector<8x96xf32> to vector<8x32xf32>
    %237 = arith.mulf %226, %236 : vector<8x32xf32>
    %238 = arith.addf %235, %237 : vector<8x32xf32>
    %239 = math.tanh %238 : vector<8x32xf32>
    %cst_59 = arith.constant 1.000000e+00 : f32
    %240 = vector.broadcast %cst_59 : f32 to vector<8x32xf32>
    %241 = arith.subf %240, %234 : vector<8x32xf32>
    %242 = arith.mulf %241, %239 : vector<8x32xf32>
    %243 = arith.mulf %234, %161 : vector<8x32xf32>
    %244 = arith.addf %242, %243 : vector<8x32xf32>
    %245 = arith.truncf %244 : vector<8x32xf32> to vector<8x32xbf16>
    %cst_60 = arith.constant dense<0.000000e+00> : vector<8x128xf32>
    %246 = tpu.matmul %245, %11, %cst_60 {dimension_numbers = #tpu.dot_dimension_numbers<[1], [0], [0], [1], [0, 0, 1, 1], [], []>} : vector<8x32xbf16>, vector<32x128xbf16>, vector<8x128xf32> -> vector<8x128xf32>
    %247 = vector.broadcast %12 : vector<1x128xf32> to vector<8x128xf32>
    %248 = arith.addf %246, %247 : vector<8x128xf32>
    %cst_61 = arith.constant dense<0xFF800000> : vector<8xf32>
    %249 = vector.multi_reduction <maximumf>, %248, %cst_61 [1] : vector<8x128xf32> to vector<8xf32>
    %250 = vector.shape_cast %249 : vector<8xf32> to vector<8x1xf32>
    %251 = vector.broadcast %250 : vector<8x1xf32> to vector<8x128xf32>
    %252 = arith.subf %248, %251 : vector<8x128xf32>
    %253 = math.exp %252 : vector<8x128xf32>
    %cst_62 = arith.constant dense<0.000000e+00> : vector<8xf32>
    %254 = vector.multi_reduction <add>, %253, %cst_62 [1] : vector<8x128xf32> to vector<8xf32>
    %255 = vector.shape_cast %254 : vector<8xf32> to vector<8x1xf32>
    %256 = math.log %255 : vector<8x1xf32>
    %257 = vector.broadcast %256 : vector<8x1xf32> to vector<8x128xf32>
    %258 = arith.subf %252, %257 : vector<8x128xf32>
    %c2_63 = arith.constant 2 : index
    %c0_64 = arith.constant 0 : index
    %c0_65 = arith.constant 0 : index
    %259 = vector.load %arg9[%c2_63, %c0_64, %c0_65] : memref<8x8x128xf32, #tpu.memory_space<vmem>>, vector<1x8x128xf32>
    %260 = vector.shape_cast %259 : vector<1x8x128xf32> to vector<8x128xf32>
    %261 = vector.shape_cast %258 : vector<8x128xf32> to vector<1x8x128xf32>
    tpu.vector_store %arg9[%c2_63, %c0_64, %c0_65], %261 {strides = array<i32>} : memref<8x8x128xf32, #tpu.memory_space<vmem>>, vector<1x8x128xf32>,
    %c3 = arith.constant 3 : index
    %c0_66 = arith.constant 0 : index
    %c0_67 = arith.constant 0 : index
    %262 = vector.load %arg1[%c3, %c0_66, %c0_67] : memref<8x8x64xf32, #tpu.memory_space<vmem>>, vector<1x8x64xf32>
    %263 = vector.shape_cast %262 : vector<1x8x64xf32> to vector<8x64xf32>
    %264 = tpu.concatenate %263, %214, %244 in 1 : vector<8x64xf32>, vector<8x32xf32>, vector<8x32xf32> -> vector<8x128xf32>
    %265 = arith.truncf %264 : vector<8x128xf32> to vector<8x128xbf16>
    %cst_68 = arith.constant dense<0.000000e+00> : vector<8x288xf32>
    %266 = tpu.matmul %265, %7, %cst_68 {dimension_numbers = #tpu.dot_dimension_numbers<[1], [0], [0], [1], [0, 0, 1, 1], [], []>} : vector<8x128xbf16>, vector<128x288xbf16>, vector<8x288xf32> -> vector<8x288xf32>
    %267 = vector.broadcast %8 : vector<1x288xf32> to vector<8x288xf32>
    %268 = arith.addf %266, %267 : vector<8x288xf32>
    %269 = vector.extract_strided_slice %268 {offsets = [0, 0], sizes = [8, 96], strides = [1, 1]} : vector<8x288xf32> to vector<8x96xf32>
    %270 = vector.extract_strided_slice %268 {offsets = [0, 96], sizes = [8, 96], strides = [1, 1]} : vector<8x288xf32> to vector<8x96xf32>
    %271 = vector.extract_strided_slice %268 {offsets = [0, 192], sizes = [8, 96], strides = [1, 1]} : vector<8x288xf32> to vector<8x96xf32>
    %272 = vector.extract_strided_slice %269 {offsets = [0, 0], sizes = [8, 32], strides = [1, 1]} : vector<8x96xf32> to vector<8x32xf32>
    %273 = vector.extract_strided_slice %270 {offsets = [0, 0], sizes = [8, 32], strides = [1, 1]} : vector<8x96xf32> to vector<8x32xf32>
    %274 = arith.addf %272, %273 : vector<8x32xf32>
    %275 = arith.negf %274 : vector<8x32xf32>
    %276 = math.exp %275 : vector<8x32xf32>
    %cst_69 = arith.constant 1.000000e+00 : f32
    %277 = vector.broadcast %cst_69 : f32 to vector<8x32xf32>
    %278 = arith.addf %277, %276 : vector<8x32xf32>
    %279 = arith.divf %277, %278 : vector<8x32xf32>
    %280 = vector.extract_strided_slice %269 {offsets = [0, 32], sizes = [8, 32], strides = [1, 1]} : vector<8x96xf32> to vector<8x32xf32>
    %281 = vector.extract_strided_slice %270 {offsets = [0, 32], sizes = [8, 32], strides = [1, 1]} : vector<8x96xf32> to vector<8x32xf32>
    %282 = arith.addf %280, %281 : vector<8x32xf32>
    %283 = arith.negf %282 : vector<8x32xf32>
    %284 = math.exp %283 : vector<8x32xf32>
    %cst_70 = arith.constant 1.000000e+00 : f32
    %285 = vector.broadcast %cst_70 : f32 to vector<8x32xf32>
    %286 = arith.addf %285, %284 : vector<8x32xf32>
    %287 = arith.divf %285, %286 : vector<8x32xf32>
    %288 = vector.extract_strided_slice %269 {offsets = [0, 64], sizes = [8, 32], strides = [1, 1]} : vector<8x96xf32> to vector<8x32xf32>
    %289 = vector.extract_strided_slice %270 {offsets = [0, 64], sizes = [8, 32], strides = [1, 1]} : vector<8x96xf32> to vector<8x32xf32>
    %290 = arith.mulf %279, %289 : vector<8x32xf32>
    %291 = arith.addf %288, %290 : vector<8x32xf32>
    %292 = math.tanh %291 : vector<8x32xf32>
    %cst_71 = arith.constant 1.000000e+00 : f32
    %293 = vector.broadcast %cst_71 : f32 to vector<8x32xf32>
    %294 = arith.subf %293, %287 : vector<8x32xf32>
    %295 = arith.mulf %294, %292 : vector<8x32xf32>
    %296 = arith.mulf %287, %214 : vector<8x32xf32>
    %297 = arith.addf %295, %296 : vector<8x32xf32>
    %298 = arith.truncf %297 : vector<8x32xf32> to vector<8x32xbf16>
    %cst_72 = arith.constant dense<0.000000e+00> : vector<8x96xf32>
    %299 = tpu.matmul %298, %9, %cst_72 {dimension_numbers = #tpu.dot_dimension_numbers<[1], [0], [0], [1], [0, 0, 1, 1], [], []>} : vector<8x32xbf16>, vector<32x96xbf16>, vector<8x96xf32> -> vector<8x96xf32>
    %300 = vector.broadcast %10 : vector<1x96xf32> to vector<8x96xf32>
    %301 = arith.addf %299, %300 : vector<8x96xf32>
    %302 = vector.extract_strided_slice %301 {offsets = [0, 0], sizes = [8, 32], strides = [1, 1]} : vector<8x96xf32> to vector<8x32xf32>
    %303 = vector.extract_strided_slice %271 {offsets = [0, 0], sizes = [8, 32], strides = [1, 1]} : vector<8x96xf32> to vector<8x32xf32>
    %304 = arith.addf %302, %303 : vector<8x32xf32>
    %305 = arith.negf %304 : vector<8x32xf32>
    %306 = math.exp %305 : vector<8x32xf32>
    %cst_73 = arith.constant 1.000000e+00 : f32
    %307 = vector.broadcast %cst_73 : f32 to vector<8x32xf32>
    %308 = arith.addf %307, %306 : vector<8x32xf32>
    %309 = arith.divf %307, %308 : vector<8x32xf32>
    %310 = vector.extract_strided_slice %301 {offsets = [0, 32], sizes = [8, 32], strides = [1, 1]} : vector<8x96xf32> to vector<8x32xf32>
    %311 = vector.extract_strided_slice %271 {offsets = [0, 32], sizes = [8, 32], strides = [1, 1]} : vector<8x96xf32> to vector<8x32xf32>
    %312 = arith.addf %310, %311 : vector<8x32xf32>
    %313 = arith.negf %312 : vector<8x32xf32>
    %314 = math.exp %313 : vector<8x32xf32>
    %cst_74 = arith.constant 1.000000e+00 : f32
    %315 = vector.broadcast %cst_74 : f32 to vector<8x32xf32>
    %316 = arith.addf %315, %314 : vector<8x32xf32>
    %317 = arith.divf %315, %316 : vector<8x32xf32>
    %318 = vector.extract_strided_slice %301 {offsets = [0, 64], sizes = [8, 32], strides = [1, 1]} : vector<8x96xf32> to vector<8x32xf32>
    %319 = vector.extract_strided_slice %271 {offsets = [0, 64], sizes = [8, 32], strides = [1, 1]} : vector<8x96xf32> to vector<8x32xf32>
    %320 = arith.mulf %309, %319 : vector<8x32xf32>
    %321 = arith.addf %318, %320 : vector<8x32xf32>
    %322 = math.tanh %321 : vector<8x32xf32>
    %cst_75 = arith.constant 1.000000e+00 : f32
    %323 = vector.broadcast %cst_75 : f32 to vector<8x32xf32>
    %324 = arith.subf %323, %317 : vector<8x32xf32>
    %325 = arith.mulf %324, %322 : vector<8x32xf32>
    %326 = arith.mulf %317, %244 : vector<8x32xf32>
    %327 = arith.addf %325, %326 : vector<8x32xf32>
    %328 = arith.truncf %327 : vector<8x32xf32> to vector<8x32xbf16>
    %cst_76 = arith.constant dense<0.000000e+00> : vector<8x128xf32>
    %329 = tpu.matmul %328, %11, %cst_76 {dimension_numbers = #tpu.dot_dimension_numbers<[1], [0], [0], [1], [0, 0, 1, 1], [], []>} : vector<8x32xbf16>, vector<32x128xbf16>, vector<8x128xf32> -> vector<8x128xf32>
    %330 = vector.broadcast %12 : vector<1x128xf32> to vector<8x128xf32>
    %331 = arith.addf %329, %330 : vector<8x128xf32>
    %cst_77 = arith.constant dense<0xFF800000> : vector<8xf32>
    %332 = vector.multi_reduction <maximumf>, %331, %cst_77 [1] : vector<8x128xf32> to vector<8xf32>
    %333 = vector.shape_cast %332 : vector<8xf32> to vector<8x1xf32>
    %334 = vector.broadcast %333 : vector<8x1xf32> to vector<8x128xf32>
    %335 = arith.subf %331, %334 : vector<8x128xf32>
    %336 = math.exp %335 : vector<8x128xf32>
    %cst_78 = arith.constant dense<0.000000e+00> : vector<8xf32>
    %337 = vector.multi_reduction <add>, %336, %cst_78 [1] : vector<8x128xf32> to vector<8xf32>
    %338 = vector.shape_cast %337 : vector<8xf32> to vector<8x1xf32>
    %339 = math.log %338 : vector<8x1xf32>
    %340 = vector.broadcast %339 : vector<8x1xf32> to vector<8x128xf32>
    %341 = arith.subf %335, %340 : vector<8x128xf32>
    %c3_79 = arith.constant 3 : index
    %c0_80 = arith.constant 0 : index
    %c0_81 = arith.constant 0 : index
    %342 = vector.load %arg9[%c3_79, %c0_80, %c0_81] : memref<8x8x128xf32, #tpu.memory_space<vmem>>, vector<1x8x128xf32>
    %343 = vector.shape_cast %342 : vector<1x8x128xf32> to vector<8x128xf32>
    %344 = vector.shape_cast %341 : vector<8x128xf32> to vector<1x8x128xf32>
    tpu.vector_store %arg9[%c3_79, %c0_80, %c0_81], %344 {strides = array<i32>} : memref<8x8x128xf32, #tpu.memory_space<vmem>>, vector<1x8x128xf32>,
    %c4 = arith.constant 4 : index
    %c0_82 = arith.constant 0 : index
    %c0_83 = arith.constant 0 : index
    %345 = vector.load %arg1[%c4, %c0_82, %c0_83] : memref<8x8x64xf32, #tpu.memory_space<vmem>>, vector<1x8x64xf32>
    %346 = vector.shape_cast %345 : vector<1x8x64xf32> to vector<8x64xf32>
    %347 = tpu.concatenate %346, %297, %327 in 1 : vector<8x64xf32>, vector<8x32xf32>, vector<8x32xf32> -> vector<8x128xf32>
    %348 = arith.truncf %347 : vector<8x128xf32> to vector<8x128xbf16>
    %cst_84 = arith.constant dense<0.000000e+00> : vector<8x288xf32>
    %349 = tpu.matmul %348, %7, %cst_84 {dimension_numbers = #tpu.dot_dimension_numbers<[1], [0], [0], [1], [0, 0, 1, 1], [], []>} : vector<8x128xbf16>, vector<128x288xbf16>, vector<8x288xf32> -> vector<8x288xf32>
    %350 = vector.broadcast %8 : vector<1x288xf32> to vector<8x288xf32>
    %351 = arith.addf %349, %350 : vector<8x288xf32>
    %352 = vector.extract_strided_slice %351 {offsets = [0, 0], sizes = [8, 96], strides = [1, 1]} : vector<8x288xf32> to vector<8x96xf32>
    %353 = vector.extract_strided_slice %351 {offsets = [0, 96], sizes = [8, 96], strides = [1, 1]} : vector<8x288xf32> to vector<8x96xf32>
    %354 = vector.extract_strided_slice %351 {offsets = [0, 192], sizes = [8, 96], strides = [1, 1]} : vector<8x288xf32> to vector<8x96xf32>
    %355 = vector.extract_strided_slice %352 {offsets = [0, 0], sizes = [8, 32], strides = [1, 1]} : vector<8x96xf32> to vector<8x32xf32>
    %356 = vector.extract_strided_slice %353 {offsets = [0, 0], sizes = [8, 32], strides = [1, 1]} : vector<8x96xf32> to vector<8x32xf32>
    %357 = arith.addf %355, %356 : vector<8x32xf32>
    %358 = arith.negf %357 : vector<8x32xf32>
    %359 = math.exp %358 : vector<8x32xf32>
    %cst_85 = arith.constant 1.000000e+00 : f32
    %360 = vector.broadcast %cst_85 : f32 to vector<8x32xf32>
    %361 = arith.addf %360, %359 : vector<8x32xf32>
    %362 = arith.divf %360, %361 : vector<8x32xf32>
    %363 = vector.extract_strided_slice %352 {offsets = [0, 32], sizes = [8, 32], strides = [1, 1]} : vector<8x96xf32> to vector<8x32xf32>
    %364 = vector.extract_strided_slice %353 {offsets = [0, 32], sizes = [8, 32], strides = [1, 1]} : vector<8x96xf32> to vector<8x32xf32>
    %365 = arith.addf %363, %364 : vector<8x32xf32>
    %366 = arith.negf %365 : vector<8x32xf32>
    %367 = math.exp %366 : vector<8x32xf32>
    %cst_86 = arith.constant 1.000000e+00 : f32
    %368 = vector.broadcast %cst_86 : f32 to vector<8x32xf32>
    %369 = arith.addf %368, %367 : vector<8x32xf32>
    %370 = arith.divf %368, %369 : vector<8x32xf32>
    %371 = vector.extract_strided_slice %352 {offsets = [0, 64], sizes = [8, 32], strides = [1, 1]} : vector<8x96xf32> to vector<8x32xf32>
    %372 = vector.extract_strided_slice %353 {offsets = [0, 64], sizes = [8, 32], strides = [1, 1]} : vector<8x96xf32> to vector<8x32xf32>
    %373 = arith.mulf %362, %372 : vector<8x32xf32>
    %374 = arith.addf %371, %373 : vector<8x32xf32>
    %375 = math.tanh %374 : vector<8x32xf32>
    %cst_87 = arith.constant 1.000000e+00 : f32
    %376 = vector.broadcast %cst_87 : f32 to vector<8x32xf32>
    %377 = arith.subf %376, %370 : vector<8x32xf32>
    %378 = arith.mulf %377, %375 : vector<8x32xf32>
    %379 = arith.mulf %370, %297 : vector<8x32xf32>
    %380 = arith.addf %378, %379 : vector<8x32xf32>
    %381 = arith.truncf %380 : vector<8x32xf32> to vector<8x32xbf16>
    %cst_88 = arith.constant dense<0.000000e+00> : vector<8x96xf32>
    %382 = tpu.matmul %381, %9, %cst_88 {dimension_numbers = #tpu.dot_dimension_numbers<[1], [0], [0], [1], [0, 0, 1, 1], [], []>} : vector<8x32xbf16>, vector<32x96xbf16>, vector<8x96xf32> -> vector<8x96xf32>
    %383 = vector.broadcast %10 : vector<1x96xf32> to vector<8x96xf32>
    %384 = arith.addf %382, %383 : vector<8x96xf32>
    %385 = vector.extract_strided_slice %384 {offsets = [0, 0], sizes = [8, 32], strides = [1, 1]} : vector<8x96xf32> to vector<8x32xf32>
    %386 = vector.extract_strided_slice %354 {offsets = [0, 0], sizes = [8, 32], strides = [1, 1]} : vector<8x96xf32> to vector<8x32xf32>
    %387 = arith.addf %385, %386 : vector<8x32xf32>
    %388 = arith.negf %387 : vector<8x32xf32>
    %389 = math.exp %388 : vector<8x32xf32>
    %cst_89 = arith.constant 1.000000e+00 : f32
    %390 = vector.broadcast %cst_89 : f32 to vector<8x32xf32>
    %391 = arith.addf %390, %389 : vector<8x32xf32>
    %392 = arith.divf %390, %391 : vector<8x32xf32>
    %393 = vector.extract_strided_slice %384 {offsets = [0, 32], sizes = [8, 32], strides = [1, 1]} : vector<8x96xf32> to vector<8x32xf32>
    %394 = vector.extract_strided_slice %354 {offsets = [0, 32], sizes = [8, 32], strides = [1, 1]} : vector<8x96xf32> to vector<8x32xf32>
    %395 = arith.addf %393, %394 : vector<8x32xf32>
    %396 = arith.negf %395 : vector<8x32xf32>
    %397 = math.exp %396 : vector<8x32xf32>
    %cst_90 = arith.constant 1.000000e+00 : f32
    %398 = vector.broadcast %cst_90 : f32 to vector<8x32xf32>
    %399 = arith.addf %398, %397 : vector<8x32xf32>
    %400 = arith.divf %398, %399 : vector<8x32xf32>
    %401 = vector.extract_strided_slice %384 {offsets = [0, 64], sizes = [8, 32], strides = [1, 1]} : vector<8x96xf32> to vector<8x32xf32>
    %402 = vector.extract_strided_slice %354 {offsets = [0, 64], sizes = [8, 32], strides = [1, 1]} : vector<8x96xf32> to vector<8x32xf32>
    %403 = arith.mulf %392, %402 : vector<8x32xf32>
    %404 = arith.addf %401, %403 : vector<8x32xf32>
    %405 = math.tanh %404 : vector<8x32xf32>
    %cst_91 = arith.constant 1.000000e+00 : f32
    %406 = vector.broadcast %cst_91 : f32 to vector<8x32xf32>
    %407 = arith.subf %406, %400 : vector<8x32xf32>
    %408 = arith.mulf %407, %405 : vector<8x32xf32>
    %409 = arith.mulf %400, %327 : vector<8x32xf32>
    %410 = arith.addf %408, %409 : vector<8x32xf32>
    %411 = arith.truncf %410 : vector<8x32xf32> to vector<8x32xbf16>
    %cst_92 = arith.constant dense<0.000000e+00> : vector<8x128xf32>
    %412 = tpu.matmul %411, %11, %cst_92 {dimension_numbers = #tpu.dot_dimension_numbers<[1], [0], [0], [1], [0, 0, 1, 1], [], []>} : vector<8x32xbf16>, vector<32x128xbf16>, vector<8x128xf32> -> vector<8x128xf32>
    %413 = vector.broadcast %12 : vector<1x128xf32> to vector<8x128xf32>
    %414 = arith.addf %412, %413 : vector<8x128xf32>
    %cst_93 = arith.constant dense<0xFF800000> : vector<8xf32>
    %415 = vector.multi_reduction <maximumf>, %414, %cst_93 [1] : vector<8x128xf32> to vector<8xf32>
    %416 = vector.shape_cast %415 : vector<8xf32> to vector<8x1xf32>
    %417 = vector.broadcast %416 : vector<8x1xf32> to vector<8x128xf32>
    %418 = arith.subf %414, %417 : vector<8x128xf32>
    %419 = math.exp %418 : vector<8x128xf32>
    %cst_94 = arith.constant dense<0.000000e+00> : vector<8xf32>
    %420 = vector.multi_reduction <add>, %419, %cst_94 [1] : vector<8x128xf32> to vector<8xf32>
    %421 = vector.shape_cast %420 : vector<8xf32> to vector<8x1xf32>
    %422 = math.log %421 : vector<8x1xf32>
    %423 = vector.broadcast %422 : vector<8x1xf32> to vector<8x128xf32>
    %424 = arith.subf %418, %423 : vector<8x128xf32>
    %c4_95 = arith.constant 4 : index
    %c0_96 = arith.constant 0 : index
    %c0_97 = arith.constant 0 : index
    %425 = vector.load %arg9[%c4_95, %c0_96, %c0_97] : memref<8x8x128xf32, #tpu.memory_space<vmem>>, vector<1x8x128xf32>
    %426 = vector.shape_cast %425 : vector<1x8x128xf32> to vector<8x128xf32>
    %427 = vector.shape_cast %424 : vector<8x128xf32> to vector<1x8x128xf32>
    tpu.vector_store %arg9[%c4_95, %c0_96, %c0_97], %427 {strides = array<i32>} : memref<8x8x128xf32, #tpu.memory_space<vmem>>, vector<1x8x128xf32>,
    %c5 = arith.constant 5 : index
    %c0_98 = arith.constant 0 : index
    %c0_99 = arith.constant 0 : index
    %428 = vector.load %arg1[%c5, %c0_98, %c0_99] : memref<8x8x64xf32, #tpu.memory_space<vmem>>, vector<1x8x64xf32>
    %429 = vector.shape_cast %428 : vector<1x8x64xf32> to vector<8x64xf32>
    %430 = tpu.concatenate %429, %380, %410 in 1 : vector<8x64xf32>, vector<8x32xf32>, vector<8x32xf32> -> vector<8x128xf32>
    %431 = arith.truncf %430 : vector<8x128xf32> to vector<8x128xbf16>
    %cst_100 = arith.constant dense<0.000000e+00> : vector<8x288xf32>
    %432 = tpu.matmul %431, %7, %cst_100 {dimension_numbers = #tpu.dot_dimension_numbers<[1], [0], [0], [1], [0, 0, 1, 1], [], []>} : vector<8x128xbf16>, vector<128x288xbf16>, vector<8x288xf32> -> vector<8x288xf32>
    %433 = vector.broadcast %8 : vector<1x288xf32> to vector<8x288xf32>
    %434 = arith.addf %432, %433 : vector<8x288xf32>
    %435 = vector.extract_strided_slice %434 {offsets = [0, 0], sizes = [8, 96], strides = [1, 1]} : vector<8x288xf32> to vector<8x96xf32>
    %436 = vector.extract_strided_slice %434 {offsets = [0, 96], sizes = [8, 96], strides = [1, 1]} : vector<8x288xf32> to vector<8x96xf32>
    %437 = vector.extract_strided_slice %434 {offsets = [0, 192], sizes = [8, 96], strides = [1, 1]} : vector<8x288xf32> to vector<8x96xf32>
    %438 = vector.extract_strided_slice %435 {offsets = [0, 0], sizes = [8, 32], strides = [1, 1]} : vector<8x96xf32> to vector<8x32xf32>
    %439 = vector.extract_strided_slice %436 {offsets = [0, 0], sizes = [8, 32], strides = [1, 1]} : vector<8x96xf32> to vector<8x32xf32>
    %440 = arith.addf %438, %439 : vector<8x32xf32>
    %441 = arith.negf %440 : vector<8x32xf32>
    %442 = math.exp %441 : vector<8x32xf32>
    %cst_101 = arith.constant 1.000000e+00 : f32
    %443 = vector.broadcast %cst_101 : f32 to vector<8x32xf32>
    %444 = arith.addf %443, %442 : vector<8x32xf32>
    %445 = arith.divf %443, %444 : vector<8x32xf32>
    %446 = vector.extract_strided_slice %435 {offsets = [0, 32], sizes = [8, 32], strides = [1, 1]} : vector<8x96xf32> to vector<8x32xf32>
    %447 = vector.extract_strided_slice %436 {offsets = [0, 32], sizes = [8, 32], strides = [1, 1]} : vector<8x96xf32> to vector<8x32xf32>
    %448 = arith.addf %446, %447 : vector<8x32xf32>
    %449 = arith.negf %448 : vector<8x32xf32>
    %450 = math.exp %449 : vector<8x32xf32>
    %cst_102 = arith.constant 1.000000e+00 : f32
    %451 = vector.broadcast %cst_102 : f32 to vector<8x32xf32>
    %452 = arith.addf %451, %450 : vector<8x32xf32>
    %453 = arith.divf %451, %452 : vector<8x32xf32>
    %454 = vector.extract_strided_slice %435 {offsets = [0, 64], sizes = [8, 32], strides = [1, 1]} : vector<8x96xf32> to vector<8x32xf32>
    %455 = vector.extract_strided_slice %436 {offsets = [0, 64], sizes = [8, 32], strides = [1, 1]} : vector<8x96xf32> to vector<8x32xf32>
    %456 = arith.mulf %445, %455 : vector<8x32xf32>
    %457 = arith.addf %454, %456 : vector<8x32xf32>
    %458 = math.tanh %457 : vector<8x32xf32>
    %cst_103 = arith.constant 1.000000e+00 : f32
    %459 = vector.broadcast %cst_103 : f32 to vector<8x32xf32>
    %460 = arith.subf %459, %453 : vector<8x32xf32>
    %461 = arith.mulf %460, %458 : vector<8x32xf32>
    %462 = arith.mulf %453, %380 : vector<8x32xf32>
    %463 = arith.addf %461, %462 : vector<8x32xf32>
    %464 = arith.truncf %463 : vector<8x32xf32> to vector<8x32xbf16>
    %cst_104 = arith.constant dense<0.000000e+00> : vector<8x96xf32>
    %465 = tpu.matmul %464, %9, %cst_104 {dimension_numbers = #tpu.dot_dimension_numbers<[1], [0], [0], [1], [0, 0, 1, 1], [], []>} : vector<8x32xbf16>, vector<32x96xbf16>, vector<8x96xf32> -> vector<8x96xf32>
    %466 = vector.broadcast %10 : vector<1x96xf32> to vector<8x96xf32>
    %467 = arith.addf %465, %466 : vector<8x96xf32>
    %468 = vector.extract_strided_slice %467 {offsets = [0, 0], sizes = [8, 32], strides = [1, 1]} : vector<8x96xf32> to vector<8x32xf32>
    %469 = vector.extract_strided_slice %437 {offsets = [0, 0], sizes = [8, 32], strides = [1, 1]} : vector<8x96xf32> to vector<8x32xf32>
    %470 = arith.addf %468, %469 : vector<8x32xf32>
    %471 = arith.negf %470 : vector<8x32xf32>
    %472 = math.exp %471 : vector<8x32xf32>
    %cst_105 = arith.constant 1.000000e+00 : f32
    %473 = vector.broadcast %cst_105 : f32 to vector<8x32xf32>
    %474 = arith.addf %473, %472 : vector<8x32xf32>
    %475 = arith.divf %473, %474 : vector<8x32xf32>
    %476 = vector.extract_strided_slice %467 {offsets = [0, 32], sizes = [8, 32], strides = [1, 1]} : vector<8x96xf32> to vector<8x32xf32>
    %477 = vector.extract_strided_slice %437 {offsets = [0, 32], sizes = [8, 32], strides = [1, 1]} : vector<8x96xf32> to vector<8x32xf32>
    %478 = arith.addf %476, %477 : vector<8x32xf32>
    %479 = arith.negf %478 : vector<8x32xf32>
    %480 = math.exp %479 : vector<8x32xf32>
    %cst_106 = arith.constant 1.000000e+00 : f32
    %481 = vector.broadcast %cst_106 : f32 to vector<8x32xf32>
    %482 = arith.addf %481, %480 : vector<8x32xf32>
    %483 = arith.divf %481, %482 : vector<8x32xf32>
    %484 = vector.extract_strided_slice %467 {offsets = [0, 64], sizes = [8, 32], strides = [1, 1]} : vector<8x96xf32> to vector<8x32xf32>
    %485 = vector.extract_strided_slice %437 {offsets = [0, 64], sizes = [8, 32], strides = [1, 1]} : vector<8x96xf32> to vector<8x32xf32>
    %486 = arith.mulf %475, %485 : vector<8x32xf32>
    %487 = arith.addf %484, %486 : vector<8x32xf32>
    %488 = math.tanh %487 : vector<8x32xf32>
    %cst_107 = arith.constant 1.000000e+00 : f32
    %489 = vector.broadcast %cst_107 : f32 to vector<8x32xf32>
    %490 = arith.subf %489, %483 : vector<8x32xf32>
    %491 = arith.mulf %490, %488 : vector<8x32xf32>
    %492 = arith.mulf %483, %410 : vector<8x32xf32>
    %493 = arith.addf %491, %492 : vector<8x32xf32>
    %494 = arith.truncf %493 : vector<8x32xf32> to vector<8x32xbf16>
    %cst_108 = arith.constant dense<0.000000e+00> : vector<8x128xf32>
    %495 = tpu.matmul %494, %11, %cst_108 {dimension_numbers = #tpu.dot_dimension_numbers<[1], [0], [0], [1], [0, 0, 1, 1], [], []>} : vector<8x32xbf16>, vector<32x128xbf16>, vector<8x128xf32> -> vector<8x128xf32>
    %496 = vector.broadcast %12 : vector<1x128xf32> to vector<8x128xf32>
    %497 = arith.addf %495, %496 : vector<8x128xf32>
    %cst_109 = arith.constant dense<0xFF800000> : vector<8xf32>
    %498 = vector.multi_reduction <maximumf>, %497, %cst_109 [1] : vector<8x128xf32> to vector<8xf32>
    %499 = vector.shape_cast %498 : vector<8xf32> to vector<8x1xf32>
    %500 = vector.broadcast %499 : vector<8x1xf32> to vector<8x128xf32>
    %501 = arith.subf %497, %500 : vector<8x128xf32>
    %502 = math.exp %501 : vector<8x128xf32>
    %cst_110 = arith.constant dense<0.000000e+00> : vector<8xf32>
    %503 = vector.multi_reduction <add>, %502, %cst_110 [1] : vector<8x128xf32> to vector<8xf32>
    %504 = vector.shape_cast %503 : vector<8xf32> to vector<8x1xf32>
    %505 = math.log %504 : vector<8x1xf32>
    %506 = vector.broadcast %505 : vector<8x1xf32> to vector<8x128xf32>
    %507 = arith.subf %501, %506 : vector<8x128xf32>
    %c5_111 = arith.constant 5 : index
    %c0_112 = arith.constant 0 : index
    %c0_113 = arith.constant 0 : index
    %508 = vector.load %arg9[%c5_111, %c0_112, %c0_113] : memref<8x8x128xf32, #tpu.memory_space<vmem>>, vector<1x8x128xf32>
    %509 = vector.shape_cast %508 : vector<1x8x128xf32> to vector<8x128xf32>
    %510 = vector.shape_cast %507 : vector<8x128xf32> to vector<1x8x128xf32>
    tpu.vector_store %arg9[%c5_111, %c0_112, %c0_113], %510 {strides = array<i32>} : memref<8x8x128xf32, #tpu.memory_space<vmem>>, vector<1x8x128xf32>,
    %c6 = arith.constant 6 : index
    %c0_114 = arith.constant 0 : index
    %c0_115 = arith.constant 0 : index
    %511 = vector.load %arg1[%c6, %c0_114, %c0_115] : memref<8x8x64xf32, #tpu.memory_space<vmem>>, vector<1x8x64xf32>
    %512 = vector.shape_cast %511 : vector<1x8x64xf32> to vector<8x64xf32>
    %513 = tpu.concatenate %512, %463, %493 in 1 : vector<8x64xf32>, vector<8x32xf32>, vector<8x32xf32> -> vector<8x128xf32>
    %514 = arith.truncf %513 : vector<8x128xf32> to vector<8x128xbf16>
    %cst_116 = arith.constant dense<0.000000e+00> : vector<8x288xf32>
    %515 = tpu.matmul %514, %7, %cst_116 {dimension_numbers = #tpu.dot_dimension_numbers<[1], [0], [0], [1], [0, 0, 1, 1], [], []>} : vector<8x128xbf16>, vector<128x288xbf16>, vector<8x288xf32> -> vector<8x288xf32>
    %516 = vector.broadcast %8 : vector<1x288xf32> to vector<8x288xf32>
    %517 = arith.addf %515, %516 : vector<8x288xf32>
    %518 = vector.extract_strided_slice %517 {offsets = [0, 0], sizes = [8, 96], strides = [1, 1]} : vector<8x288xf32> to vector<8x96xf32>
    %519 = vector.extract_strided_slice %517 {offsets = [0, 96], sizes = [8, 96], strides = [1, 1]} : vector<8x288xf32> to vector<8x96xf32>
    %520 = vector.extract_strided_slice %517 {offsets = [0, 192], sizes = [8, 96], strides = [1, 1]} : vector<8x288xf32> to vector<8x96xf32>
    %521 = vector.extract_strided_slice %518 {offsets = [0, 0], sizes = [8, 32], strides = [1, 1]} : vector<8x96xf32> to vector<8x32xf32>
    %522 = vector.extract_strided_slice %519 {offsets = [0, 0], sizes = [8, 32], strides = [1, 1]} : vector<8x96xf32> to vector<8x32xf32>
    %523 = arith.addf %521, %522 : vector<8x32xf32>
    %524 = arith.negf %523 : vector<8x32xf32>
    %525 = math.exp %524 : vector<8x32xf32>
    %cst_117 = arith.constant 1.000000e+00 : f32
    %526 = vector.broadcast %cst_117 : f32 to vector<8x32xf32>
    %527 = arith.addf %526, %525 : vector<8x32xf32>
    %528 = arith.divf %526, %527 : vector<8x32xf32>
    %529 = vector.extract_strided_slice %518 {offsets = [0, 32], sizes = [8, 32], strides = [1, 1]} : vector<8x96xf32> to vector<8x32xf32>
    %530 = vector.extract_strided_slice %519 {offsets = [0, 32], sizes = [8, 32], strides = [1, 1]} : vector<8x96xf32> to vector<8x32xf32>
    %531 = arith.addf %529, %530 : vector<8x32xf32>
    %532 = arith.negf %531 : vector<8x32xf32>
    %533 = math.exp %532 : vector<8x32xf32>
    %cst_118 = arith.constant 1.000000e+00 : f32
    %534 = vector.broadcast %cst_118 : f32 to vector<8x32xf32>
    %535 = arith.addf %534, %533 : vector<8x32xf32>
    %536 = arith.divf %534, %535 : vector<8x32xf32>
    %537 = vector.extract_strided_slice %518 {offsets = [0, 64], sizes = [8, 32], strides = [1, 1]} : vector<8x96xf32> to vector<8x32xf32>
    %538 = vector.extract_strided_slice %519 {offsets = [0, 64], sizes = [8, 32], strides = [1, 1]} : vector<8x96xf32> to vector<8x32xf32>
    %539 = arith.mulf %528, %538 : vector<8x32xf32>
    %540 = arith.addf %537, %539 : vector<8x32xf32>
    %541 = math.tanh %540 : vector<8x32xf32>
    %cst_119 = arith.constant 1.000000e+00 : f32
    %542 = vector.broadcast %cst_119 : f32 to vector<8x32xf32>
    %543 = arith.subf %542, %536 : vector<8x32xf32>
    %544 = arith.mulf %543, %541 : vector<8x32xf32>
    %545 = arith.mulf %536, %463 : vector<8x32xf32>
    %546 = arith.addf %544, %545 : vector<8x32xf32>
    %547 = arith.truncf %546 : vector<8x32xf32> to vector<8x32xbf16>
    %cst_120 = arith.constant dense<0.000000e+00> : vector<8x96xf32>
    %548 = tpu.matmul %547, %9, %cst_120 {dimension_numbers = #tpu.dot_dimension_numbers<[1], [0], [0], [1], [0, 0, 1, 1], [], []>} : vector<8x32xbf16>, vector<32x96xbf16>, vector<8x96xf32> -> vector<8x96xf32>
    %549 = vector.broadcast %10 : vector<1x96xf32> to vector<8x96xf32>
    %550 = arith.addf %548, %549 : vector<8x96xf32>
    %551 = vector.extract_strided_slice %550 {offsets = [0, 0], sizes = [8, 32], strides = [1, 1]} : vector<8x96xf32> to vector<8x32xf32>
    %552 = vector.extract_strided_slice %520 {offsets = [0, 0], sizes = [8, 32], strides = [1, 1]} : vector<8x96xf32> to vector<8x32xf32>
    %553 = arith.addf %551, %552 : vector<8x32xf32>
    %554 = arith.negf %553 : vector<8x32xf32>
    %555 = math.exp %554 : vector<8x32xf32>
    %cst_121 = arith.constant 1.000000e+00 : f32
    %556 = vector.broadcast %cst_121 : f32 to vector<8x32xf32>
    %557 = arith.addf %556, %555 : vector<8x32xf32>
    %558 = arith.divf %556, %557 : vector<8x32xf32>
    %559 = vector.extract_strided_slice %550 {offsets = [0, 32], sizes = [8, 32], strides = [1, 1]} : vector<8x96xf32> to vector<8x32xf32>
    %560 = vector.extract_strided_slice %520 {offsets = [0, 32], sizes = [8, 32], strides = [1, 1]} : vector<8x96xf32> to vector<8x32xf32>
    %561 = arith.addf %559, %560 : vector<8x32xf32>
    %562 = arith.negf %561 : vector<8x32xf32>
    %563 = math.exp %562 : vector<8x32xf32>
    %cst_122 = arith.constant 1.000000e+00 : f32
    %564 = vector.broadcast %cst_122 : f32 to vector<8x32xf32>
    %565 = arith.addf %564, %563 : vector<8x32xf32>
    %566 = arith.divf %564, %565 : vector<8x32xf32>
    %567 = vector.extract_strided_slice %550 {offsets = [0, 64], sizes = [8, 32], strides = [1, 1]} : vector<8x96xf32> to vector<8x32xf32>
    %568 = vector.extract_strided_slice %520 {offsets = [0, 64], sizes = [8, 32], strides = [1, 1]} : vector<8x96xf32> to vector<8x32xf32>
    %569 = arith.mulf %558, %568 : vector<8x32xf32>
    %570 = arith.addf %567, %569 : vector<8x32xf32>
    %571 = math.tanh %570 : vector<8x32xf32>
    %cst_123 = arith.constant 1.000000e+00 : f32
    %572 = vector.broadcast %cst_123 : f32 to vector<8x32xf32>
    %573 = arith.subf %572, %566 : vector<8x32xf32>
    %574 = arith.mulf %573, %571 : vector<8x32xf32>
    %575 = arith.mulf %566, %493 : vector<8x32xf32>
    %576 = arith.addf %574, %575 : vector<8x32xf32>
    %577 = arith.truncf %576 : vector<8x32xf32> to vector<8x32xbf16>
    %cst_124 = arith.constant dense<0.000000e+00> : vector<8x128xf32>
    %578 = tpu.matmul %577, %11, %cst_124 {dimension_numbers = #tpu.dot_dimension_numbers<[1], [0], [0], [1], [0, 0, 1, 1], [], []>} : vector<8x32xbf16>, vector<32x128xbf16>, vector<8x128xf32> -> vector<8x128xf32>
    %579 = vector.broadcast %12 : vector<1x128xf32> to vector<8x128xf32>
    %580 = arith.addf %578, %579 : vector<8x128xf32>
    %cst_125 = arith.constant dense<0xFF800000> : vector<8xf32>
    %581 = vector.multi_reduction <maximumf>, %580, %cst_125 [1] : vector<8x128xf32> to vector<8xf32>
    %582 = vector.shape_cast %581 : vector<8xf32> to vector<8x1xf32>
    %583 = vector.broadcast %582 : vector<8x1xf32> to vector<8x128xf32>
    %584 = arith.subf %580, %583 : vector<8x128xf32>
    %585 = math.exp %584 : vector<8x128xf32>
    %cst_126 = arith.constant dense<0.000000e+00> : vector<8xf32>
    %586 = vector.multi_reduction <add>, %585, %cst_126 [1] : vector<8x128xf32> to vector<8xf32>
    %587 = vector.shape_cast %586 : vector<8xf32> to vector<8x1xf32>
    %588 = math.log %587 : vector<8x1xf32>
    %589 = vector.broadcast %588 : vector<8x1xf32> to vector<8x128xf32>
    %590 = arith.subf %584, %589 : vector<8x128xf32>
    %c6_127 = arith.constant 6 : index
    %c0_128 = arith.constant 0 : index
    %c0_129 = arith.constant 0 : index
    %591 = vector.load %arg9[%c6_127, %c0_128, %c0_129] : memref<8x8x128xf32, #tpu.memory_space<vmem>>, vector<1x8x128xf32>
    %592 = vector.shape_cast %591 : vector<1x8x128xf32> to vector<8x128xf32>
    %593 = vector.shape_cast %590 : vector<8x128xf32> to vector<1x8x128xf32>
    tpu.vector_store %arg9[%c6_127, %c0_128, %c0_129], %593 {strides = array<i32>} : memref<8x8x128xf32, #tpu.memory_space<vmem>>, vector<1x8x128xf32>,
    %c7 = arith.constant 7 : index
    %c0_130 = arith.constant 0 : index
    %c0_131 = arith.constant 0 : index
    %594 = vector.load %arg1[%c7, %c0_130, %c0_131] : memref<8x8x64xf32, #tpu.memory_space<vmem>>, vector<1x8x64xf32>
    %595 = vector.shape_cast %594 : vector<1x8x64xf32> to vector<8x64xf32>
    %596 = tpu.concatenate %595, %546, %576 in 1 : vector<8x64xf32>, vector<8x32xf32>, vector<8x32xf32> -> vector<8x128xf32>
    %597 = arith.truncf %596 : vector<8x128xf32> to vector<8x128xbf16>
    %cst_132 = arith.constant dense<0.000000e+00> : vector<8x288xf32>
    %598 = tpu.matmul %597, %7, %cst_132 {dimension_numbers = #tpu.dot_dimension_numbers<[1], [0], [0], [1], [0, 0, 1, 1], [], []>} : vector<8x128xbf16>, vector<128x288xbf16>, vector<8x288xf32> -> vector<8x288xf32>
    %599 = vector.broadcast %8 : vector<1x288xf32> to vector<8x288xf32>
    %600 = arith.addf %598, %599 : vector<8x288xf32>
    %601 = vector.extract_strided_slice %600 {offsets = [0, 0], sizes = [8, 96], strides = [1, 1]} : vector<8x288xf32> to vector<8x96xf32>
    %602 = vector.extract_strided_slice %600 {offsets = [0, 96], sizes = [8, 96], strides = [1, 1]} : vector<8x288xf32> to vector<8x96xf32>
    %603 = vector.extract_strided_slice %600 {offsets = [0, 192], sizes = [8, 96], strides = [1, 1]} : vector<8x288xf32> to vector<8x96xf32>
    %604 = vector.extract_strided_slice %601 {offsets = [0, 0], sizes = [8, 32], strides = [1, 1]} : vector<8x96xf32> to vector<8x32xf32>
    %605 = vector.extract_strided_slice %602 {offsets = [0, 0], sizes = [8, 32], strides = [1, 1]} : vector<8x96xf32> to vector<8x32xf32>
    %606 = arith.addf %604, %605 : vector<8x32xf32>
    %607 = arith.negf %606 : vector<8x32xf32>
    %608 = math.exp %607 : vector<8x32xf32>
    %cst_133 = arith.constant 1.000000e+00 : f32
    %609 = vector.broadcast %cst_133 : f32 to vector<8x32xf32>
    %610 = arith.addf %609, %608 : vector<8x32xf32>
    %611 = arith.divf %609, %610 : vector<8x32xf32>
    %612 = vector.extract_strided_slice %601 {offsets = [0, 32], sizes = [8, 32], strides = [1, 1]} : vector<8x96xf32> to vector<8x32xf32>
    %613 = vector.extract_strided_slice %602 {offsets = [0, 32], sizes = [8, 32], strides = [1, 1]} : vector<8x96xf32> to vector<8x32xf32>
    %614 = arith.addf %612, %613 : vector<8x32xf32>
    %615 = arith.negf %614 : vector<8x32xf32>
    %616 = math.exp %615 : vector<8x32xf32>
    %cst_134 = arith.constant 1.000000e+00 : f32
    %617 = vector.broadcast %cst_134 : f32 to vector<8x32xf32>
    %618 = arith.addf %617, %616 : vector<8x32xf32>
    %619 = arith.divf %617, %618 : vector<8x32xf32>
    %620 = vector.extract_strided_slice %601 {offsets = [0, 64], sizes = [8, 32], strides = [1, 1]} : vector<8x96xf32> to vector<8x32xf32>
    %621 = vector.extract_strided_slice %602 {offsets = [0, 64], sizes = [8, 32], strides = [1, 1]} : vector<8x96xf32> to vector<8x32xf32>
    %622 = arith.mulf %611, %621 : vector<8x32xf32>
    %623 = arith.addf %620, %622 : vector<8x32xf32>
    %624 = math.tanh %623 : vector<8x32xf32>
    %cst_135 = arith.constant 1.000000e+00 : f32
    %625 = vector.broadcast %cst_135 : f32 to vector<8x32xf32>
    %626 = arith.subf %625, %619 : vector<8x32xf32>
    %627 = arith.mulf %626, %624 : vector<8x32xf32>
    %628 = arith.mulf %619, %546 : vector<8x32xf32>
    %629 = arith.addf %627, %628 : vector<8x32xf32>
    %630 = arith.truncf %629 : vector<8x32xf32> to vector<8x32xbf16>
    %cst_136 = arith.constant dense<0.000000e+00> : vector<8x96xf32>
    %631 = tpu.matmul %630, %9, %cst_136 {dimension_numbers = #tpu.dot_dimension_numbers<[1], [0], [0], [1], [0, 0, 1, 1], [], []>} : vector<8x32xbf16>, vector<32x96xbf16>, vector<8x96xf32> -> vector<8x96xf32>
    %632 = vector.broadcast %10 : vector<1x96xf32> to vector<8x96xf32>
    %633 = arith.addf %631, %632 : vector<8x96xf32>
    %634 = vector.extract_strided_slice %633 {offsets = [0, 0], sizes = [8, 32], strides = [1, 1]} : vector<8x96xf32> to vector<8x32xf32>
    %635 = vector.extract_strided_slice %603 {offsets = [0, 0], sizes = [8, 32], strides = [1, 1]} : vector<8x96xf32> to vector<8x32xf32>
    %636 = arith.addf %634, %635 : vector<8x32xf32>
    %637 = arith.negf %636 : vector<8x32xf32>
    %638 = math.exp %637 : vector<8x32xf32>
    %cst_137 = arith.constant 1.000000e+00 : f32
    %639 = vector.broadcast %cst_137 : f32 to vector<8x32xf32>
    %640 = arith.addf %639, %638 : vector<8x32xf32>
    %641 = arith.divf %639, %640 : vector<8x32xf32>
    %642 = vector.extract_strided_slice %633 {offsets = [0, 32], sizes = [8, 32], strides = [1, 1]} : vector<8x96xf32> to vector<8x32xf32>
    %643 = vector.extract_strided_slice %603 {offsets = [0, 32], sizes = [8, 32], strides = [1, 1]} : vector<8x96xf32> to vector<8x32xf32>
    %644 = arith.addf %642, %643 : vector<8x32xf32>
    %645 = arith.negf %644 : vector<8x32xf32>
    %646 = math.exp %645 : vector<8x32xf32>
    %cst_138 = arith.constant 1.000000e+00 : f32
    %647 = vector.broadcast %cst_138 : f32 to vector<8x32xf32>
    %648 = arith.addf %647, %646 : vector<8x32xf32>
    %649 = arith.divf %647, %648 : vector<8x32xf32>
    %650 = vector.extract_strided_slice %633 {offsets = [0, 64], sizes = [8, 32], strides = [1, 1]} : vector<8x96xf32> to vector<8x32xf32>
    %651 = vector.extract_strided_slice %603 {offsets = [0, 64], sizes = [8, 32], strides = [1, 1]} : vector<8x96xf32> to vector<8x32xf32>
    %652 = arith.mulf %641, %651 : vector<8x32xf32>
    %653 = arith.addf %650, %652 : vector<8x32xf32>
    %654 = math.tanh %653 : vector<8x32xf32>
    %cst_139 = arith.constant 1.000000e+00 : f32
    %655 = vector.broadcast %cst_139 : f32 to vector<8x32xf32>
    %656 = arith.subf %655, %649 : vector<8x32xf32>
    %657 = arith.mulf %656, %654 : vector<8x32xf32>
    %658 = arith.mulf %649, %576 : vector<8x32xf32>
    %659 = arith.addf %657, %658 : vector<8x32xf32>
    %660 = arith.truncf %659 : vector<8x32xf32> to vector<8x32xbf16>
    %cst_140 = arith.constant dense<0.000000e+00> : vector<8x128xf32>
    %661 = tpu.matmul %660, %11, %cst_140 {dimension_numbers = #tpu.dot_dimension_numbers<[1], [0], [0], [1], [0, 0, 1, 1], [], []>} : vector<8x32xbf16>, vector<32x128xbf16>, vector<8x128xf32> -> vector<8x128xf32>
    %662 = vector.broadcast %12 : vector<1x128xf32> to vector<8x128xf32>
    %663 = arith.addf %661, %662 : vector<8x128xf32>
    %cst_141 = arith.constant dense<0xFF800000> : vector<8xf32>
    %664 = vector.multi_reduction <maximumf>, %663, %cst_141 [1] : vector<8x128xf32> to vector<8xf32>
    %665 = vector.shape_cast %664 : vector<8xf32> to vector<8x1xf32>
    %666 = vector.broadcast %665 : vector<8x1xf32> to vector<8x128xf32>
    %667 = arith.subf %663, %666 : vector<8x128xf32>
    %668 = math.exp %667 : vector<8x128xf32>
    %cst_142 = arith.constant dense<0.000000e+00> : vector<8xf32>
    %669 = vector.multi_reduction <add>, %668, %cst_142 [1] : vector<8x128xf32> to vector<8xf32>
    %670 = vector.shape_cast %669 : vector<8xf32> to vector<8x1xf32>
    %671 = math.log %670 : vector<8x1xf32>
    %672 = vector.broadcast %671 : vector<8x1xf32> to vector<8x128xf32>
    %673 = arith.subf %667, %672 : vector<8x128xf32>
    %c7_143 = arith.constant 7 : index
    %c0_144 = arith.constant 0 : index
    %c0_145 = arith.constant 0 : index
    %674 = vector.load %arg9[%c7_143, %c0_144, %c0_145] : memref<8x8x128xf32, #tpu.memory_space<vmem>>, vector<1x8x128xf32>
    %675 = vector.shape_cast %674 : vector<1x8x128xf32> to vector<8x128xf32>
    %676 = vector.shape_cast %673 : vector<8x128xf32> to vector<1x8x128xf32>
    tpu.vector_store %arg9[%c7_143, %c0_144, %c0_145], %676 {strides = array<i32>} : memref<8x8x128xf32, #tpu.memory_space<vmem>>, vector<1x8x128xf32>,
    %c0_146 = arith.constant 0 : index
    %c0_147 = arith.constant 0 : index
    %c0_148 = arith.constant 0 : index
    %677 = vector.load %arg10[%c0_146, %c0_147, %c0_148] : memref<2x8x32xf32, #tpu.memory_space<vmem>>, vector<1x8x32xf32>
    %678 = vector.shape_cast %677 : vector<1x8x32xf32> to vector<8x32xf32>
    %679 = vector.shape_cast %629 : vector<8x32xf32> to vector<1x8x32xf32>
    tpu.vector_store %arg10[%c0_146, %c0_147, %c0_148], %679 {strides = array<i32>} : memref<2x8x32xf32, #tpu.memory_space<vmem>>, vector<1x8x32xf32>,
    %c1_149 = arith.constant 1 : index
    %c0_150 = arith.constant 0 : index
    %c0_151 = arith.constant 0 : index
    %680 = vector.load %arg10[%c1_149, %c0_150, %c0_151] : memref<2x8x32xf32, #tpu.memory_space<vmem>>, vector<1x8x32xf32>
    %681 = vector.shape_cast %680 : vector<1x8x32xf32> to vector<8x32xf32>
    %682 = vector.shape_cast %659 : vector<8x32xf32> to vector<1x8x32xf32>
    tpu.vector_store %arg10[%c1_149, %c0_150, %c0_151], %682 {strides = array<i32>} : memref<2x8x32xf32, #tpu.memory_space<vmem>>, vector<1x8x32xf32>,
    return
  }
  func.func @transform_0(%arg0: i32) -> (i32, i32, i32) {
    %c0_i32 = arith.constant 0 : i32
    %c0_i32_0 = arith.constant 0 : i32
    %c0_i32_1 = arith.constant 0 : i32
    return %arg0, %c0_i32, %c0_i32_0 : i32, i32, i32
  }
  func.func @transform_1(%arg0: i32) -> (i32, i32, i32) {
    %c0_i32 = arith.constant 0 : i32
    %c0_i32_0 = arith.constant 0 : i32
    %c0_i32_1 = arith.constant 0 : i32
    %c0_i32_2 = arith.constant 0 : i32
    return %c0_i32, %c0_i32_0, %c0_i32_1 : i32, i32, i32
  }
  func.func @transform_2(%arg0: i32) -> (i32, i32) {
    %c0_i32 = arith.constant 0 : i32
    %c0_i32_0 = arith.constant 0 : i32
    %c0_i32_1 = arith.constant 0 : i32
    return %c0_i32, %c0_i32_0 : i32, i32
  }
  func.func @transform_3(%arg0: i32) -> (i32, i32) {
    %c0_i32 = arith.constant 0 : i32
    %c0_i32_0 = arith.constant 0 : i32
    %c0_i32_1 = arith.constant 0 : i32
    return %c0_i32, %c0_i32_0 : i32, i32
  }
  func.func @transform_4(%arg0: i32) -> (i32, i32) {
    %c0_i32 = arith.constant 0 : i32
    %c0_i32_0 = arith.constant 0 : i32
    %c0_i32_1 = arith.constant 0 : i32
    return %c0_i32, %c0_i32_0 : i32, i32
  }
  func.func @transform_5(%arg0: i32) -> (i32, i32) {
    %c0_i32 = arith.constant 0 : i32
    %c0_i32_0 = arith.constant 0 : i32
    %c0_i32_1 = arith.constant 0 : i32
    return %c0_i32, %c0_i32_0 : i32, i32
  }
  func.func @transform_6(%arg0: i32) -> (i32, i32) {
    %c0_i32 = arith.constant 0 : i32
    %c0_i32_0 = arith.constant 0 : i32
    %c0_i32_1 = arith.constant 0 : i32
    return %c0_i32, %c0_i32_0 : i32, i32
  }
  func.func @transform_7(%arg0: i32) -> (i32, i32) {
    %c0_i32 = arith.constant 0 : i32
    %c0_i32_0 = arith.constant 0 : i32
    %c0_i32_1 = arith.constant 0 : i32
    return %c0_i32, %c0_i32_0 : i32, i32
  }
  func.func @transform_8(%arg0: i32) -> (i32, i32, i32) {
    %c0_i32 = arith.constant 0 : i32
    %c0_i32_0 = arith.constant 0 : i32
    %c0_i32_1 = arith.constant 0 : i32
    return %arg0, %c0_i32, %c0_i32_0 : i32, i32, i32
  }
  func.func @transform_9(%arg0: i32) -> (i32, i32, i32) {
    %c0_i32 = arith.constant 0 : i32
    %c0_i32_0 = arith.constant 0 : i32
    %c0_i32_1 = arith.constant 0 : i32
    %c0_i32_2 = arith.constant 0 : i32
    return %c0_i32, %c0_i32_0, %c0_i32_1 : i32, i32, i32
  }
}

</mosaic_0001>

<bundles_post_ra>
// kernel: char_rnn2_forward.1
= control target key start
LH: loop header
LB: loop body
LE: loop exit
PB: predicated region body
PF: predicated region fallthrough
CT: control target
= control target key end

     0   :  { %vm38_vm0 = vcmask 261120   ;;  %v3142_v2 = vmov 0.0   ;;  %v3143_v6 = vmov 0   ;;  %vm3144_vm1 = vmmov 0   ;;  %s3145_s15 = smov 64   ;;  %s3146_s23 = smov 96   ;;  %s4297_s1 = inlined_call_operand.vmem [shape: f32[2,8,32], index: 1, kind: input, shape index: {}]   ;;  %s4298_s9 = inlined_call_operand.vmem [shape: f32[2,8,32], index: 9, kind: output, shape index: {1}]   ;;  %s4299_s2 = inlined_call_operand.vmem [shape: bf16[128,288], index: 2, kind: input, shape index: {}]   ;;  %s4300_s0 = inlined_call_operand.vmem [shape: f32[8,8,64], index: 0, kind: input, shape index: {}]   ;;  %s4301_s3 = inlined_call_operand.vmem [shape: f32[1,288], index: 3, kind: input, shape index: {}]   ;;  %s4302_s4 = inlined_call_operand.vmem [shape: bf16[32,96], index: 4, kind: input, shape index: {}]   ;;  %s4303_s5 = inlined_call_operand.vmem [shape: f32[1,96], index: 5, kind: input, shape index: {}]   ;;  %s4304_s6 = inlined_call_operand.vmem [shape: bf16[32,128], index: 6, kind: input, shape index: {}]   ;;  %s4305_s7 = inlined_call_operand.vmem [shape: f32[1,128], index: 7, kind: input, shape index: {}]   ;;  %s4306_s8 = inlined_call_operand.vmem [shape: f32[8,8,128], index: 8, kind: output, shape index: {0}]  }
   0x1   :  { %v36_v0 = vld [vmem:[%s4297_s1] sm:$0xff]  ;;  %v37_v1 = vld [vmem:[%s4297_s1 + $0x8] sm:$0xff]  ;;  %2618 = vmatprep.subr.bf16.mxu1 %v3142_v2  ;;  %v3226_v5 = vld [vmem:[%s4299_s2 + $0xb0] ss:$12 sps:$4 sm:$0xff]   ;;  %277 = vmatprep.mubr.bf16.mxu0 %v3143_v6  ;;  %vm96_vm2 = vcmask 523264   ;;  %vm98_vm3 = vcmask 785408   ;;  %v102_v36 = vlaneseq }
   0x2   :  { %39 = vst.msk [vmem:[%s4298_s9] sm:$0xff] %vm38_vm0, %v36_v0  ;;  %40 = vst.msk [vmem:[%s4298_s9 + $0x8] sm:$0xff] %vm38_vm0, %v37_v1  ;;  %v3216_v3 = vld [vmem:[%s4299_s2 + $0xac] ss:$12 sps:$4 sm:$0xff]   ;;  %v3221_v4 = vld [vmem:[%s4299_s2 + $0xa8] ss:$12 sps:$4 sm:$0xff]   ;;  %2619 = vmatpush3.bf16.msra.mxu1 %v3226_v5  ;;  %2634 = vmatprep.mubr.msk.bf16.mxu1 %vm3144_vm1, %v3142_v2 }
   0x3   :  { %245 = vmatprep.subr.bf16.mxu0 %v3216_v3  ;;  %v3233_v7 = vld [vmem:[%s4299_s2 + $0x94] ss:$12 sps:$4 sm:$0xff]   ;;  %v3240_v8 = vld [vmem:[%s4299_s2 + $0x90] ss:$12 sps:$4 sm:$0xff]   ;;  %2620 = vmatprep.subr.bf16.mxu1 %v3142_v2  ;;  %v3247_v9 = vld [vmem:[%s4299_s2 + $0x98] ss:$12 sps:$4 sm:$0xff]  }
   0x4   :  { %246 = vmatpush1.bf16.msra.mxu0 %v3221_v4  ;;  %v3252_v10 = vld [vmem:[%s4299_s2 + $0x7c] ss:$12 sps:$4 sm:$0xff]   ;;  %v3259_v11 = vld [vmem:[%s4299_s2 + $0x78] ss:$12 sps:$4 sm:$0xff]   ;;  %v3271_v13 = vld [vmem:[%s4299_s2 + $0x80] ss:$12 sps:$4 sm:$0xff]  }
   0x5   :  { %247 = vmatprep.subr.bf16.mxu0 %v3233_v7  ;;  %v3279_v14 = vld [vmem:[%s4299_s2 + $0x64] ss:$12 sps:$4 sm:$0xff]   ;;  %v3290_v16 = vld [vmem:[%s4299_s2 + $0x60] ss:$12 sps:$4 sm:$0xff]   ;;  %v3297_v17 = vld [vmem:[%s4299_s2 + $0x68] ss:$12 sps:$4 sm:$0xff]  }
   0x6   :  { %2621 = vmatpush3.bf16.msra.mxu1 %v3247_v9  ;;  %v3305_v18 = vld [vmem:[%s4299_s2 + $0x4c] ss:$12 sps:$4 sm:$0xff]   ;;  %v3313_v19 = vld [vmem:[%s4299_s2 + $0x48] ss:$12 sps:$4 sm:$0xff]   ;;  %v3318_v20 = vld [vmem:[%s4299_s2 + $0x50] ss:$12 sps:$4 sm:$0xff]  }
   0x7   :  { %2622 = vmatprep.subr.bf16.mxu1 %v3142_v2  ;;  %v3325_v21 = vld [vmem:[%s4299_s2 + $0x34] ss:$12 sps:$4 sm:$0xff]   ;;  %v3332_v22 = vld [vmem:[%s4299_s2 + $0x30] ss:$12 sps:$4 sm:$0xff]   ;;  %v3337_v23 = vld [vmem:[%s4299_s2 + $0x38] ss:$12 sps:$4 sm:$0xff]  }
   0x8   :  { %248 = vmatpush1.bf16.msra.mxu0 %v3240_v8  ;;  %v3344_v24 = vld [vmem:[%s4299_s2 + $0x1c] ss:$12 sps:$4 sm:$0xff]   ;;  %v3351_v25 = vld [vmem:[%s4299_s2 + $0x18] ss:$12 sps:$4 sm:$0xff]   ;;  %v3356_v26 = vld [vmem:[%s4299_s2 + $0x20] ss:$12 sps:$4 sm:$0xff]  }
   0x9   :  { %v3264_v12 = vld [vmem:[%s4298_s9] sm:$0xff]  ;;  %249 = vmatprep.subr.bf16.mxu0 %v3252_v10  ;;  %v3284_v15 = vld [vmem:[%s4298_s9 + $0x8] sm:$0xff]  ;;  %v3392_v37 = vshrl.u32 %v102_v36, 7  ;;  %s3147_s11 = smov 32  }
   0xa   :  { %89 = vrot.lane.b32.xlu0 %v3264_v12, %s3145_s15  ;;  %2623 = vmatpush3.bf16.msra.mxu1 %v3271_v13  ;;  %v3363_v27 = vld [vmem:[%s4299_s2 + $0x4] ss:$12 sps:$4 sm:$0xff]   ;;  %v3370_v28 = vld [vmem:[%s4299_s2] ss:$12 sps:$4 sm:$0xff]   ;;  %v3375_v29 = vld [vmem:[%s4299_s2 + $0x8] ss:$12 sps:$4 sm:$0xff]  }
   0xb   :  { %2624 = vmatprep.subr.bf16.mxu1 %v3142_v2  ;;  %v87_v31 = vld [vmem:[%s4300_s0] sm:$0xff]  ;;  %v104_v38 = vsub.s32 0, %v3392_v37  ;;  %v108_v41 = vsub.s32 1, %v3392_v37  ;;  %v3421_v63 = vld [vmem:[%s4302_s4 + $0x8] sm:$0xff]  }
   0xc   :  { %250 = vmatpush1.bf16.msra.mxu0 %v3259_v11  ;;  %v3398_v39 = vld [vmem:[%s4301_s3] sm:$0x7] }
   0xd   :  { %251 = vmatprep.subr.bf16.mxu0 %v3279_v14  ;;  %v3401_v40 = vrot.slane %v3398_v39, %v104_v38  ;;  %v3408_v45 = vrot.slane %v3398_v39, %v108_v41  ;;  %v3427_v0 = vld [vmem:[%s4302_s4] sm:$0xff]  }
   0xe   :  { %93 = vrot.lane.b32.xlu0 %v3284_v15, %s3146_s23  ;;  %2625 = vmatpush3.bf16.msra.mxu1 %v3297_v17 }
   0xf   :  { %2626 = vmatprep.subr.bf16.mxu1 %v3142_v2 }
  0x10   :  { %252 = vmatpush1.bf16.msra.mxu0 %v3290_v16 }
  0x11   :  { %253 = vmatprep.subr.bf16.mxu0 %v3305_v18 }
  0x12   :  { %2627 = vmatpush3.bf16.msra.mxu1 %v3318_v20 }
  0x13   :  { %2628 = vmatprep.subr.bf16.mxu1 %v3142_v2 }
  0x14   :  { %254 = vmatpush1.bf16.msra.mxu0 %v3313_v19 }
  0x15   :  { %255 = vmatprep.subr.bf16.mxu0 %v3325_v21 }
  0x16   :  { %2629 = vmatpush3.bf16.msra.mxu1 %v3337_v23 }
  0x17   :  { %2630 = vmatprep.subr.bf16.mxu1 %v3142_v2 }
  0x18   :  { %256 = vmatpush1.bf16.msra.mxu0 %v3332_v22 }
  0x19   :  { %257 = vmatprep.subr.bf16.mxu0 %v3344_v24 }
  0x1a   :  { %2631 = vmatpush3.bf16.msra.mxu1 %v3356_v26 }
  0x1b   :  { %2632 = vmatprep.subr.bf16.mxu1 %v3142_v2 }
  0x1c   :  { %258 = vmatpush1.bf16.msra.mxu0 %v3351_v25 }
  0x1d   :  { %259 = vmatprep.subr.bf16.mxu0 %v3363_v27 }
  0x1e   :  { %2633 = vmatpush3.bf16.msra.mxu1 %v3375_v29 }
  0x1f   :  { %2646 = vmatprep.subr.bf16.mxu1 %v3142_v2 }
  0x20   :  { %260 = vmatpush1.bf16.msra.mxu0 %v3370_v28 }
  0x21   :  { %2638 = vmatprep.subr.bf16.mxu0 %v3142_v2 }
  0x7c   :  { %v90_v30 = vpop.permute.xlu0 %89 }
  0x7d   :  { %v97_v32 = vsel %vm96_vm2, %v87_v31, %v90_v30 }
  0x80   :  { %v94_v33 = vpop.permute.xlu0 %93 }
  0x81   :  { %v99_v34 = vsel %vm98_vm3, %v97_v32, %v94_v33 }
  0x82   :  { %v100_v35 = vpack.c.bf16 %v99_v34, %v99_v34 }
  0x84   :  { %278 = vmatmul.mubr.bf16.vlgmr.msra.gmra.mxu0 %v100_v35  ;;  %2635 = vmatmul.mubr.bf16.vlgmr.msra.gmra.mxu1 %v100_v35 }
  0x85   :  { %2642 = vmatprep.mubr.msk.bf16.mxu0 %vm3144_vm1, %v3142_v2  ;;  %2650 = vmatprep.mubr.msk.bf16.mxu1 %vm3144_vm1, %v3142_v2 }
  0x86   :  { %2639 = vmatpush3.bf16.msra.mxu0 %v3421_v63 }
  0x87   :  { %2640 = vmatprep.subr.bf16.mxu0 %v3142_v2 }
  0x8a   :  { %2641 = vmatpush3.bf16.msra.mxu0 %v3427_v0 }
  0x8b   :  { %552 = vmatprep.subr.bf16.mxu0 %v3216_v3 }
 0x144   :  { %v279_v42 = vpop.f32.mrf.mxu0  ;;  %v3404_v43 = vpop.f32.mrf.mxu1 }
 0x145   :  { %v280_v44 = vadd.f32 %v279_v42, %v3401_v40 }
 0x146   :  { %v281_v46 = vpop.f32.mrf.mxu0  ;;  %v2636_v47 = vpop.f32.mrf.mxu1 }
 0x147   :  { %327 = vrot.lane.b32.xlu1 %v280_v44, %s3147_s11  ;;  %v282_v50 = vadd.f32 %v281_v46, %v3408_v45 }
 0x148   :  { %v283_v48 = vpop.f32.mrf.mxu0  ;;  %v323_v49 = vpop.f32.mrf.mxu1 }
 0x14a   :  { %v284_v51 = vpop.f32.mrf.mxu0  ;;  %v2637_v52 = vpop.f32.mrf.mxu1 }
 0x14b   :  { %348 = vrot.lane.b32.xlu1 %v282_v50, %s3146_s23 }
 0x14f   :  { %338 = vrot.lane.b32.xlu1 %v282_v50, %s3147_s11 }
 0x153   :  { %364 = vrot.lane.b32.xlu1 %v3264_v12, %s3147_s11 }
 0x157   :  { %435 = vrot.lane.b32.xlu1 %v282_v50, %s3145_s15 }
 0x1b9   :  { %v328_v53 = vpop.permute.xlu1 %327 }
 0x1ba   :  { %v330_v54 = vadd.f32 %v328_v53, %v280_v44 }
 0x1bc   :  { %v2437_v55 = vmul.f32 -1.442695, %v330_v54 }
 0x1bd   :  { %v349_v59 = vpop.permute.xlu1 %348 }
 0x1be   :  { %2948 = vpow2.f32 %v2437_v55 }
 0x1c1   :  { %v339_v12 = vpop.permute.xlu1 %338 }
 0x1c2   :  { %v341_v30 = vadd.f32 %v339_v12, %v280_v44 }
 0x1c4   :  { %v2438_v31 = vmul.f32 -1.442695, %v341_v30 }
 0x1c5   :  { %v365_v36 = vpop.permute.xlu1 %364 }
 0x1c9   :  { %v436_v51 = vpop.permute.xlu1 %435 }
 0x1cb   :  { %v2949_v56 = vpop.eup %2948 }
 0x1cc   :  { %v334_v57 = vadd.f32 1.0, %v2949_v56 }
 0x1ce   :  { %2950 = vrcp.f32 %v334_v57 }
 0x1db   :  { %v2951_v58 = vpop.eup %2950 }
 0x1dc   :  { %v351_v60 = vmul.f32 %v2951_v58, %v349_v59  ;;  %v112_v59 = vsub.s32 2, %v3392_v37 }
 0x1de   :  { %353 = vrot.lane.b32.xlu0 %v351_v60, %s3145_s15  ;;  %v3464_v60 = vrot.slane %v3398_v39, %v112_v59 }
 0x250   :  { %v354_v61 = vpop.permute.xlu0 %353 }
 0x251   :  { %v356_v62 = vadd.f32 %v354_v61, %v280_v44  ;;  %v3459_v44 = vld [vmem:[%s4303_s5] ss:$0 sm:$0xff]  ;;  %v321_v61 = vadd.f32 %v3404_v43, %v3464_v60 }
 0x253   :  { %2952 = vtanh.f32 %v356_v62 }
 0x254   :  { %2954 = vpow2.f32 %v2438_v31 }
 0x260   :  { %v2953_v1 = vpop.eup %2952 }
 0x261   :  { %360 = vrot.lane.b32.xlu0 %v2953_v1, %s3146_s23  ;;  %v2955_v32 = vpop.eup %2954 }
 0x262   :  { %v345_v33 = vadd.f32 1.0, %v2955_v32 }
 0x264   :  { %2956 = vrcp.f32 %v345_v33 }
 0x271   :  { %v2957_v34 = vpop.eup %2956 }
 0x272   :  { %v358_v35 = vsub.f32 1.0, %v2957_v34  ;;  %v367_v41 = vmul.f32 %v2957_v34, %v365_v36 }
 0x2d3   :  { %v361_v38 = vpop.permute.xlu0 %360 }
 0x2d4   :  { %v363_v42 = vmul.f32 %v361_v38, %v358_v35 }
 0x2d6   :  { %v3433_v46 = vadd.f32 %v367_v41, %v363_v42 }
 0x2d8   :  { %v369_v47 = vpack.c.bf16 %v3433_v46, %v3433_v46 }
 0x2da   :  { %377 = vrot.lane.b32.xlu0 %v369_v47, %s3146_s23 }
 0x34c   :  { %v378_v48 = vpop.permute.xlu0 %377 }
 0x34d   :  { %2643 = vmatmul.mubr.msk.bf16.vlgmr.msra.gmra.mxu0 %vm38_vm0, %v378_v48 }
 0x34e   :  { %553 = vmatpush1.bf16.msra.mxu0 %v3221_v4  ;;  %584 = vmatprep.mubr.bf16.mxu0 %v3143_v6 }
 0x34f   :  { %554 = vmatprep.subr.bf16.mxu0 %v3233_v7 }
 0x352   :  { %555 = vmatpush1.bf16.msra.mxu0 %v3240_v8 }
 0x353   :  { %556 = vmatprep.subr.bf16.mxu0 %v3252_v10 }
 0x356   :  { %557 = vmatpush1.bf16.msra.mxu0 %v3259_v11 }
 0x357   :  { %558 = vmatprep.subr.bf16.mxu0 %v3279_v14 }
 0x35a   :  { %559 = vmatpush1.bf16.msra.mxu0 %v3290_v16 }
 0x35b   :  { %560 = vmatprep.subr.bf16.mxu0 %v3305_v18 }
 0x35e   :  { %561 = vmatpush1.bf16.msra.mxu0 %v3313_v19 }
 0x35f   :  { %562 = vmatprep.subr.bf16.mxu0 %v3325_v21 }
 0x362   :  { %563 = vmatpush1.bf16.msra.mxu0 %v3332_v22 }
 0x363   :  { %564 = vmatprep.subr.bf16.mxu0 %v3344_v24 }
 0x366   :  { %565 = vmatpush1.bf16.msra.mxu0 %v3351_v25 }
 0x367   :  { %566 = vmatprep.subr.bf16.mxu0 %v3363_v27 }
 0x36a   :  { %567 = vmatpush1.bf16.msra.mxu0 %v3370_v28 }
 0x36b   :  { %2674 = vmatprep.subr.bf16.mxu0 %v3142_v2 }
 0x40d   :  { %v429_v49 = vpop.f32.mrf.mxu0 }
 0x40e   :  { %v430_v50 = vadd.f32 %v3459_v44, %v429_v49 }
 0x40f   :  { %v2644_v52 = vpop.f32.mrf.mxu0 }
 0x410   :  { %v438_v53 = vadd.f32 %v436_v51, %v430_v50 }
 0x411   :  { %v432_v54 = vpop.f32.mrf.mxu0 }
 0x412   :  { %v2443_v55 = vmul.f32 -1.442695, %v438_v53 }
 0x413   :  { %v2645_v56 = vpop.f32.mrf.mxu0 }
 0x414   :  { %2958 = vpow2.f32 %v2443_v55 }
 0x421   :  { %v2959_v57 = vpop.eup %2958 }
 0x422   :  { %v442_v58 = vadd.f32 1.0, %v2959_v57 }
 0x424   :  { %2960 = vrcp.f32 %v442_v58 }
 0x431   :  { %v2961_v62 = vpop.eup %2960 }
 0x432   :  { %v445_v1 = vmul.f32 %v2961_v62, %v321_v61  ;;  %v452_v39 = vsub.f32 1.0, %v2961_v62 }
 0x434   :  { %447 = vrot.lane.b32.xlu0 %v445_v1, %s3145_s15 }
 0x438   :  { %458 = vrot.lane.b32.xlu0 %v3284_v15, %s3147_s11  ;;  %v2448_v15 = vld [vmem:[%s4300_s0 + $0x8] sm:$0xff] }
 0x4a6   :  { %v448_v12 = vpop.permute.xlu0 %447 }
 0x4a7   :  { %v450_v30 = vadd.f32 %v448_v12, %v430_v50 }
 0x4a9   :  { %2962 = vtanh.f32 %v450_v30  ;;  %v3508_v30 = vld [vmem:[%s4304_s6] sm:$0xff]  }
 0x4aa   :  { %v459_v37 = vpop.permute.xlu0 %458 }
 0x4ab   :  { %v461_v43 = vmul.f32 %v2961_v62, %v459_v37  ;;  %v3501_v62 = vld [vmem:[%s4304_s6 + $0x8] sm:$0xff]  }
 0x4ac   :  { %2647 = vmatpush3.bf16.msra.mxu1 %v3501_v62 }
 0x4ad   :  { %2648 = vmatprep.subr.bf16.mxu1 %v3142_v2 }
 0x4b0   :  { %2649 = vmatpush3.bf16.msra.mxu1 %v3508_v30 }
 0x4b1   :  { %2654 = vmatprep.subr.bf16.mxu1 %v3142_v2 }
 0x4b6   :  { %v2963_v31 = vpop.eup %2962 }
 0x4b7   :  { %454 = vrot.lane.b32.xlu1 %v2963_v31, %s3146_s23 }
 0x4bb   :  { %542 = vrot.lane.b32.xlu1 %v3433_v46, %s3147_s11 }
 0x529   :  { %v455_v32 = vpop.permute.xlu1 %454 }
 0x52a   :  { %v457_v33 = vmul.f32 %v455_v32, %v452_v39 }
 0x52c   :  { %v3474_v34 = vadd.f32 %v461_v43, %v457_v33 }
 0x52d   :  { %v543_v35 = vpop.permute.xlu1 %542 }
 0x52e   :  { %546 = vrot.lane.b32.xlu0 %v3474_v34, %s3145_s15  ;;  %v549_v36 = vsel %vm96_vm2, %v2448_v15, %v543_v35  ;;  %v463_v37 = vpack.c.bf16 %v3474_v34, %v3474_v34 }
 0x5a0   :  { %v547_v38 = vpop.permute.xlu0 %546 }
 0x5a1   :  { %v550_v41 = vsel %vm98_vm3, %v549_v36, %v547_v38 }
 0x5a2   :  { %v3483_v42 = vpack.c.bf16 %v550_v41, %v550_v41 }
 0x5a4   :  { %585 = vmatmul.mubr.bf16.vlgmr.msra.gmra.mxu0 %v3483_v42 }
 0x5a5   :  { %2675 = vmatpush3.bf16.msra.mxu0 %v3421_v63  ;;  %2678 = vmatprep.mubr.msk.bf16.mxu0 %vm3144_vm1, %v3142_v2 }
 0x5a6   :  { %2676 = vmatprep.subr.bf16.mxu0 %v3142_v2 }
 0x5a9   :  { %2677 = vmatpush3.bf16.msra.mxu0 %v3427_v0 }
 0x5aa   :  { %817 = vmatprep.subr.bf16.mxu0 %v3216_v3 }
 0x664   :  { %v586_v47 = vpop.f32.mrf.mxu0 }
 0x665   :  { %v587_v48 = vadd.f32 %v586_v47, %v3401_v40 }
 0x666   :  { %v588_v49 = vpop.f32.mrf.mxu0 }
 0x667   :  { %v589_v50 = vadd.f32 %v588_v49, %v3408_v45  ;;  %634 = vrot.lane.b32.xlu1 %v587_v48, %s3147_s11 }
 0x668   :  { %v590_v51 = vpop.f32.mrf.mxu0 }
 0x669   :  { %655 = vrot.lane.b32.xlu0 %v589_v50, %s3146_s23 }
 0x66a   :  { %v591_v52 = vpop.f32.mrf.mxu0 }
 0x66d   :  { %645 = vrot.lane.b32.xlu0 %v589_v50, %s3147_s11 }
 0x6d9   :  { %v635_v53 = vpop.permute.xlu1 %634 }
 0x6da   :  { %v637_v54 = vadd.f32 %v635_v53, %v587_v48 }
 0x6db   :  { %v656_v59 = vpop.permute.xlu0 %655 }
 0x6dc   :  { %v2449_v55 = vmul.f32 -1.442695, %v637_v54 }
 0x6de   :  { %2964 = vpow2.f32 %v2449_v55 }
 0x6df   :  { %v646_v39 = vpop.permute.xlu0 %645 }
 0x6e0   :  { %v648_v32 = vadd.f32 %v646_v39, %v587_v48 }
 0x6e2   :  { %v2450_v43 = vmul.f32 -1.442695, %v648_v32 }
 0x6eb   :  { %v2965_v56 = vpop.eup %2964 }
 0x6ec   :  { %v641_v57 = vadd.f32 1.0, %v2965_v56 }
 0x6ee   :  { %2966 = vrcp.f32 %v641_v57 }
 0x6fb   :  { %v2967_v58 = vpop.eup %2966 }
 0x6fc   :  { %v658_v61 = vmul.f32 %v2967_v58, %v656_v59 }
 0x6fe   :  { %660 = vrot.lane.b32.xlu1 %v658_v61, %s3145_s15 }
 0x770   :  { %v661_v1 = vpop.permute.xlu1 %660 }
 0x771   :  { %v663_v12 = vadd.f32 %v661_v1, %v587_v48 }
 0x773   :  { %2968 = vtanh.f32 %v663_v12 }
 0x774   :  { %2970 = vpow2.f32 %v2450_v43 }
 0x780   :  { %v2969_v31 = vpop.eup %2968 }
 0x781   :  { %667 = vrot.lane.b32.xlu1 %v2969_v31, %s3146_s23  ;;  %v2971_v33 = vpop.eup %2970 }
 0x782   :  { %v652_v15 = vadd.f32 1.0, %v2971_v33 }
 0x784   :  { %2972 = vrcp.f32 %v652_v15 }
 0x785   :  { %471 = vrot.lane.b32.xlu1 %v463_v37, %s3146_s23 }
 0x791   :  { %v2973_v35 = vpop.eup %2972 }
 0x792   :  { %v665_v36 = vsub.f32 1.0, %v2973_v35  ;;  %v671_v47 = vmul.f32 %v2973_v35, %v3433_v46 }
 0x7f3   :  { %v668_v38 = vpop.permute.xlu1 %667 }
 0x7f4   :  { %v670_v41 = vmul.f32 %v668_v38, %v665_v36 }
 0x7f6   :  { %v3517_v49 = vadd.f32 %v671_v47, %v670_v41 }
 0x7f7   :  { %v472_v51 = vpop.permute.xlu1 %471 }
 0x7f8   :  { %2651 = vmatmul.mubr.msk.bf16.vlgmr.msra.gmra.mxu1 %vm38_vm0, %v472_v51  ;;  %v673_v52 = vpack.c.bf16 %v3517_v49, %v3517_v49 }
 0x7f9   :  { %2655 = vmatpush3.bf16.msra.mxu1 %v3226_v5  ;;  %2670 = vmatprep.mubr.msk.bf16.mxu1 %vm3144_vm1, %v3142_v2 }
 0x7fa   :  { %675 = vrot.lane.b32.xlu0 %v673_v52, %s3146_s23  ;;  %2656 = vmatprep.subr.bf16.mxu1 %v3142_v2 }
 0x7fd   :  { %2657 = vmatpush3.bf16.msra.mxu1 %v3247_v9 }
 0x7fe   :  { %720 = vrot.lane.b32.xlu0 %v589_v50, %s3145_s15  ;;  %2658 = vmatprep.subr.bf16.mxu1 %v3142_v2 }
 0x801   :  { %2659 = vmatpush3.bf16.msra.mxu1 %v3271_v13 }
 0x802   :  { %2660 = vmatprep.subr.bf16.mxu1 %v3142_v2 }
 0x805   :  { %2661 = vmatpush3.bf16.msra.mxu1 %v3297_v17 }
 0x806   :  { %2662 = vmatprep.subr.bf16.mxu1 %v3142_v2 }
 0x809   :  { %2663 = vmatpush3.bf16.msra.mxu1 %v3318_v20 }
 0x80a   :  { %2664 = vmatprep.subr.bf16.mxu1 %v3142_v2 }
 0x80d   :  { %2665 = vmatpush3.bf16.msra.mxu1 %v3337_v23 }
 0x80e   :  { %2666 = vmatprep.subr.bf16.mxu1 %v3142_v2 }
 0x811   :  { %2667 = vmatpush3.bf16.msra.mxu1 %v3356_v26 }
 0x812   :  { %2668 = vmatprep.subr.bf16.mxu1 %v3142_v2 }
 0x815   :  { %2669 = vmatpush3.bf16.msra.mxu1 %v3375_v29 }
 0x816   :  { %2682 = vmatprep.subr.bf16.mxu1 %v3142_v2 }
 0x818   :  { %2671 = vmatmul.mubr.bf16.vlgmr.msra.gmra.mxu1 %v3483_v42 }
 0x819   :  { %2683 = vmatpush3.bf16.msra.mxu1 %v3501_v62  ;;  %2686 = vmatprep.mubr.msk.bf16.mxu1 %vm3144_vm1, %v3142_v2 }
 0x81a   :  { %2684 = vmatprep.subr.bf16.mxu1 %v3142_v2 }
 0x81d   :  { %2685 = vmatpush3.bf16.msra.mxu1 %v3508_v30 }
 0x81e   :  { %2690 = vmatprep.subr.bf16.mxu1 %v3142_v2 }
 0x86c   :  { %v676_v46 = vpop.permute.xlu0 %675 }
 0x86d   :  { %2679 = vmatmul.mubr.msk.bf16.vlgmr.msra.gmra.mxu0 %vm38_vm0, %v676_v46 }
 0x86e   :  { %818 = vmatpush1.bf16.msra.mxu0 %v3221_v4  ;;  %849 = vmatprep.mubr.bf16.mxu0 %v3143_v6 }
 0x86f   :  { %819 = vmatprep.subr.bf16.mxu0 %v3233_v7 }
 0x870   :  { %v721_v61 = vpop.permute.xlu0 %720 }
 0x872   :  { %820 = vmatpush1.bf16.msra.mxu0 %v3240_v8 }
 0x873   :  { %821 = vmatprep.subr.bf16.mxu0 %v3252_v10 }
 0x876   :  { %822 = vmatpush1.bf16.msra.mxu0 %v3259_v11 }
 0x877   :  { %823 = vmatprep.subr.bf16.mxu0 %v3279_v14 }
 0x87a   :  { %824 = vmatpush1.bf16.msra.mxu0 %v3290_v16 }
 0x87b   :  { %825 = vmatprep.subr.bf16.mxu0 %v3305_v18 }
 0x87e   :  { %826 = vmatpush1.bf16.msra.mxu0 %v3313_v19 }
 0x87f   :  { %827 = vmatprep.subr.bf16.mxu0 %v3325_v21 }
 0x882   :  { %828 = vmatpush1.bf16.msra.mxu0 %v3332_v22 }
 0x883   :  { %829 = vmatprep.subr.bf16.mxu0 %v3344_v24 }
 0x886   :  { %830 = vmatpush1.bf16.msra.mxu0 %v3351_v25 }
 0x887   :  { %831 = vmatprep.subr.bf16.mxu0 %v3363_v27 }
 0x88a   :  { %832 = vmatpush1.bf16.msra.mxu0 %v3370_v28 }
 0x88b   :  { %2710 = vmatprep.subr.bf16.mxu0 %v3142_v2 }
 0x8b8   :  { %v3567_v42 = vpop.f32.mrf.mxu1 }
 0x8ba   :  { %v2652_v48 = vpop.f32.mrf.mxu1 }
 0x8bc   :  { %v525_v50 = vpop.f32.mrf.mxu1 }
 0x8bd   :  { %v2455_v50 = vld [vmem:[%s4300_s0 + $0x10] sm:$0xff] }
 0x8be   :  { %v2653_v53 = vpop.f32.mrf.mxu1 }
 0x8d8   :  { %v627_v54 = vpop.f32.mrf.mxu1 }
 0x8d9   :  { %v628_v33 = vadd.f32 %v627_v54, %v3464_v60 }
 0x8da   :  { %v2672_v55 = vpop.f32.mrf.mxu1 }
 0x8dc   :  { %v630_v56 = vpop.f32.mrf.mxu1 }
 0x8de   :  { %v2673_v57 = vpop.f32.mrf.mxu1 }
 0x92d   :  { %v714_v58 = vpop.f32.mrf.mxu0 }
 0x92e   :  { %v715_v59 = vadd.f32 %v3459_v44, %v714_v58 }
 0x92f   :  { %v2680_v1 = vpop.f32.mrf.mxu0 }
 0x930   :  { %v723_v12 = vadd.f32 %v721_v61, %v715_v59 }
 0x931   :  { %v717_v31 = vpop.f32.mrf.mxu0 }
 0x932   :  { %v2452_v37 = vmul.f32 -1.442695, %v723_v12 }
 0x933   :  { %v2681_v39 = vpop.f32.mrf.mxu0 }
 0x934   :  { %2974 = vpow2.f32 %v2452_v37 }
 0x941   :  { %v2975_v32 = vpop.eup %2974 }
 0x942   :  { %v727_v43 = vadd.f32 1.0, %v2975_v32 }
 0x944   :  { %2976 = vrcp.f32 %v727_v43 }
 0x951   :  { %v2977_v15 = vpop.eup %2976 }
 0x952   :  { %v730_v35 = vmul.f32 %v2977_v15, %v628_v33  ;;  %v737_v47 = vsub.f32 1.0, %v2977_v15  ;;  %v743_v52 = vmul.f32 %v2977_v15, %v3474_v34 }
 0x954   :  { %732 = vrot.lane.b32.xlu1 %v730_v35, %s3145_s15 }
 0x958   :  { %807 = vrot.lane.b32.xlu1 %v3517_v49, %s3147_s11 }
 0x9c6   :  { %v733_v36 = vpop.permute.xlu1 %732 }
 0x9c7   :  { %v735_v38 = vadd.f32 %v733_v36, %v715_v59 }
 0x9c9   :  { %2978 = vtanh.f32 %v735_v38 }
 0x9ca   :  { %v808_v53 = vpop.permute.xlu1 %807 }
 0x9cb   :  { %v814_v54 = vsel %vm96_vm2, %v2455_v50, %v808_v53 }
 0x9d6   :  { %v2979_v41 = vpop.eup %2978 }
 0x9d7   :  { %739 = vrot.lane.b32.xlu0 %v2979_v41, %s3146_s23 }
 0xa49   :  { %v740_v51 = vpop.permute.xlu0 %739 }
 0xa4a   :  { %v742_v46 = vmul.f32 %v740_v51, %v737_v47 }
 0xa4c   :  { %v3576_v48 = vadd.f32 %v743_v52, %v742_v46 }
 0xa4e   :  { %811 = vrot.lane.b32.xlu0 %v3576_v48, %s3145_s15  ;;  %v745_v41 = vpack.c.bf16 %v3576_v48, %v3576_v48 }
 0xac0   :  { %v812_v55 = vpop.permute.xlu0 %811 }
 0xac1   :  { %v815_v56 = vsel %vm98_vm3, %v814_v54, %v812_v55 }
 0xac2   :  { %v3585_v57 = vpack.c.bf16 %v815_v56, %v815_v56 }
 0xac4   :  { %850 = vmatmul.mubr.bf16.vlgmr.msra.gmra.mxu0 %v3585_v57 }
 0xac5   :  { %2711 = vmatpush3.bf16.msra.mxu0 %v3421_v63  ;;  %2714 = vmatprep.mubr.msk.bf16.mxu0 %vm3144_vm1, %v3142_v2 }
 0xac6   :  { %2712 = vmatprep.subr.bf16.mxu0 %v3142_v2 }
 0xac9   :  { %2713 = vmatpush3.bf16.msra.mxu0 %v3427_v0 }
 0xaca   :  { %1082 = vmatprep.subr.bf16.mxu0 %v3216_v3 }
 0xb84   :  { %v851_v34 = vpop.f32.mrf.mxu0 }
 0xb85   :  { %v852_v58 = vadd.f32 %v851_v34, %v3401_v40 }
 0xb86   :  { %v853_v59 = vpop.f32.mrf.mxu0 }
 0xb87   :  { %v854_v61 = vadd.f32 %v853_v59, %v3408_v45  ;;  %899 = vrot.lane.b32.xlu1 %v852_v58, %s3147_s11 }
 0xb88   :  { %v855_v1 = vpop.f32.mrf.mxu0 }
 0xb89   :  { %920 = vrot.lane.b32.xlu0 %v854_v61, %s3146_s23 }
 0xb8a   :  { %v856_v12 = vpop.f32.mrf.mxu0 }
 0xb8d   :  { %910 = vrot.lane.b32.xlu0 %v854_v61, %s3147_s11 }
 0xbf9   :  { %v900_v31 = vpop.permute.xlu1 %899 }
 0xbfa   :  { %v902_v37 = vadd.f32 %v900_v31, %v852_v58 }
 0xbfb   :  { %v921_v33 = vpop.permute.xlu0 %920 }
 0xbfc   :  { %v2456_v39 = vmul.f32 -1.442695, %v902_v37 }
 0xbfe   :  { %2980 = vpow2.f32 %v2456_v39 }
 0xbff   :  { %v911_v47 = vpop.permute.xlu0 %910 }
 0xc00   :  { %v913_v51 = vadd.f32 %v911_v47, %v852_v58 }
 0xc02   :  { %v2457_v52 = vmul.f32 -1.442695, %v913_v51 }
 0xc0b   :  { %v2981_v32 = vpop.eup %2980 }
 0xc0c   :  { %v906_v3 = vadd.f32 1.0, %v2981_v32 }
 0xc0e   :  { %2982 = vrcp.f32 %v906_v3 }
 0xc1b   :  { %v2983_v43 = vpop.eup %2982 }
 0xc1c   :  { %v923_v15 = vmul.f32 %v2983_v43, %v921_v33  ;;  %v2462_v33 = vld [vmem:[%s4300_s0 + $0x18] sm:$0xff] }
 0xc1e   :  { %925 = vrot.lane.b32.xlu1 %v923_v15, %s3145_s15 }
 0xc90   :  { %v926_v35 = vpop.permute.xlu1 %925 }
 0xc91   :  { %v928_v36 = vadd.f32 %v926_v35, %v852_v58 }
 0xc93   :  { %2984 = vtanh.f32 %v928_v36 }
 0xc94   :  { %2986 = vpow2.f32 %v2457_v52 }
 0xca0   :  { %v2985_v38 = vpop.eup %2984 }
 0xca1   :  { %932 = vrot.lane.b32.xlu1 %v2985_v38, %s3146_s23  ;;  %v2987_v46 = vpop.eup %2986 }
 0xca2   :  { %v917_v50 = vadd.f32 1.0, %v2987_v46 }
 0xca4   :  { %2988 = vrcp.f32 %v917_v50 }
 0xca5   :  { %747 = vrot.lane.b32.xlu1 %v745_v41, %s3146_s23 }
 0xcb1   :  { %v2989_v53 = vpop.eup %2988 }
 0xcb2   :  { %v930_v54 = vsub.f32 1.0, %v2989_v53  ;;  %v936_v34 = vmul.f32 %v2989_v53, %v3517_v49 }
 0xd13   :  { %v933_v55 = vpop.permute.xlu1 %932 }
 0xd14   :  { %v935_v56 = vmul.f32 %v933_v55, %v930_v54 }
 0xd16   :  { %v3605_v59 = vadd.f32 %v936_v34, %v935_v56 }
 0xd17   :  { %v748_v1 = vpop.permute.xlu1 %747 }
 0xd18   :  { %2687 = vmatmul.mubr.msk.bf16.vlgmr.msra.gmra.mxu1 %vm38_vm0, %v748_v1  ;;  %v938_v12 = vpack.c.bf16 %v3605_v59, %v3605_v59 }
 0xd19   :  { %2691 = vmatpush3.bf16.msra.mxu1 %v3226_v5  ;;  %2706 = vmatprep.mubr.msk.bf16.mxu1 %vm3144_vm1, %v3142_v2 }
 0xd1a   :  { %940 = vrot.lane.b32.xlu0 %v938_v12, %s3146_s23  ;;  %2692 = vmatprep.subr.bf16.mxu1 %v3142_v2 }
 0xd1d   :  { %2693 = vmatpush3.bf16.msra.mxu1 %v3247_v9 }
 0xd1e   :  { %985 = vrot.lane.b32.xlu0 %v854_v61, %s3145_s15  ;;  %2694 = vmatprep.subr.bf16.mxu1 %v3142_v2 }
 0xd21   :  { %2695 = vmatpush3.bf16.msra.mxu1 %v3271_v13 }
 0xd22   :  { %2696 = vmatprep.subr.bf16.mxu1 %v3142_v2 }
 0xd25   :  { %2697 = vmatpush3.bf16.msra.mxu1 %v3297_v17 }
 0xd26   :  { %2698 = vmatprep.subr.bf16.mxu1 %v3142_v2 }
 0xd29   :  { %2699 = vmatpush3.bf16.msra.mxu1 %v3318_v20 }
 0xd2a   :  { %2700 = vmatprep.subr.bf16.mxu1 %v3142_v2 }
 0xd2d   :  { %2701 = vmatpush3.bf16.msra.mxu1 %v3337_v23 }
 0xd2e   :  { %2702 = vmatprep.subr.bf16.mxu1 %v3142_v2 }
 0xd31   :  { %2703 = vmatpush3.bf16.msra.mxu1 %v3356_v26 }
 0xd32   :  { %2704 = vmatprep.subr.bf16.mxu1 %v3142_v2 }
 0xd35   :  { %2705 = vmatpush3.bf16.msra.mxu1 %v3375_v29 }
 0xd36   :  { %2718 = vmatprep.subr.bf16.mxu1 %v3142_v2 }
 0xd38   :  { %2707 = vmatmul.mubr.bf16.vlgmr.msra.gmra.mxu1 %v3585_v57 }
 0xd39   :  { %2719 = vmatpush3.bf16.msra.mxu1 %v3501_v62  ;;  %2722 = vmatprep.mubr.msk.bf16.mxu1 %vm3144_vm1, %v3142_v2 }
 0xd3a   :  { %2720 = vmatprep.subr.bf16.mxu1 %v3142_v2 }
 0xd3d   :  { %2721 = vmatpush3.bf16.msra.mxu1 %v3508_v30 }
 0xd3e   :  { %2726 = vmatprep.subr.bf16.mxu1 %v3142_v2 }
 0xd8c   :  { %v941_v5 = vpop.permute.xlu0 %940 }
 0xd8d   :  { %2715 = vmatmul.mubr.msk.bf16.vlgmr.msra.gmra.mxu0 %vm38_vm0, %v941_v5 }
 0xd8e   :  { %1083 = vmatpush1.bf16.msra.mxu0 %v3221_v4  ;;  %1114 = vmatprep.mubr.bf16.mxu0 %v3143_v6 }
 0xd8f   :  { %1084 = vmatprep.subr.bf16.mxu0 %v3233_v7 }
 0xd92   :  { %1085 = vmatpush1.bf16.msra.mxu0 %v3240_v8 }
 0xd93   :  { %1086 = vmatprep.subr.bf16.mxu0 %v3252_v10 }
 0xd96   :  { %1087 = vmatpush1.bf16.msra.mxu0 %v3259_v11 }
 0xd97   :  { %1088 = vmatprep.subr.bf16.mxu0 %v3279_v14 }
 0xd9a   :  { %1089 = vmatpush1.bf16.msra.mxu0 %v3290_v16 }
 0xd9b   :  { %1090 = vmatprep.subr.bf16.mxu0 %v3305_v18  ;;  %v986_v18 = vpop.permute.xlu0 %985 }
 0xd9e   :  { %1091 = vmatpush1.bf16.msra.mxu0 %v3313_v19 }
 0xd9f   :  { %1092 = vmatprep.subr.bf16.mxu0 %v3325_v21 }
 0xda2   :  { %1093 = vmatpush1.bf16.msra.mxu0 %v3332_v22 }
 0xda3   :  { %1094 = vmatprep.subr.bf16.mxu0 %v3344_v24 }
 0xda6   :  { %1095 = vmatpush1.bf16.msra.mxu0 %v3351_v25 }
 0xda7   :  { %1096 = vmatprep.subr.bf16.mxu0 %v3363_v27 }
 0xdaa   :  { %1097 = vmatpush1.bf16.msra.mxu0 %v3370_v28 }
 0xdab   :  { %2746 = vmatprep.subr.bf16.mxu0 %v3142_v2 }
 0xdd8   :  { %v3655_v4 = vpop.f32.mrf.mxu1 }
 0xdda   :  { %v2688_v7 = vpop.f32.mrf.mxu1 }
 0xddc   :  { %v789_v8 = vpop.f32.mrf.mxu1 }
 0xdde   :  { %v2689_v9 = vpop.f32.mrf.mxu1 }
 0xdf8   :  { %v892_v10 = vpop.f32.mrf.mxu1 }
 0xdf9   :  { %v893_v28 = vadd.f32 %v892_v10, %v3464_v60 }
 0xdfa   :  { %v2708_v11 = vpop.f32.mrf.mxu1 }
 0xdfc   :  { %v895_v13 = vpop.f32.mrf.mxu1 }
 0xdfe   :  { %v2709_v14 = vpop.f32.mrf.mxu1 }
 0xe4d   :  { %v979_v16 = vpop.f32.mrf.mxu0 }
 0xe4e   :  { %v980_v17 = vadd.f32 %v3459_v44, %v979_v16 }
 0xe4f   :  { %v2716_v19 = vpop.f32.mrf.mxu0 }
 0xe50   :  { %v988_v20 = vadd.f32 %v986_v18, %v980_v17 }
 0xe51   :  { %v982_v21 = vpop.f32.mrf.mxu0 }
 0xe52   :  { %v2459_v22 = vmul.f32 -1.442695, %v988_v20 }
 0xe53   :  { %v2717_v24 = vpop.f32.mrf.mxu0 }
 0xe54   :  { %2990 = vpow2.f32 %v2459_v22 }
 0xe61   :  { %v2991_v25 = vpop.eup %2990 }
 0xe62   :  { %v992_v27 = vadd.f32 1.0, %v2991_v25 }
 0xe64   :  { %2992 = vrcp.f32 %v992_v27 }
 0xe71   :  { %v2993_v49 = vpop.eup %2992 }
 0xe72   :  { %v995_v57 = vmul.f32 %v2993_v49, %v893_v28  ;;  %v1002_v37 = vsub.f32 1.0, %v2993_v49  ;;  %v1008_v32 = vmul.f32 %v2993_v49, %v3576_v48  ;;  %v3684_v48 = vld [vmem:[%s4299_s2 + $0xac] ss:$12 sps:$4 sm:$0xff]   ;;  %v3706_v49 = vld [vmem:[%s4299_s2 + $0xb0] ss:$12 sps:$4 sm:$0xff]  }
 0xe74   :  { %997 = vrot.lane.b32.xlu1 %v995_v57, %s3145_s15  ;;  %v3724_v57 = vld [vmem:[%s4299_s2 + $0x80] ss:$12 sps:$4 sm:$0xff]  }
 0xe78   :  { %1072 = vrot.lane.b32.xlu1 %v3605_v59, %s3147_s11 }
 0xee6   :  { %v998_v58 = vpop.permute.xlu1 %997 }
 0xee7   :  { %v1000_v61 = vadd.f32 %v998_v58, %v980_v17  ;;  %v3731_v58 = vld [vmem:[%s4299_s2 + $0x68] ss:$12 sps:$4 sm:$0xff]  }
 0xee9   :  { %2994 = vtanh.f32 %v1000_v61  ;;  %v3738_v61 = vld [vmem:[%s4299_s2 + $0x50] ss:$12 sps:$4 sm:$0xff]  }
 0xeea   :  { %v1073_v15 = vpop.permute.xlu1 %1072 }
 0xeeb   :  { %v1079_v35 = vsel %vm96_vm2, %v2462_v33, %v1073_v15  ;;  %v3802_v33 = vld [vmem:[%s4299_s2 + $0x4c] ss:$12 sps:$4 sm:$0xff]   ;;  %v3808_v15 = vld [vmem:[%s4299_s2 + $0x48] ss:$12 sps:$4 sm:$0xff]  }
 0xef6   :  { %v2995_v31 = vpop.eup %2994 }
 0xef7   :  { %1004 = vrot.lane.b32.xlu0 %v2995_v31, %s3146_s23  ;;  %v3772_v31 = vld [vmem:[%s4299_s2 + $0x90] ss:$12 sps:$4 sm:$0xff]  }
 0xf69   :  { %v1005_v39 = vpop.permute.xlu0 %1004 }
 0xf6a   :  { %v1007_v3 = vmul.f32 %v1005_v39, %v1002_v37  ;;  %v3778_v37 = vld [vmem:[%s4299_s2 + $0x7c] ss:$12 sps:$4 sm:$0xff]   ;;  %v3784_v39 = vld [vmem:[%s4299_s2 + $0x78] ss:$12 sps:$4 sm:$0xff]  }
 0xf6c   :  { %v3664_v43 = vadd.f32 %v1008_v32, %v1007_v3  ;;  %v3790_v32 = vld [vmem:[%s4299_s2 + $0x64] ss:$12 sps:$4 sm:$0xff]   ;;  %v3796_v3 = vld [vmem:[%s4299_s2 + $0x60] ss:$12 sps:$4 sm:$0xff]  }
 0xf6e   :  { %1076 = vrot.lane.b32.xlu0 %v3664_v43, %s3145_s15  ;;  %v1010_v11 = vpack.c.bf16 %v3664_v43, %v3664_v43 }
 0xfe0   :  { %v1077_v36 = vpop.permute.xlu0 %1076 }
 0xfe1   :  { %v1080_v38 = vsel %vm98_vm3, %v1079_v35, %v1077_v36  ;;  %v3814_v35 = vld [vmem:[%s4299_s2 + $0x34] ss:$12 sps:$4 sm:$0xff]   ;;  %v3820_v36 = vld [vmem:[%s4299_s2 + $0x30] ss:$12 sps:$4 sm:$0xff]  }
 0xfe2   :  { %v3673_v41 = vpack.c.bf16 %v1080_v38, %v1080_v38  ;;  %v3826_v38 = vld [vmem:[%s4299_s2 + $0x1c] ss:$12 sps:$4 sm:$0xff]  }
 0xfe4   :  { %1115 = vmatmul.mubr.bf16.vlgmr.msra.gmra.mxu0 %v3673_v41 }
 0xfe5   :  { %2747 = vmatpush3.bf16.msra.mxu0 %v3421_v63  ;;  %2750 = vmatprep.mubr.msk.bf16.mxu0 %vm3144_vm1, %v3142_v2 }
 0xfe6   :  { %2748 = vmatprep.subr.bf16.mxu0 %v3142_v2 }
 0xfe9   :  { %2749 = vmatpush3.bf16.msra.mxu0 %v3427_v0 }
 0xfea   :  { %1347 = vmatprep.subr.bf16.mxu0 %v3684_v48 }
0x10a4   :  { %v1116_v47 = vpop.f32.mrf.mxu0 }
0x10a5   :  { %v1117_v51 = vadd.f32 %v1116_v47, %v3401_v40  ;;  %v3838_v47 = vld [vmem:[%s4299_s2 + $0x4] ss:$12 sps:$4 sm:$0xff]  }
0x10a6   :  { %v1118_v52 = vpop.f32.mrf.mxu0 }
0x10a7   :  { %v1119_v46 = vadd.f32 %v1118_v52, %v3408_v45  ;;  %1164 = vrot.lane.b32.xlu1 %v1117_v51, %s3147_s11 }
0x10a8   :  { %v1120_v50 = vpop.f32.mrf.mxu0 }
0x10a9   :  { %1185 = vrot.lane.b32.xlu0 %v1119_v46, %s3146_s23 }
0x10aa   :  { %v1121_v53 = vpop.f32.mrf.mxu0 }
0x10ad   :  { %1175 = vrot.lane.b32.xlu0 %v1119_v46, %s3147_s11 }
0x1119   :  { %v1165_v54 = vpop.permute.xlu1 %1164 }
0x111a   :  { %v1167_v55 = vadd.f32 %v1165_v54, %v1117_v51 }
0x111b   :  { %v1186_v5 = vpop.permute.xlu0 %1185 }
0x111c   :  { %v2463_v56 = vmul.f32 -1.442695, %v1167_v55 }
0x111e   :  { %2996 = vpow2.f32 %v2463_v56 }
0x111f   :  { %v1176_v13 = vpop.permute.xlu0 %1175 }
0x1120   :  { %v1178_v14 = vadd.f32 %v1176_v13, %v1117_v51 }
0x1122   :  { %v2464_v16 = vmul.f32 -1.442695, %v1178_v14 }
0x112b   :  { %v2997_v34 = vpop.eup %2996 }
0x112c   :  { %v1171_v1 = vadd.f32 1.0, %v2997_v34 }
0x112e   :  { %2998 = vrcp.f32 %v1171_v1 }
0x113b   :  { %v2999_v12 = vpop.eup %2998 }
0x113c   :  { %v1188_v7 = vmul.f32 %v2999_v12, %v1186_v5 }
0x113e   :  { %1190 = vrot.lane.b32.xlu1 %v1188_v7, %s3145_s15 }
0x11b0   :  { %v1191_v8 = vpop.permute.xlu1 %1190 }
0x11b1   :  { %v1193_v9 = vadd.f32 %v1191_v8, %v1117_v51  ;;  %v3844_v51 = vld [vmem:[%s4299_s2] ss:$12 sps:$4 sm:$0xff]  }
0x11b3   :  { %3000 = vtanh.f32 %v1193_v9 }
0x11b4   :  { %3002 = vpow2.f32 %v2464_v16 }
0x11c0   :  { %v3001_v10 = vpop.eup %3000 }
0x11c1   :  { %1197 = vrot.lane.b32.xlu1 %v3001_v10, %s3146_s23  ;;  %v3003_v17 = vpop.eup %3002 }
0x11c2   :  { %v1182_v18 = vadd.f32 1.0, %v3003_v17 }
0x11c4   :  { %3004 = vrcp.f32 %v1182_v18 }
0x11c5   :  { %1012 = vrot.lane.b32.xlu1 %v1010_v11, %s3146_s23 }
0x11d1   :  { %v3005_v19 = vpop.eup %3004 }
0x11d2   :  { %v1195_v20 = vsub.f32 1.0, %v3005_v19  ;;  %v1201_v24 = vmul.f32 %v3005_v19, %v3605_v59  ;;  %v3716_v59 = vld [vmem:[%s4299_s2 + $0x98] ss:$12 sps:$4 sm:$0xff]  }
0x1233   :  { %v1198_v21 = vpop.permute.xlu1 %1197 }
0x1234   :  { %v1200_v22 = vmul.f32 %v1198_v21, %v1195_v20 }
0x1236   :  { %v3698_v25 = vadd.f32 %v1201_v24, %v1200_v22 }
0x1237   :  { %v1013_v27 = vpop.permute.xlu1 %1012 }
0x1238   :  { %2723 = vmatmul.mubr.msk.bf16.vlgmr.msra.gmra.mxu1 %vm38_vm0, %v1013_v27  ;;  %v1203_v28 = vpack.c.bf16 %v3698_v25, %v3698_v25 }
0x1239   :  { %2727 = vmatpush3.bf16.msra.mxu1 %v3706_v49  ;;  %2742 = vmatprep.mubr.msk.bf16.mxu1 %vm3144_vm1, %v3142_v2 }
0x123a   :  { %1205 = vrot.lane.b32.xlu0 %v1203_v28, %s3146_s23  ;;  %2728 = vmatprep.subr.bf16.mxu1 %v3142_v2 }
0x123d   :  { %2729 = vmatpush3.bf16.msra.mxu1 %v3716_v59 }
0x123e   :  { %1250 = vrot.lane.b32.xlu0 %v1119_v46, %s3145_s15  ;;  %2730 = vmatprep.subr.bf16.mxu1 %v3142_v2 }
0x1241   :  { %2731 = vmatpush3.bf16.msra.mxu1 %v3724_v57 }
0x1242   :  { %2732 = vmatprep.subr.bf16.mxu1 %v3142_v2 }
0x1245   :  { %2733 = vmatpush3.bf16.msra.mxu1 %v3731_v58 }
0x1246   :  { %2734 = vmatprep.subr.bf16.mxu1 %v3142_v2 }
0x1249   :  { %2735 = vmatpush3.bf16.msra.mxu1 %v3738_v61 }
0x124a   :  { %2736 = vmatprep.subr.bf16.mxu1 %v3142_v2 }
0x124d   :  { %2737 = vmatpush3.bf16.msra.mxu1 %v3337_v23 }
0x124e   :  { %2738 = vmatprep.subr.bf16.mxu1 %v3142_v2 }
0x1251   :  { %2739 = vmatpush3.bf16.msra.mxu1 %v3356_v26  ;;  %v3759_v26 = vld [vmem:[%s4299_s2 + $0xa8] ss:$12 sps:$4 sm:$0xff]  }
0x1252   :  { %2740 = vmatprep.subr.bf16.mxu1 %v3142_v2 }
0x1255   :  { %2741 = vmatpush3.bf16.msra.mxu1 %v3375_v29  ;;  %v3766_v29 = vld [vmem:[%s4299_s2 + $0x94] ss:$12 sps:$4 sm:$0xff]  }
0x1256   :  { %2754 = vmatprep.subr.bf16.mxu1 %v3142_v2 }
0x1258   :  { %2743 = vmatmul.mubr.bf16.vlgmr.msra.gmra.mxu1 %v3673_v41  ;;  %v3832_v41 = vld [vmem:[%s4299_s2 + $0x18] ss:$12 sps:$4 sm:$0xff]  }
0x1259   :  { %2755 = vmatpush3.bf16.msra.mxu1 %v3501_v62  ;;  %2758 = vmatprep.mubr.msk.bf16.mxu1 %vm3144_vm1, %v3142_v2 }
0x125a   :  { %2756 = vmatprep.subr.bf16.mxu1 %v3142_v2 }
0x125d   :  { %2757 = vmatpush3.bf16.msra.mxu1 %v3508_v30 }
0x125e   :  { %2762 = vmatprep.subr.bf16.mxu1 %v3142_v2 }
0x12ac   :  { %v1206_v23 = vpop.permute.xlu0 %1205 }
0x12ad   :  { %2751 = vmatmul.mubr.msk.bf16.vlgmr.msra.gmra.mxu0 %vm38_vm0, %v1206_v23  ;;  %v2469_v23 = vld [vmem:[%s4300_s0 + $0x20] sm:$0xff] }
0x12ae   :  { %1348 = vmatpush1.bf16.msra.mxu0 %v3759_v26  ;;  %1379 = vmatprep.mubr.bf16.mxu0 %v3143_v6 }
0x12af   :  { %1349 = vmatprep.subr.bf16.mxu0 %v3766_v29 }
0x12b0   :  { %v1251_v5 = vpop.permute.xlu0 %1250 }
0x12b2   :  { %1350 = vmatpush1.bf16.msra.mxu0 %v3772_v31 }
0x12b3   :  { %1351 = vmatprep.subr.bf16.mxu0 %v3778_v37 }
0x12b6   :  { %1352 = vmatpush1.bf16.msra.mxu0 %v3784_v39 }
0x12b7   :  { %1353 = vmatprep.subr.bf16.mxu0 %v3790_v32 }
0x12ba   :  { %1354 = vmatpush1.bf16.msra.mxu0 %v3796_v3 }
0x12bb   :  { %1355 = vmatprep.subr.bf16.mxu0 %v3802_v33 }
0x12be   :  { %1356 = vmatpush1.bf16.msra.mxu0 %v3808_v15 }
0x12bf   :  { %1357 = vmatprep.subr.bf16.mxu0 %v3814_v35 }
0x12c2   :  { %1358 = vmatpush1.bf16.msra.mxu0 %v3820_v36 }
0x12c3   :  { %1359 = vmatprep.subr.bf16.mxu0 %v3826_v38 }
0x12c6   :  { %1360 = vmatpush1.bf16.msra.mxu0 %v3832_v41 }
0x12c7   :  { %1361 = vmatprep.subr.bf16.mxu0 %v3838_v47 }
0x12ca   :  { %1362 = vmatpush1.bf16.msra.mxu0 %v3844_v51 }
0x12cb   :  { %2782 = vmatprep.subr.bf16.mxu0 %v3142_v2 }
0x12f8   :  { %v3848_v52 = vpop.f32.mrf.mxu1 }
0x12fa   :  { %v2724_v46 = vpop.f32.mrf.mxu1 }
0x12fc   :  { %v1054_v50 = vpop.f32.mrf.mxu1 }
0x12fe   :  { %v2725_v53 = vpop.f32.mrf.mxu1 }
0x1318   :  { %v1157_v54 = vpop.f32.mrf.mxu1 }
0x1319   :  { %v1158_v16 = vadd.f32 %v1157_v54, %v3464_v60 }
0x131a   :  { %v2744_v55 = vpop.f32.mrf.mxu1 }
0x131c   :  { %v1160_v56 = vpop.f32.mrf.mxu1 }
0x131e   :  { %v2745_v34 = vpop.f32.mrf.mxu1 }
0x136d   :  { %v1244_v1 = vpop.f32.mrf.mxu0 }
0x136e   :  { %v1245_v12 = vadd.f32 %v3459_v44, %v1244_v1 }
0x136f   :  { %v2752_v7 = vpop.f32.mrf.mxu0 }
0x1370   :  { %v1253_v8 = vadd.f32 %v1251_v5, %v1245_v12 }
0x1371   :  { %v1247_v9 = vpop.f32.mrf.mxu0 }
0x1372   :  { %v2466_v10 = vmul.f32 -1.442695, %v1253_v8 }
0x1373   :  { %v2753_v11 = vpop.f32.mrf.mxu0 }
0x1374   :  { %3006 = vpow2.f32 %v2466_v10 }
0x1381   :  { %v3007_v13 = vpop.eup %3006 }
0x1382   :  { %v1257_v14 = vadd.f32 1.0, %v3007_v13 }
0x1384   :  { %3008 = vrcp.f32 %v1257_v14 }
0x1391   :  { %v3009_v17 = vpop.eup %3008 }
0x1392   :  { %v1260_v18 = vmul.f32 %v3009_v17, %v1158_v16  ;;  %v1267_v21 = vsub.f32 1.0, %v3009_v17  ;;  %v1273_v24 = vmul.f32 %v3009_v17, %v3664_v43 }
0x1394   :  { %1262 = vrot.lane.b32.xlu1 %v1260_v18, %s3145_s15 }
0x1398   :  { %1337 = vrot.lane.b32.xlu1 %v3698_v25, %s3147_s11 }
0x1406   :  { %v1263_v44 = vpop.permute.xlu1 %1262 }
0x1407   :  { %v1265_v19 = vadd.f32 %v1263_v44, %v1245_v12 }
0x1409   :  { %3010 = vtanh.f32 %v1265_v19 }
0x140a   :  { %v1338_v46 = vpop.permute.xlu1 %1337 }
0x140b   :  { %v1344_v50 = vsel %vm96_vm2, %v2469_v23, %v1338_v46 }
0x1416   :  { %v3011_v20 = vpop.eup %3010 }
0x1417   :  { %1269 = vrot.lane.b32.xlu0 %v3011_v20, %s3146_s23 }
0x1489   :  { %v1270_v22 = vpop.permute.xlu0 %1269 }
0x148a   :  { %v1272_v27 = vmul.f32 %v1270_v22, %v1267_v21 }
0x148c   :  { %v3857_v28 = vadd.f32 %v1273_v24, %v1272_v27 }
0x148e   :  { %1341 = vrot.lane.b32.xlu0 %v3857_v28, %s3145_s15  ;;  %v1275_v18 = vpack.c.bf16 %v3857_v28, %v3857_v28 }
0x1500   :  { %v1342_v53 = vpop.permute.xlu0 %1341 }
0x1501   :  { %v1345_v54 = vsel %vm98_vm3, %v1344_v50, %v1342_v53 }
0x1502   :  { %v3866_v55 = vpack.c.bf16 %v1345_v54, %v1345_v54 }
0x1504   :  { %1380 = vmatmul.mubr.bf16.vlgmr.msra.gmra.mxu0 %v3866_v55 }
0x1505   :  { %2783 = vmatpush3.bf16.msra.mxu0 %v3421_v63  ;;  %2786 = vmatprep.mubr.msk.bf16.mxu0 %vm3144_vm1, %v3142_v2 }
0x1506   :  { %2784 = vmatprep.subr.bf16.mxu0 %v3142_v2 }
0x1509   :  { %2785 = vmatpush3.bf16.msra.mxu0 %v3427_v0 }
0x150a   :  { %1612 = vmatprep.subr.bf16.mxu0 %v3684_v48 }
0x15c4   :  { %v1381_v43 = vpop.f32.mrf.mxu0 }
0x15c5   :  { %v1382_v56 = vadd.f32 %v1381_v43, %v3401_v40 }
0x15c6   :  { %v1383_v34 = vpop.f32.mrf.mxu0 }
0x15c7   :  { %v1384_v1 = vadd.f32 %v1383_v34, %v3408_v45  ;;  %1429 = vrot.lane.b32.xlu1 %v1382_v56, %s3147_s11  ;;  %v3922_v34 = vld [vmem:[%s4299_s2 + $0x8] ss:$12 sps:$4 sm:$0xff]  }
0x15c8   :  { %v1385_v12 = vpop.f32.mrf.mxu0 }
0x15c9   :  { %1450 = vrot.lane.b32.xlu0 %v1384_v1, %s3146_s23 }
0x15ca   :  { %v1386_v63 = vpop.f32.mrf.mxu0 }
0x15cd   :  { %1440 = vrot.lane.b32.xlu0 %v1384_v1, %s3147_s11 }
0x1639   :  { %v1430_v5 = vpop.permute.xlu1 %1429 }
0x163a   :  { %v1432_v7 = vadd.f32 %v1430_v5, %v1382_v56 }
0x163b   :  { %v1451_v11 = vpop.permute.xlu0 %1450 }
0x163c   :  { %v2470_v8 = vmul.f32 -1.442695, %v1432_v7 }
0x163e   :  { %3012 = vpow2.f32 %v2470_v8 }
0x163f   :  { %v1441_v44 = vpop.permute.xlu0 %1440 }
0x1640   :  { %v1443_v19 = vadd.f32 %v1441_v44, %v1382_v56 }
0x1642   :  { %v2471_v20 = vmul.f32 -1.442695, %v1443_v19 }
0x164b   :  { %v3013_v0 = vpop.eup %3012 }
0x164c   :  { %v1436_v9 = vadd.f32 1.0, %v3013_v0 }
0x164e   :  { %3014 = vrcp.f32 %v1436_v9  ;;  %v3956_v9 = vld [vmem:[%s4303_s5] ss:$0 sm:$0xff] }
0x165b   :  { %v3015_v10 = vpop.eup %3014 }
0x165c   :  { %v1453_v13 = vmul.f32 %v3015_v10, %v1451_v11 }
0x165e   :  { %1455 = vrot.lane.b32.xlu1 %v1453_v13, %s3145_s15 }
0x16d0   :  { %v1456_v14 = vpop.permute.xlu1 %1455 }
0x16d1   :  { %v1458_v16 = vadd.f32 %v1456_v14, %v1382_v56  ;;  %v3915_v56 = vld [vmem:[%s4299_s2 + $0x20] ss:$12 sps:$4 sm:$0xff]  }
0x16d3   :  { %3016 = vtanh.f32 %v1458_v16 }
0x16d4   :  { %3018 = vpow2.f32 %v2471_v20 }
0x16e0   :  { %v3017_v17 = vpop.eup %3016 }
0x16e1   :  { %1462 = vrot.lane.b32.xlu1 %v3017_v17, %s3146_s23  ;;  %v3019_v21 = vpop.eup %3018 }
0x16e2   :  { %v1447_v22 = vadd.f32 1.0, %v3019_v21 }
0x16e4   :  { %3020 = vrcp.f32 %v1447_v22 }
0x16e5   :  { %1277 = vrot.lane.b32.xlu1 %v1275_v18, %s3146_s23 }
0x16f1   :  { %v3021_v24 = vpop.eup %3020 }
0x16f2   :  { %v1460_v27 = vsub.f32 1.0, %v3021_v24  ;;  %v1466_v50 = vmul.f32 %v3021_v24, %v3698_v25  ;;  %v3908_v25 = vld [vmem:[%s4299_s2 + $0x38] ss:$12 sps:$4 sm:$0xff]  }
0x1753   :  { %v1463_v23 = vpop.permute.xlu1 %1462 }
0x1754   :  { %v1465_v46 = vmul.f32 %v1463_v23, %v1460_v27 }
0x1756   :  { %v3886_v53 = vadd.f32 %v1466_v50, %v1465_v46 }
0x1757   :  { %v1278_v54 = vpop.permute.xlu1 %1277 }
0x1758   :  { %2759 = vmatmul.mubr.msk.bf16.vlgmr.msra.gmra.mxu1 %vm38_vm0, %v1278_v54  ;;  %v1468_v43 = vpack.c.bf16 %v3886_v53, %v3886_v53 }
0x1759   :  { %2763 = vmatpush3.bf16.msra.mxu1 %v3706_v49  ;;  %2778 = vmatprep.mubr.msk.bf16.mxu1 %vm3144_vm1, %v3142_v2 }
0x175a   :  { %1470 = vrot.lane.b32.xlu0 %v1468_v43, %s3146_s23  ;;  %2764 = vmatprep.subr.bf16.mxu1 %v3142_v2 }
0x175d   :  { %2765 = vmatpush3.bf16.msra.mxu1 %v3716_v59 }
0x175e   :  { %1515 = vrot.lane.b32.xlu0 %v1384_v1, %s3145_s15  ;;  %2766 = vmatprep.subr.bf16.mxu1 %v3142_v2 }
0x1761   :  { %2767 = vmatpush3.bf16.msra.mxu1 %v3724_v57 }
0x1762   :  { %2768 = vmatprep.subr.bf16.mxu1 %v3142_v2 }
0x1765   :  { %2769 = vmatpush3.bf16.msra.mxu1 %v3731_v58 }
0x1766   :  { %2770 = vmatprep.subr.bf16.mxu1 %v3142_v2 }
0x1769   :  { %2771 = vmatpush3.bf16.msra.mxu1 %v3738_v61 }
0x176a   :  { %2772 = vmatprep.subr.bf16.mxu1 %v3142_v2 }
0x176d   :  { %2773 = vmatpush3.bf16.msra.mxu1 %v3908_v25 }
0x176e   :  { %2774 = vmatprep.subr.bf16.mxu1 %v3142_v2 }
0x1771   :  { %2775 = vmatpush3.bf16.msra.mxu1 %v3915_v56 }
0x1772   :  { %2776 = vmatprep.subr.bf16.mxu1 %v3142_v2 }
0x1775   :  { %2777 = vmatpush3.bf16.msra.mxu1 %v3922_v34 }
0x1776   :  { %2790 = vmatprep.subr.bf16.mxu1 %v3142_v2 }
0x1778   :  { %2779 = vmatmul.mubr.bf16.vlgmr.msra.gmra.mxu1 %v3866_v55 }
0x1779   :  { %2791 = vmatpush3.bf16.msra.mxu1 %v3501_v62  ;;  %2794 = vmatprep.mubr.msk.bf16.mxu1 %vm3144_vm1, %v3142_v2 }
0x177a   :  { %2792 = vmatprep.subr.bf16.mxu1 %v3142_v2 }
0x177d   :  { %2793 = vmatpush3.bf16.msra.mxu1 %v3508_v30 }
0x177e   :  { %2798 = vmatprep.subr.bf16.mxu1 %v3142_v2 }
0x17cc   :  { %v1471_v1 = vpop.permute.xlu0 %1470 }
0x17cd   :  { %2787 = vmatmul.mubr.msk.bf16.vlgmr.msra.gmra.mxu0 %vm38_vm0, %v1471_v1 }
0x17ce   :  { %1613 = vmatpush1.bf16.msra.mxu0 %v3759_v26  ;;  %1644 = vmatprep.mubr.bf16.mxu0 %v3143_v6 }
0x17cf   :  { %1614 = vmatprep.subr.bf16.mxu0 %v3766_v29 }
0x17d0   :  { %v1516_v11 = vpop.permute.xlu0 %1515 }
0x17d2   :  { %1615 = vmatpush1.bf16.msra.mxu0 %v3772_v31 }
0x17d3   :  { %1616 = vmatprep.subr.bf16.mxu0 %v3778_v37 }
0x17d6   :  { %1617 = vmatpush1.bf16.msra.mxu0 %v3784_v39 }
0x17d7   :  { %1618 = vmatprep.subr.bf16.mxu0 %v3790_v32 }
0x17da   :  { %1619 = vmatpush1.bf16.msra.mxu0 %v3796_v3 }
0x17db   :  { %1620 = vmatprep.subr.bf16.mxu0 %v3802_v33 }
0x17de   :  { %1621 = vmatpush1.bf16.msra.mxu0 %v3808_v15 }
0x17df   :  { %1622 = vmatprep.subr.bf16.mxu0 %v3814_v35 }
0x17e2   :  { %1623 = vmatpush1.bf16.msra.mxu0 %v3820_v36 }
0x17e3   :  { %1624 = vmatprep.subr.bf16.mxu0 %v3826_v38 }
0x17e6   :  { %1625 = vmatpush1.bf16.msra.mxu0 %v3832_v41 }
0x17e7   :  { %1626 = vmatprep.subr.bf16.mxu0 %v3838_v47 }
0x17ea   :  { %1627 = vmatpush1.bf16.msra.mxu0 %v3844_v51 }
0x17eb   :  { %2818 = vmatprep.subr.bf16.mxu0 %v3142_v2 }
0x1818   :  { %v3951_v62 = vpop.f32.mrf.mxu1 }
0x181a   :  { %v2760_v30 = vpop.f32.mrf.mxu1 }
0x181b   :  { %v2476_v30 = vld [vmem:[%s4300_s0 + $0x28] sm:$0xff] }
0x181c   :  { %v1319_v55 = vpop.f32.mrf.mxu1 }
0x181e   :  { %v2761_v12 = vpop.f32.mrf.mxu1 }
0x1838   :  { %v1422_v63 = vpop.f32.mrf.mxu1 }
0x1839   :  { %v1423_v20 = vadd.f32 %v1422_v63, %v3464_v60 }
0x183a   :  { %v2780_v5 = vpop.f32.mrf.mxu1 }
0x183c   :  { %v1425_v7 = vpop.f32.mrf.mxu1 }
0x183e   :  { %v2781_v8 = vpop.f32.mrf.mxu1 }
0x183f   :  { %v3989_v8 = vld [vmem:[%s4302_s4] sm:$0xff]  }
0x188d   :  { %v1509_v0 = vpop.f32.mrf.mxu0 }
0x188e   :  { %v1510_v10 = vadd.f32 %v3956_v9, %v1509_v0 }
0x188f   :  { %v2788_v13 = vpop.f32.mrf.mxu0 }
0x1890   :  { %v1518_v14 = vadd.f32 %v1516_v11, %v1510_v10 }
0x1891   :  { %v1512_v16 = vpop.f32.mrf.mxu0 }
0x1892   :  { %v2473_v17 = vmul.f32 -1.442695, %v1518_v14 }
0x1893   :  { %v2789_v18 = vpop.f32.mrf.mxu0 }
0x1894   :  { %3022 = vpow2.f32 %v2473_v17 }
0x18a1   :  { %v3023_v44 = vpop.eup %3022 }
0x18a2   :  { %v1522_v19 = vadd.f32 1.0, %v3023_v44 }
0x18a4   :  { %3024 = vrcp.f32 %v1522_v19 }
0x18b1   :  { %v3025_v21 = vpop.eup %3024 }
0x18b2   :  { %v1525_v22 = vmul.f32 %v3025_v21, %v1423_v20  ;;  %v1532_v46 = vsub.f32 1.0, %v3025_v21  ;;  %v1538_v54 = vmul.f32 %v3025_v21, %v3857_v28  ;;  %v3980_v28 = vld [vmem:[%s4302_s4 + $0x8] sm:$0xff]  }
0x18b4   :  { %1527 = vrot.lane.b32.xlu1 %v1525_v22, %s3145_s15 }
0x18b8   :  { %1602 = vrot.lane.b32.xlu1 %v3886_v53, %s3147_s11 }
0x1926   :  { %v1528_v24 = vpop.permute.xlu1 %1527 }
0x1927   :  { %v1530_v27 = vadd.f32 %v1528_v24, %v1510_v10 }
0x1929   :  { %3026 = vtanh.f32 %v1530_v27 }
0x192a   :  { %v1603_v55 = vpop.permute.xlu1 %1602 }
0x192b   :  { %v1609_v12 = vsel %vm96_vm2, %v2476_v30, %v1603_v55 }
0x1936   :  { %v3027_v23 = vpop.eup %3026 }
0x1937   :  { %1534 = vrot.lane.b32.xlu0 %v3027_v23, %s3146_s23 }
0x19a9   :  { %v1535_v50 = vpop.permute.xlu0 %1534 }
0x19aa   :  { %v1537_v43 = vmul.f32 %v1535_v50, %v1532_v46 }
0x19ac   :  { %v3965_v1 = vadd.f32 %v1538_v54, %v1537_v43 }
0x19ae   :  { %1606 = vrot.lane.b32.xlu0 %v3965_v1, %s3145_s15  ;;  %v1540_v50 = vpack.c.bf16 %v3965_v1, %v3965_v1 }
0x1a20   :  { %v1607_v63 = vpop.permute.xlu0 %1606 }
0x1a21   :  { %v1610_v5 = vsel %vm98_vm3, %v1609_v12, %v1607_v63 }
0x1a22   :  { %v3974_v7 = vpack.c.bf16 %v1610_v5, %v1610_v5 }
0x1a24   :  { %1645 = vmatmul.mubr.bf16.vlgmr.msra.gmra.mxu0 %v3974_v7 }
0x1a25   :  { %2819 = vmatpush3.bf16.msra.mxu0 %v3980_v28  ;;  %2822 = vmatprep.mubr.msk.bf16.mxu0 %vm3144_vm1, %v3142_v2 }
0x1a26   :  { %2820 = vmatprep.subr.bf16.mxu0 %v3142_v2 }
0x1a29   :  { %2821 = vmatpush3.bf16.msra.mxu0 %v3989_v8 }
0x1a2a   :  { %1877 = vmatprep.subr.bf16.mxu0 %v3684_v48 }
0x1ae4   :  { %v1646_v0 = vpop.f32.mrf.mxu0 }
0x1ae5   :  { %v1647_v10 = vadd.f32 %v1646_v0, %v3401_v40 }
0x1ae6   :  { %v1648_v11 = vpop.f32.mrf.mxu0 }
0x1ae7   :  { %v1649_v13 = vadd.f32 %v1648_v11, %v3408_v45  ;;  %1694 = vrot.lane.b32.xlu1 %v1647_v10, %s3147_s11 }
0x1ae8   :  { %v1650_v14 = vpop.f32.mrf.mxu0 }
0x1ae9   :  { %1715 = vrot.lane.b32.xlu0 %v1649_v13, %s3146_s23 }
0x1aea   :  { %v1651_v16 = vpop.f32.mrf.mxu0 }
0x1aed   :  { %1705 = vrot.lane.b32.xlu0 %v1649_v13, %s3147_s11 }
0x1b59   :  { %v1695_v17 = vpop.permute.xlu1 %1694 }
0x1b5a   :  { %v1697_v18 = vadd.f32 %v1695_v17, %v1647_v10 }
0x1b5b   :  { %v1716_v22 = vpop.permute.xlu0 %1715 }
0x1b5c   :  { %v2477_v44 = vmul.f32 -1.442695, %v1697_v18 }
0x1b5e   :  { %3028 = vpow2.f32 %v2477_v44 }
0x1b5f   :  { %v1706_v54 = vpop.permute.xlu0 %1705 }
0x1b60   :  { %v1708_v43 = vadd.f32 %v1706_v54, %v1647_v10 }
0x1b62   :  { %v2478_v30 = vmul.f32 -1.442695, %v1708_v43 }
0x1b6b   :  { %v3029_v19 = vpop.eup %3028 }
0x1b6c   :  { %v1701_v20 = vadd.f32 1.0, %v3029_v19 }
0x1b6e   :  { %3030 = vrcp.f32 %v1701_v20 }
0x1b7b   :  { %v3031_v21 = vpop.eup %3030 }
0x1b7c   :  { %v1718_v24 = vmul.f32 %v3031_v21, %v1716_v22 }
0x1b7e   :  { %1720 = vrot.lane.b32.xlu1 %v1718_v24, %s3145_s15 }
0x1bf0   :  { %v1721_v27 = vpop.permute.xlu1 %1720 }
0x1bf1   :  { %v1723_v23 = vadd.f32 %v1721_v27, %v1647_v10  ;;  %v4042_v10 = vld [vmem:[%s4304_s6] sm:$0xff]  }
0x1bf3   :  { %3032 = vtanh.f32 %v1723_v23 }
0x1bf4   :  { %3034 = vpow2.f32 %v2478_v30 }
0x1c00   :  { %v3033_v46 = vpop.eup %3032 }
0x1c01   :  { %1727 = vrot.lane.b32.xlu1 %v3033_v46, %s3146_s23  ;;  %v3035_v55 = vpop.eup %3034 }
0x1c02   :  { %v1712_v12 = vadd.f32 1.0, %v3035_v55 }
0x1c04   :  { %3036 = vrcp.f32 %v1712_v12 }
0x1c05   :  { %1542 = vrot.lane.b32.xlu1 %v1540_v50, %s3146_s23 }
0x1c11   :  { %v3037_v63 = vpop.eup %3036 }
0x1c12   :  { %v1725_v5 = vsub.f32 1.0, %v3037_v63  ;;  %v1731_v14 = vmul.f32 %v3037_v63, %v3886_v53  ;;  %v4033_v53 = vld [vmem:[%s4304_s6 + $0x8] sm:$0xff]  }
0x1c73   :  { %v1728_v0 = vpop.permute.xlu1 %1727 }
0x1c74   :  { %v1730_v11 = vmul.f32 %v1728_v0, %v1725_v5 }
0x1c76   :  { %v4004_v16 = vadd.f32 %v1731_v14, %v1730_v11 }
0x1c77   :  { %v1543_v17 = vpop.permute.xlu1 %1542 }
0x1c78   :  { %2795 = vmatmul.mubr.msk.bf16.vlgmr.msra.gmra.mxu1 %vm38_vm0, %v1543_v17  ;;  %v1733_v18 = vpack.c.bf16 %v4004_v16, %v4004_v16 }
0x1c79   :  { %2799 = vmatpush3.bf16.msra.mxu1 %v3706_v49  ;;  %2814 = vmatprep.mubr.msk.bf16.mxu1 %vm3144_vm1, %v3142_v2 }
0x1c7a   :  { %1735 = vrot.lane.b32.xlu0 %v1733_v18, %s3146_s23  ;;  %2800 = vmatprep.subr.bf16.mxu1 %v3142_v2 }
0x1c7d   :  { %2801 = vmatpush3.bf16.msra.mxu1 %v3716_v59 }
0x1c7e   :  { %1780 = vrot.lane.b32.xlu0 %v1649_v13, %s3145_s15  ;;  %2802 = vmatprep.subr.bf16.mxu1 %v3142_v2 }
0x1c81   :  { %2803 = vmatpush3.bf16.msra.mxu1 %v3724_v57 }
0x1c82   :  { %2804 = vmatprep.subr.bf16.mxu1 %v3142_v2 }
0x1c85   :  { %2805 = vmatpush3.bf16.msra.mxu1 %v3731_v58 }
0x1c86   :  { %2806 = vmatprep.subr.bf16.mxu1 %v3142_v2 }
0x1c89   :  { %2807 = vmatpush3.bf16.msra.mxu1 %v3738_v61 }
0x1c8a   :  { %2808 = vmatprep.subr.bf16.mxu1 %v3142_v2 }
0x1c8d   :  { %2809 = vmatpush3.bf16.msra.mxu1 %v3908_v25 }
0x1c8e   :  { %2810 = vmatprep.subr.bf16.mxu1 %v3142_v2 }
0x1c91   :  { %2811 = vmatpush3.bf16.msra.mxu1 %v3915_v56 }
0x1c92   :  { %2812 = vmatprep.subr.bf16.mxu1 %v3142_v2 }
0x1c95   :  { %2813 = vmatpush3.bf16.msra.mxu1 %v3922_v34 }
0x1c96   :  { %2826 = vmatprep.subr.bf16.mxu1 %v3142_v2 }
0x1c98   :  { %2815 = vmatmul.mubr.bf16.vlgmr.msra.gmra.mxu1 %v3974_v7 }
0x1c99   :  { %2827 = vmatpush3.bf16.msra.mxu1 %v4033_v53  ;;  %2830 = vmatprep.mubr.msk.bf16.mxu1 %vm3144_vm1, %v3142_v2 }
0x1c9a   :  { %2828 = vmatprep.subr.bf16.mxu1 %v3142_v2 }
0x1c9d   :  { %2829 = vmatpush3.bf16.msra.mxu1 %v4042_v10 }
0x1c9e   :  { %2834 = vmatprep.subr.bf16.mxu1 %v3142_v2 }
0x1cec   :  { %v1736_v7 = vpop.permute.xlu0 %1735 }
0x1ced   :  { %2823 = vmatmul.mubr.msk.bf16.vlgmr.msra.gmra.mxu0 %vm38_vm0, %v1736_v7 }
0x1cee   :  { %1878 = vmatpush1.bf16.msra.mxu0 %v3759_v26  ;;  %1909 = vmatprep.mubr.bf16.mxu0 %v3143_v6 }
0x1cef   :  { %1879 = vmatprep.subr.bf16.mxu0 %v3766_v29 }
0x1cf0   :  { %v1781_v50 = vpop.permute.xlu0 %1780 }
0x1cf2   :  { %1880 = vmatpush1.bf16.msra.mxu0 %v3772_v31 }
0x1cf3   :  { %1881 = vmatprep.subr.bf16.mxu0 %v3778_v37 }
0x1cf6   :  { %1882 = vmatpush1.bf16.msra.mxu0 %v3784_v39 }
0x1cf7   :  { %1883 = vmatprep.subr.bf16.mxu0 %v3790_v32 }
0x1cfa   :  { %1884 = vmatpush1.bf16.msra.mxu0 %v3796_v3 }
0x1cfb   :  { %1885 = vmatprep.subr.bf16.mxu0 %v3802_v33 }
0x1cfe   :  { %1886 = vmatpush1.bf16.msra.mxu0 %v3808_v15 }
0x1cff   :  { %1887 = vmatprep.subr.bf16.mxu0 %v3814_v35 }
0x1d02   :  { %1888 = vmatpush1.bf16.msra.mxu0 %v3820_v36 }
0x1d03   :  { %1889 = vmatprep.subr.bf16.mxu0 %v3826_v38 }
0x1d06   :  { %1890 = vmatpush1.bf16.msra.mxu0 %v3832_v41 }
0x1d07   :  { %1891 = vmatprep.subr.bf16.mxu0 %v3838_v47 }
0x1d0a   :  { %1892 = vmatpush1.bf16.msra.mxu0 %v3844_v51 }
0x1d0b   :  { %2854 = vmatprep.subr.bf16.mxu0 %v3142_v2 }
0x1d38   :  { %v4064_v13 = vpop.f32.mrf.mxu1 }
0x1d3a   :  { %v2796_v44 = vpop.f32.mrf.mxu1 }
0x1d3c   :  { %v1584_v19 = vpop.f32.mrf.mxu1 }
0x1d3e   :  { %v2797_v20 = vpop.f32.mrf.mxu1 }
0x1d58   :  { %v1687_v21 = vpop.f32.mrf.mxu1 }
0x1d59   :  { %v1688_v0 = vadd.f32 %v1687_v21, %v3464_v60  ;;  %v2483_v21 = vld [vmem:[%s4300_s0 + $0x30] sm:$0xff] }
0x1d5a   :  { %v2816_v22 = vpop.f32.mrf.mxu1 }
0x1d5c   :  { %v1690_v24 = vpop.f32.mrf.mxu1 }
0x1d5e   :  { %v2817_v27 = vpop.f32.mrf.mxu1 }
0x1dad   :  { %v1774_v23 = vpop.f32.mrf.mxu0 }
0x1dae   :  { %v1775_v46 = vadd.f32 %v3956_v9, %v1774_v23 }
0x1daf   :  { %v2824_v54 = vpop.f32.mrf.mxu0 }
0x1db0   :  { %v1783_v43 = vadd.f32 %v1781_v50, %v1775_v46 }
0x1db1   :  { %v1777_v30 = vpop.f32.mrf.mxu0 }
0x1db2   :  { %v2480_v55 = vmul.f32 -1.442695, %v1783_v43 }
0x1db3   :  { %v2825_v12 = vpop.f32.mrf.mxu0 }
0x1db4   :  { %3038 = vpow2.f32 %v2480_v55 }
0x1dc1   :  { %v3039_v63 = vpop.eup %3038 }
0x1dc2   :  { %v1787_v5 = vadd.f32 1.0, %v3039_v63 }
0x1dc4   :  { %3040 = vrcp.f32 %v1787_v5 }
0x1dd1   :  { %v3041_v11 = vpop.eup %3040 }
0x1dd2   :  { %v1790_v14 = vmul.f32 %v3041_v11, %v1688_v0  ;;  %v1797_v44 = vsub.f32 1.0, %v3041_v11  ;;  %v1803_v20 = vmul.f32 %v3041_v11, %v3965_v1 }
0x1dd4   :  { %1792 = vrot.lane.b32.xlu1 %v1790_v14, %s3145_s15 }
0x1dd8   :  { %1867 = vrot.lane.b32.xlu1 %v4004_v16, %s3147_s11 }
0x1e46   :  { %v1793_v17 = vpop.permute.xlu1 %1792 }
0x1e47   :  { %v1795_v18 = vadd.f32 %v1793_v17, %v1775_v46 }
0x1e49   :  { %3042 = vtanh.f32 %v1795_v18 }
0x1e4a   :  { %v1868_v27 = vpop.permute.xlu1 %1867 }
0x1e4b   :  { %v1874_v23 = vsel %vm96_vm2, %v2483_v21, %v1868_v27 }
0x1e56   :  { %v3043_v7 = vpop.eup %3042 }
0x1e57   :  { %1799 = vrot.lane.b32.xlu0 %v3043_v7, %s3146_s23 }
0x1ec9   :  { %v1800_v19 = vpop.permute.xlu0 %1799 }
0x1eca   :  { %v1802_v22 = vmul.f32 %v1800_v19, %v1797_v44 }
0x1ecc   :  { %v4073_v24 = vadd.f32 %v1803_v20, %v1802_v22 }
0x1ece   :  { %1871 = vrot.lane.b32.xlu0 %v4073_v24, %s3145_s15  ;;  %v1805_v22 = vpack.c.bf16 %v4073_v24, %v4073_v24 }
0x1f40   :  { %v1872_v46 = vpop.permute.xlu0 %1871 }
0x1f41   :  { %v1875_v50 = vsel %vm98_vm3, %v1874_v23, %v1872_v46 }
0x1f42   :  { %v4082_v54 = vpack.c.bf16 %v1875_v50, %v1875_v50 }
0x1f44   :  { %1910 = vmatmul.mubr.bf16.vlgmr.msra.gmra.mxu0 %v4082_v54 }
0x1f45   :  { %2855 = vmatpush3.bf16.msra.mxu0 %v3980_v28  ;;  %2858 = vmatprep.mubr.msk.bf16.mxu0 %vm3144_vm1, %v3142_v2 }
0x1f46   :  { %2856 = vmatprep.subr.bf16.mxu0 %v3142_v2 }
0x1f49   :  { %2857 = vmatpush3.bf16.msra.mxu0 %v3989_v8 }
0x1f4a   :  { %2142 = vmatprep.subr.bf16.mxu0 %v3684_v48 }
0x2004   :  { %v1911_v1 = vpop.f32.mrf.mxu0 }
0x2005   :  { %v1912_v43 = vadd.f32 %v1911_v1, %v3401_v40 }
0x2006   :  { %v1913_v30 = vpop.f32.mrf.mxu0 }
0x2007   :  { %v1914_v55 = vadd.f32 %v1913_v30, %v3408_v45  ;;  %1959 = vrot.lane.b32.xlu1 %v1912_v43, %s3147_s11 }
0x2008   :  { %v1915_v12 = vpop.f32.mrf.mxu0 }
0x2009   :  { %1980 = vrot.lane.b32.xlu0 %v1914_v55, %s3146_s23 }
0x200a   :  { %v1916_v63 = vpop.f32.mrf.mxu0 }
0x200d   :  { %1970 = vrot.lane.b32.xlu0 %v1914_v55, %s3147_s11 }
0x2079   :  { %v1960_v5 = vpop.permute.xlu1 %1959 }
0x207a   :  { %v1962_v0 = vadd.f32 %v1960_v5, %v1912_v43 }
0x207b   :  { %v1981_v18 = vpop.permute.xlu0 %1980 }
0x207c   :  { %v2484_v11 = vmul.f32 -1.442695, %v1962_v0 }
0x207e   :  { %3044 = vpow2.f32 %v2484_v11 }
0x207f   :  { %v1971_v21 = vpop.permute.xlu0 %1970 }
0x2080   :  { %v1973_v27 = vadd.f32 %v1971_v21, %v1912_v43 }
0x2082   :  { %v2485_v23 = vmul.f32 -1.442695, %v1973_v27 }
0x208b   :  { %v3045_v14 = vpop.eup %3044 }
0x208c   :  { %v1966_v48 = vadd.f32 1.0, %v3045_v14 }
0x208e   :  { %3046 = vrcp.f32 %v1966_v48 }
0x209b   :  { %v3047_v17 = vpop.eup %3046 }
0x209c   :  { %v1983_v7 = vmul.f32 %v3047_v17, %v1981_v18 }
0x209e   :  { %1985 = vrot.lane.b32.xlu1 %v1983_v7, %s3145_s15 }
0x2110   :  { %v1986_v44 = vpop.permute.xlu1 %1985 }
0x2111   :  { %v1988_v19 = vadd.f32 %v1986_v44, %v1912_v43 }
0x2113   :  { %3048 = vtanh.f32 %v1988_v19  ;;  %v2490_v19 = vld [vmem:[%s4300_s0 + $0x38] sm:$0xff] }
0x2114   :  { %3050 = vpow2.f32 %v2485_v23 }
0x2120   :  { %v3049_v20 = vpop.eup %3048 }
0x2121   :  { %1992 = vrot.lane.b32.xlu1 %v3049_v20, %s3146_s23  ;;  %v3051_v46 = vpop.eup %3050 }
0x2122   :  { %v1977_v50 = vadd.f32 1.0, %v3051_v46 }
0x2124   :  { %3052 = vrcp.f32 %v1977_v50 }
0x2125   :  { %1807 = vrot.lane.b32.xlu1 %v1805_v22, %s3146_s23 }
0x2131   :  { %v3053_v1 = vpop.eup %3052 }
0x2132   :  { %v1990_v30 = vsub.f32 1.0, %v3053_v1  ;;  %v1996_v5 = vmul.f32 %v3053_v1, %v4004_v16 }
0x2193   :  { %v1993_v12 = vpop.permute.xlu1 %1992 }
0x2194   :  { %v1995_v63 = vmul.f32 %v1993_v12, %v1990_v30 }
0x2196   :  { %v4102_v0 = vadd.f32 %v1996_v5, %v1995_v63 }
0x2197   :  { %v1808_v11 = vpop.permute.xlu1 %1807 }
0x2198   :  { %2831 = vmatmul.mubr.msk.bf16.vlgmr.msra.gmra.mxu1 %vm38_vm0, %v1808_v11  ;;  %v1998_v14 = vpack.c.bf16 %v4102_v0, %v4102_v0 }
0x2199   :  { %2835 = vmatpush3.bf16.msra.mxu1 %v3706_v49  ;;  %2850 = vmatprep.mubr.msk.bf16.mxu1 %vm3144_vm1, %v3142_v2 }
0x219a   :  { %2000 = vrot.lane.b32.xlu0 %v1998_v14, %s3146_s23  ;;  %2836 = vmatprep.subr.bf16.mxu1 %v3142_v2 }
0x219d   :  { %2837 = vmatpush3.bf16.msra.mxu1 %v3716_v59 }
0x219e   :  { %2045 = vrot.lane.b32.xlu0 %v1914_v55, %s3145_s15  ;;  %2838 = vmatprep.subr.bf16.mxu1 %v3142_v2 }
0x21a1   :  { %2839 = vmatpush3.bf16.msra.mxu1 %v3724_v57 }
0x21a2   :  { %2840 = vmatprep.subr.bf16.mxu1 %v3142_v2 }
0x21a5   :  { %2841 = vmatpush3.bf16.msra.mxu1 %v3731_v58 }
0x21a6   :  { %2842 = vmatprep.subr.bf16.mxu1 %v3142_v2 }
0x21a9   :  { %2843 = vmatpush3.bf16.msra.mxu1 %v3738_v61 }
0x21aa   :  { %2844 = vmatprep.subr.bf16.mxu1 %v3142_v2 }
0x21ad   :  { %2845 = vmatpush3.bf16.msra.mxu1 %v3908_v25 }
0x21ae   :  { %2846 = vmatprep.subr.bf16.mxu1 %v3142_v2 }
0x21b1   :  { %2847 = vmatpush3.bf16.msra.mxu1 %v3915_v56 }
0x21b2   :  { %2848 = vmatprep.subr.bf16.mxu1 %v3142_v2 }
0x21b5   :  { %2849 = vmatpush3.bf16.msra.mxu1 %v3922_v34 }
0x21b6   :  { %2862 = vmatprep.subr.bf16.mxu1 %v3142_v2 }
0x21b8   :  { %2851 = vmatmul.mubr.bf16.vlgmr.msra.gmra.mxu1 %v4082_v54 }
0x21b9   :  { %2863 = vmatpush3.bf16.msra.mxu1 %v4033_v53  ;;  %2866 = vmatprep.mubr.msk.bf16.mxu1 %vm3144_vm1, %v3142_v2 }
0x21ba   :  { %2864 = vmatprep.subr.bf16.mxu1 %v3142_v2 }
0x21bd   :  { %2865 = vmatpush3.bf16.msra.mxu1 %v4042_v10 }
0x21be   :  { %2870 = vmatprep.subr.bf16.mxu1 %v3142_v2 }
0x220c   :  { %v2001_v49 = vpop.permute.xlu0 %2000 }
0x220d   :  { %2859 = vmatmul.mubr.msk.bf16.vlgmr.msra.gmra.mxu0 %vm38_vm0, %v2001_v49 }
0x220e   :  { %2143 = vmatpush1.bf16.msra.mxu0 %v3759_v26  ;;  %2174 = vmatprep.mubr.bf16.mxu0 %v3143_v6 }
0x220f   :  { %2144 = vmatprep.subr.bf16.mxu0 %v3766_v29 }
0x2212   :  { %2145 = vmatpush1.bf16.msra.mxu0 %v3772_v31 }
0x2213   :  { %2146 = vmatprep.subr.bf16.mxu0 %v3778_v37 }
0x2216   :  { %2147 = vmatpush1.bf16.msra.mxu0 %v3784_v39 }
0x2217   :  { %2148 = vmatprep.subr.bf16.mxu0 %v3790_v32  ;;  %v2046_v32 = vpop.permute.xlu0 %2045 }
0x221a   :  { %2149 = vmatpush1.bf16.msra.mxu0 %v3796_v3 }
0x221b   :  { %2150 = vmatprep.subr.bf16.mxu0 %v3802_v33 }
0x221e   :  { %2151 = vmatpush1.bf16.msra.mxu0 %v3808_v15 }
0x221f   :  { %2152 = vmatprep.subr.bf16.mxu0 %v3814_v35 }
0x2222   :  { %2153 = vmatpush1.bf16.msra.mxu0 %v3820_v36 }
0x2223   :  { %2154 = vmatprep.subr.bf16.mxu0 %v3826_v38 }
0x2226   :  { %2155 = vmatpush1.bf16.msra.mxu0 %v3832_v41 }
0x2227   :  { %2156 = vmatprep.subr.bf16.mxu0 %v3838_v47 }
0x222a   :  { %2157 = vmatpush1.bf16.msra.mxu0 %v3844_v51 }
0x222b   :  { %2890 = vmatprep.subr.bf16.mxu0 %v3142_v2 }
0x2258   :  { %v4152_v6 = vpop.f32.mrf.mxu1 }
0x225a   :  { %v2832_v59 = vpop.f32.mrf.mxu1 }
0x225c   :  { %v1849_v57 = vpop.f32.mrf.mxu1 }
0x225e   :  { %v2833_v58 = vpop.f32.mrf.mxu1 }
0x2278   :  { %v1952_v61 = vpop.f32.mrf.mxu1 }
0x2279   :  { %v1953_v47 = vadd.f32 %v1952_v61, %v3464_v60 }
0x227a   :  { %v2852_v26 = vpop.f32.mrf.mxu1 }
0x227c   :  { %v1955_v29 = vpop.f32.mrf.mxu1 }
0x227e   :  { %v2853_v31 = vpop.f32.mrf.mxu1 }
0x22cd   :  { %v2039_v37 = vpop.f32.mrf.mxu0 }
0x22ce   :  { %v2040_v39 = vadd.f32 %v3956_v9, %v2039_v37 }
0x22cf   :  { %v2860_v3 = vpop.f32.mrf.mxu0 }
0x22d0   :  { %v2048_v33 = vadd.f32 %v2046_v32, %v2040_v39 }
0x22d1   :  { %v2042_v15 = vpop.f32.mrf.mxu0 }
0x22d2   :  { %v2487_v35 = vmul.f32 -1.442695, %v2048_v33 }
0x22d3   :  { %v2861_v36 = vpop.f32.mrf.mxu0 }
0x22d4   :  { %3054 = vpow2.f32 %v2487_v35 }
0x22e1   :  { %v3055_v38 = vpop.eup %3054 }
0x22e2   :  { %v2052_v41 = vadd.f32 1.0, %v3055_v38 }
0x22e4   :  { %3056 = vrcp.f32 %v2052_v41  ;;  %v3137_v41 = vld [vmem:[%s4299_s2 + $0xb0] ss:$12 sps:$4 sm:$0xff]  }
0x22f1   :  { %v3057_v51 = vpop.eup %3056 }
0x22f2   :  { %v2055_v16 = vmul.f32 %v3057_v51, %v1953_v47  ;;  %v2062_v48 = vsub.f32 1.0, %v3057_v51  ;;  %v2068_v18 = vmul.f32 %v3057_v51, %v4073_v24  ;;  %v3139_v47 = vld [vmem:[%s4299_s2 + $0x80] ss:$12 sps:$4 sm:$0xff]   ;;  %v3140_v51 = vld [vmem:[%s4299_s2 + $0x68] ss:$12 sps:$4 sm:$0xff]  }
0x22f4   :  { %2057 = vrot.lane.b32.xlu1 %v2055_v16, %s3145_s15  ;;  %v3141_v16 = vld [vmem:[%s4299_s2 + $0x50] ss:$12 sps:$4 sm:$0xff]  }
0x22f8   :  { %2132 = vrot.lane.b32.xlu1 %v4102_v0, %s3147_s11 }
0x2366   :  { %v2058_v54 = vpop.permute.xlu1 %2057 }
0x2367   :  { %v2060_v43 = vadd.f32 %v2058_v54, %v2040_v39 }
0x2369   :  { %3058 = vtanh.f32 %v2060_v43 }
0x236a   :  { %v2133_v20 = vpop.permute.xlu1 %2132 }
0x236b   :  { %v2139_v22 = vsel %vm96_vm2, %v2490_v19, %v2133_v20 }
0x2376   :  { %v3059_v55 = vpop.eup %3058 }
0x2377   :  { %2064 = vrot.lane.b32.xlu0 %v3059_v55, %s3146_s23 }
0x23e9   :  { %v2065_v17 = vpop.permute.xlu0 %2064 }
0x23ea   :  { %v2067_v7 = vmul.f32 %v2065_v17, %v2062_v48 }
0x23ec   :  { %v4161_v44 = vadd.f32 %v2068_v18, %v2067_v7 }
0x23ee   :  { %2136 = vrot.lane.b32.xlu0 %v4161_v44, %s3145_s15  ;;  %v2070_v58 = vpack.c.bf16 %v4161_v44, %v4161_v44 }
0x2460   :  { %v2137_v21 = vpop.permute.xlu0 %2136 }
0x2461   :  { %v2140_v27 = vsel %vm98_vm3, %v2139_v22, %v2137_v21 }
0x2462   :  { %v4170_v23 = vpack.c.bf16 %v2140_v27, %v2140_v27 }
0x2464   :  { %2175 = vmatmul.mubr.bf16.vlgmr.msra.gmra.mxu0 %v4170_v23 }
0x2465   :  { %2891 = vmatpush3.bf16.msra.mxu0 %v3980_v28  ;;  %2894 = vmatprep.mubr.msk.bf16.mxu0 %vm3144_vm1, %v3142_v2 }
0x2466   :  { %2892 = vmatprep.subr.bf16.mxu0 %v3142_v2 }
0x2469   :  { %2893 = vmatpush3.bf16.msra.mxu0 %v3989_v8 }
0x2524   :  { %v2176_v24 = vpop.f32.mrf.mxu0 }
0x2525   :  { %v2177_v46 = vadd.f32 %v2176_v24, %v3401_v40 }
0x2526   :  { %v2178_v50 = vpop.f32.mrf.mxu0 }
0x2527   :  { %v2179_v1 = vadd.f32 %v2178_v50, %v3408_v45  ;;  %2224 = vrot.lane.b32.xlu1 %v2177_v46, %s3147_s11 }
0x2528   :  { %v2180_v30 = vpop.f32.mrf.mxu0 }
0x2529   :  { %2245 = vrot.lane.b32.xlu0 %v2179_v1, %s3146_s23 }
0x252a   :  { %v2181_v12 = vpop.f32.mrf.mxu0 }
0x252b   :  { %v4238_v12 = vld [vmem:[%s4305_s7] ss:$0 sm:$0xff] }
0x252d   :  { %2235 = vrot.lane.b32.xlu0 %v2179_v1, %s3147_s11 }
0x2599   :  { %v2225_v28 = vpop.permute.xlu1 %2224 }
0x259a   :  { %v2227_v63 = vadd.f32 %v2225_v28, %v2177_v46  ;;  %v523_v28 = vadd.f32 %v4238_v12, %v3567_v42 }
0x259b   :  { %v2246_v40 = vpop.permute.xlu0 %2245 }
0x259c   :  { %v2491_v5 = vmul.f32 -1.442695, %v2227_v63 }
0x259e   :  { %3060 = vpow2.f32 %v2491_v5 }
0x259f   :  { %v2236_v61 = vpop.permute.xlu0 %2235 }
0x25a0   :  { %v2238_v26 = vadd.f32 %v2236_v61, %v2177_v46 }
0x25a2   :  { %v2492_v29 = vmul.f32 -1.442695, %v2238_v26  ;;  %v1317_v26 = vadd.f32 %v4238_v12, %v3951_v62 }
0x25ab   :  { %v3061_v11 = vpop.eup %3060 }
0x25ac   :  { %v2231_v8 = vadd.f32 1.0, %v3061_v11 }
0x25ae   :  { %3062 = vrcp.f32 %v2231_v8 }
0x25bb   :  { %v3063_v14 = vpop.eup %3062 }
0x25bc   :  { %v2248_v49 = vmul.f32 %v3063_v14, %v2246_v40 }
0x25be   :  { %2250 = vrot.lane.b32.xlu1 %v2248_v49, %s3145_s15 }
0x2630   :  { %v2251_v45 = vpop.permute.xlu1 %2250 }
0x2631   :  { %v2253_v59 = vadd.f32 %v2251_v45, %v2177_v46 }
0x2633   :  { %3064 = vtanh.f32 %v2253_v59 }
0x2634   :  { %3066 = vpow2.f32 %v2492_v29  ;;  %v1582_v29 = vadd.f32 %v4238_v12, %v4064_v13 }
0x2640   :  { %v3065_v57 = vpop.eup %3064 }
0x2641   :  { %2257 = vrot.lane.b32.xlu1 %v3065_v57, %s3146_s23  ;;  %v3067_v31 = vpop.eup %3066 }
0x2642   :  { %v2242_v37 = vadd.f32 1.0, %v3067_v31  ;;  %v1847_v31 = vadd.f32 %v4238_v12, %v4152_v6 }
0x2644   :  { %3068 = vrcp.f32 %v2242_v37 }
0x2645   :  { %2072 = vrot.lane.b32.xlu1 %v2070_v58, %s3146_s23 }
0x2651   :  { %v3069_v39 = vpop.eup %3068 }
0x2652   :  { %v2255_v32 = vsub.f32 1.0, %v3069_v39  ;;  %v2261_v15 = vmul.f32 %v3069_v39, %v4102_v0  ;;  %v3138_v0 = vld [vmem:[%s4299_s2 + $0x98] ss:$12 sps:$4 sm:$0xff]  }
0x26b3   :  { %v2258_v3 = vpop.permute.xlu1 %2257 }
0x26b4   :  { %v2260_v33 = vmul.f32 %v2258_v3, %v2255_v32 }
0x26b6   :  { %v4189_v35 = vadd.f32 %v2261_v15, %v2260_v33 }
0x26b7   :  { %v2073_v36 = vpop.permute.xlu1 %2072 }
0x26b8   :  { %2867 = vmatmul.mubr.msk.bf16.vlgmr.msra.gmra.mxu1 %vm38_vm0, %v2073_v36  ;;  %v2263_v38 = vpack.c.bf16 %v4189_v35, %v4189_v35 }
0x26b9   :  { %2871 = vmatpush3.bf16.msra.mxu1 %v3137_v41  ;;  %2886 = vmatprep.mubr.msk.bf16.mxu1 %vm3144_vm1, %v3142_v2 }
0x26ba   :  { %2265 = vrot.lane.b32.xlu0 %v2263_v38, %s3146_s23  ;;  %2872 = vmatprep.subr.bf16.mxu1 %v3142_v2 }
0x26bd   :  { %2873 = vmatpush3.bf16.msra.mxu1 %v3138_v0 }
0x26be   :  { %2310 = vrot.lane.b32.xlu0 %v2179_v1, %s3145_s15  ;;  %2874 = vmatprep.subr.bf16.mxu1 %v3142_v2 }
0x26c1   :  { %2875 = vmatpush3.bf16.msra.mxu1 %v3139_v47 }
0x26c2   :  { %2876 = vmatprep.subr.bf16.mxu1 %v3142_v2 }
0x26c5   :  { %2877 = vmatpush3.bf16.msra.mxu1 %v3140_v51 }
0x26c6   :  { %2878 = vmatprep.subr.bf16.mxu1 %v3142_v2 }
0x26c9   :  { %2879 = vmatpush3.bf16.msra.mxu1 %v3141_v16 }
0x26ca   :  { %2880 = vmatprep.subr.bf16.mxu1 %v3142_v2 }
0x26cd   :  { %2881 = vmatpush3.bf16.msra.mxu1 %v3908_v25 }
0x26ce   :  { %2882 = vmatprep.subr.bf16.mxu1 %v3142_v2 }
0x26d1   :  { %2883 = vmatpush3.bf16.msra.mxu1 %v3915_v56 }
0x26d2   :  { %2884 = vmatprep.subr.bf16.mxu1 %v3142_v2 }
0x26d5   :  { %2885 = vmatpush3.bf16.msra.mxu1 %v3922_v34 }
0x26d6   :  { %2898 = vmatprep.subr.bf16.mxu1 %v3142_v2 }
0x26d8   :  { %2887 = vmatmul.mubr.bf16.vlgmr.msra.gmra.mxu1 %v4170_v23 }
0x26d9   :  { %2899 = vmatpush3.bf16.msra.mxu1 %v4033_v53  ;;  %2902 = vmatprep.mubr.msk.bf16.mxu1 %vm3144_vm1, %v3142_v2 }
0x26da   :  { %2900 = vmatprep.subr.bf16.mxu1 %v3142_v2 }
0x26dd   :  { %2901 = vmatpush3.bf16.msra.mxu1 %v4042_v10 }
0x272c   :  { %v2266_v25 = vpop.permute.xlu0 %2265 }
0x272d   :  { %2895 = vmatmul.mubr.msk.bf16.vlgmr.msra.gmra.mxu0 %vm38_vm0, %v2266_v25 }
0x2730   :  { %v2311_v19 = vpop.permute.xlu0 %2310 }
0x2778   :  { %v2111_v56 = vpop.f32.mrf.mxu1 }
0x2779   :  { %v2112_v37 = vadd.f32 %v4238_v12, %v2111_v56 }
0x277a   :  { %v2868_v54 = vpop.f32.mrf.mxu1 }
0x277c   :  { %v2114_v43 = vpop.f32.mrf.mxu1 }
0x277e   :  { %v2869_v34 = vpop.f32.mrf.mxu1 }
0x2798   :  { %v2217_v55 = vpop.f32.mrf.mxu1 }
0x2799   :  { %v2218_v24 = vadd.f32 %v2217_v55, %v3464_v60  ;;  %v787_v60 = vadd.f32 %v4238_v12, %v3655_v4 }
0x279a   :  { %v2888_v48 = vpop.f32.mrf.mxu1 }
0x279c   :  { %v2220_v17 = vpop.f32.mrf.mxu1 }
0x279e   :  { %v2889_v18 = vpop.f32.mrf.mxu1 }
0x27ed   :  { %v2304_v7 = vpop.f32.mrf.mxu0 }
0x27ee   :  { %v2305_v53 = vadd.f32 %v3956_v9, %v2304_v7 }
0x27ef   :  { %v2896_v20 = vpop.f32.mrf.mxu0 }
0x27f0   :  { %v2313_v22 = vadd.f32 %v2311_v19, %v2305_v53 }
0x27f1   :  { %v2307_v2 = vpop.f32.mrf.mxu0 }
0x27f2   :  { %v2494_v21 = vmul.f32 -1.442695, %v2313_v22 }
0x27f3   :  { %v2897_v10 = vpop.f32.mrf.mxu0 }
0x27f4   :  { %3070 = vpow2.f32 %v2494_v21 }
0x2801   :  { %v3071_v27 = vpop.eup %3070 }
0x2802   :  { %v2317_v23 = vadd.f32 1.0, %v3071_v27 }
0x2804   :  { %3072 = vrcp.f32 %v2317_v23 }
0x2811   :  { %v3073_v46 = vpop.eup %3072 }
0x2812   :  { %v2320_v50 = vmul.f32 %v3073_v46, %v2218_v24  ;;  %v2327_v63 = vsub.f32 1.0, %v3073_v46  ;;  %v2333_v11 = vmul.f32 %v3073_v46, %v4161_v44  ;;  %v1052_v44 = vadd.f32 %v4238_v12, %v3848_v52 }
0x2814   :  { %2322 = vrot.lane.b32.xlu1 %v2320_v50, %s3145_s15 }
0x2886   :  { %v2323_v1 = vpop.permute.xlu1 %2322 }
0x2887   :  { %v2325_v30 = vadd.f32 %v2323_v1, %v2305_v53 }
0x2889   :  { %3074 = vtanh.f32 %v2325_v30 }
0x2896   :  { %v3075_v9 = vpop.eup %3074 }
0x2897   :  { %2329 = vrot.lane.b32.xlu0 %v3075_v9, %s3146_s23 }
0x28b6   :  { %528 = vmax.xlane.f32.xlu0 %v523_v28 }
0x28ba   :  { %792 = vmax.xlane.f32.xlu0 %v787_v60 }
0x2909   :  { %v2330_v5 = vpop.permute.xlu0 %2329 }
0x290a   :  { %v2332_v8 = vmul.f32 %v2330_v5, %v2327_v63 }
0x290c   :  { %v4245_v14 = vadd.f32 %v2333_v11, %v2332_v8 }
0x290e   :  { %v2335_v40 = vpack.c.bf16 %v4245_v14, %v4245_v14 }
0x2910   :  { %2337 = vrot.lane.b32.xlu1 %v2335_v40, %s3146_s23 }
0x293f   :  { %v529_v49 = vpop.xlane.xlu0 %528 }
0x2940   :  { %v530_v45 = vsub.f32 %v523_v28, %v529_v49 }
0x2942   :  { %v531_v42 = vmul.f32 1.442695, %v530_v45 }
0x2943   :  { %v793_v59 = vpop.xlane.xlu0 %792 }
0x2944   :  { %3076 = vpow2.f32 %v531_v42  ;;  %v794_v57 = vsub.f32 %v787_v60, %v793_v59 }
0x2946   :  { %v795_v4 = vmul.f32 1.442695, %v794_v57 }
0x2948   :  { %3078 = vpow2.f32 %v795_v4 }
0x2951   :  { %v3077_v58 = vpop.eup %3076 }
0x2952   :  { %533 = vadd.xlane.f32.xlu1 %v3077_v58 }
0x2955   :  { %v3079_v61 = vpop.eup %3078 }
0x2956   :  { %1057 = vmax.xlane.f32.xlu1 %v1052_v44  ;;  %797 = vadd.xlane.f32.xlu0 %v3079_v61 }
0x295a   :  { %1322 = vmax.xlane.f32.xlu1 %v1317_v26 }
0x295e   :  { %1587 = vmax.xlane.f32.xlu1 %v1582_v29 }
0x2962   :  { %1852 = vmax.xlane.f32.xlu1 %v1847_v31 }
0x2966   :  { %2117 = vmax.xlane.f32.xlu1 %v2112_v37 }
0x2982   :  { %v2338_v39 = vpop.permute.xlu1 %2337 }
0x2983   :  { %2903 = vmatmul.mubr.msk.bf16.vlgmr.msra.gmra.mxu1 %vm38_vm0, %v2338_v39 }
0x29db   :  { %v534_v52 = vpop.xlane.xlu1 %533 }
0x29dc   :  { %3080 = vlog2.f32 %v534_v52 }
0x29df   :  { %v1058_v32 = vpop.xlane.xlu1 %1057  ;;  %v798_v3 = vpop.xlane.xlu0 %797 }
0x29e0   :  { %v1059_v62 = vsub.f32 %v1052_v44, %v1058_v32  ;;  %3082 = vlog2.f32 %v798_v3 }
0x29e2   :  { %v1060_v33 = vmul.f32 1.442695, %v1059_v62 }
0x29e3   :  { %v1323_v15 = vpop.xlane.xlu1 %1322 }
0x29e4   :  { %3084 = vpow2.f32 %v1060_v33  ;;  %v1324_v13 = vsub.f32 %v1317_v26, %v1323_v15 }
0x29e6   :  { %v1325_v36 = vmul.f32 1.442695, %v1324_v13 }
0x29e7   :  { %v1588_v38 = vpop.xlane.xlu1 %1587 }
0x29e8   :  { %3086 = vpow2.f32 %v1325_v36  ;;  %v1589_v6 = vsub.f32 %v1582_v29, %v1588_v38 }
0x29e9   :  { %v3081_v41 = vpop.eup %3080 }
0x29ea   :  { %v536_v0 = vmul.f32 0.6931472, %v3081_v41  ;;  %v1590_v47 = vmul.f32 1.442695, %v1589_v6 }
0x29eb   :  { %v1853_v51 = vpop.xlane.xlu1 %1852 }
0x29ec   :  { %v537_v16 = vsub.f32 %v530_v45, %v536_v0  ;;  %3088 = vpow2.f32 %v1590_v47  ;;  %v1854_v25 = vsub.f32 %v1847_v31, %v1853_v51 }
0x29ed   :  { %v3083_v56 = vpop.eup %3082 }
0x29ee   :  { %538 = vst [vmem:[%s4306_s8] sm:$0xff] %v537_v16  ;;  %v800_v54 = vmul.f32 0.6931472, %v3083_v56  ;;  %v1855_v43 = vmul.f32 1.442695, %v1854_v25 }
0x29ef   :  { %v2118_v34 = vpop.xlane.xlu1 %2117 }
0x29f0   :  { %v801_v55 = vsub.f32 %v794_v57, %v800_v54  ;;  %3090 = vpow2.f32 %v1855_v43  ;;  %v2119_v48 = vsub.f32 %v2112_v37, %v2118_v34 }
0x29f1   :  { %v3085_v17 = vpop.eup %3084 }
0x29f2   :  { %2454 = vst [vmem:[%s4306_s8 + $0x8] sm:$0xff] %v801_v55  ;;  %v2120_v18 = vmul.f32 1.442695, %v2119_v48  ;;  %1062 = vadd.xlane.f32.xlu0 %v3085_v17 }
0x29f4   :  { %3092 = vpow2.f32 %v2120_v18 }
0x29f5   :  { %v3087_v7 = vpop.eup %3086 }
0x29f6   :  { %1327 = vadd.xlane.f32.xlu0 %v3087_v7 }
0x29f9   :  { %v3089_v53 = vpop.eup %3088 }
0x29fa   :  { %1592 = vadd.xlane.f32.xlu0 %v3089_v53 }
0x29fd   :  { %v3091_v19 = vpop.eup %3090 }
0x29fe   :  { %1857 = vadd.xlane.f32.xlu0 %v3091_v19 }
0x2a01   :  { %v3093_v20 = vpop.eup %3092 }
0x2a02   :  { %2122 = vadd.xlane.f32.xlu0 %v3093_v20 }
0x2a43   :  { %v2376_v22 = vpop.f32.mrf.mxu1 }
0x2a44   :  { %v2377_v2 = vadd.f32 %v4238_v12, %v2376_v22 }
0x2a45   :  { %v2904_v21 = vpop.f32.mrf.mxu1 }
0x2a46   :  { %2382 = vmax.xlane.f32.xlu1 %v2377_v2 }
0x2a47   :  { %v2379_v10 = vpop.f32.mrf.mxu1 }
0x2a49   :  { %v2905_v27 = vpop.f32.mrf.mxu1 }
0x2a57   :  { %2395 = vrot.lane.b32.xlu1 %v4189_v35, %s3146_s23 }
0x2a7b   :  { %v1063_v23 = vpop.xlane.xlu0 %1062 }
0x2a7c   :  { %3094 = vlog2.f32 %v1063_v23 }
0x2a7f   :  { %v1328_v24 = vpop.xlane.xlu0 %1327 }
0x2a80   :  { %3096 = vlog2.f32 %v1328_v24 }
0x2a83   :  { %v1593_v46 = vpop.xlane.xlu0 %1592 }
0x2a84   :  { %3098 = vlog2.f32 %v1593_v46 }
0x2a87   :  { %v1858_v50 = vpop.xlane.xlu0 %1857 }
0x2a88   :  { %3100 = vlog2.f32 %v1858_v50 }
0x2a89   :  { %v3095_v1 = vpop.eup %3094 }
0x2a8a   :  { %v1065_v30 = vmul.f32 0.6931472, %v3095_v1 }
0x2a8b   :  { %v2123_v9 = vpop.xlane.xlu0 %2122 }
0x2a8c   :  { %v1066_v28 = vsub.f32 %v1059_v62, %v1065_v30  ;;  %3102 = vlog2.f32 %v2123_v9 }
0x2a8d   :  { %v3097_v12 = vpop.eup %3096 }
0x2a8e   :  { %2461 = vst [vmem:[%s4306_s8 + $0x10] sm:$0xff] %v1066_v28  ;;  %v1330_v60 = vmul.f32 0.6931472, %v3097_v12 }
0x2a90   :  { %v1331_v35 = vsub.f32 %v1324_v13, %v1330_v60 }
0x2a91   :  { %v3099_v63 = vpop.eup %3098 }
0x2a92   :  { %2468 = vst [vmem:[%s4306_s8 + $0x18] sm:$0xff] %v1331_v35  ;;  %v1595_v5 = vmul.f32 0.6931472, %v3099_v63 }
0x2a94   :  { %v1596_v11 = vsub.f32 %v1589_v6, %v1595_v5 }
0x2a95   :  { %v3101_v8 = vpop.eup %3100 }
0x2a96   :  { %2475 = vst [vmem:[%s4306_s8 + $0x20] sm:$0xff] %v1596_v11  ;;  %v1860_v40 = vmul.f32 0.6931472, %v3101_v8 }
0x2a98   :  { %v1861_v49 = vsub.f32 %v1854_v25, %v1860_v40 }
0x2a99   :  { %v3103_v45 = vpop.eup %3102 }
0x2a9a   :  { %2482 = vst [vmem:[%s4306_s8 + $0x28] sm:$0xff] %v1861_v49  ;;  %v2125_v42 = vmul.f32 0.6931472, %v3103_v45 }
0x2a9c   :  { %v2126_v59 = vsub.f32 %v2119_v48, %v2125_v42 }
0x2a9e   :  { %2489 = vst [vmem:[%s4306_s8 + $0x30] sm:$0xff] %v2126_v59 }
0x2acf   :  { %v2383_v57 = vpop.xlane.xlu1 %2382 }
0x2ad0   :  { %v2384_v4 = vsub.f32 %v2377_v2, %v2383_v57 }
0x2ad2   :  { %v2385_v58 = vmul.f32 1.442695, %v2384_v4 }
0x2ad3   :  { %v2396_v44 = vpop.permute.xlu1 %2395 }
0x2ad4   :  { %3104 = vpow2.f32 %v2385_v58  ;;  %2398 = vst.msk [vmem:[%s4298_s9] sm:$0xff] %vm38_vm0, %v2396_v44 }
0x2ae1   :  { %v3105_v61 = vpop.eup %3104 }
0x2ae2   :  { %2387 = vadd.xlane.f32.xlu0 %v3105_v61 }
0x2af8   :  { %2400 = vrot.lane.b32.xlu0 %v4245_v14, %s3146_s23 }
0x2b6b   :  { %v2388_v26 = vpop.xlane.xlu0 %2387 }
0x2b6c   :  { %3106 = vlog2.f32 %v2388_v26 }
0x2b6f   :  { %v2401_v29 = vpop.permute.xlu0 %2400 }
0x2b70   :  { %2497 = vst.msk [vmem:[%s4298_s9 + $0x8] sm:$0xff] %vm38_vm0, %v2401_v29 }
0x2b79   :  { %v3107_v31 = vpop.eup %3106 }
0x2b7a   :  { %v2390_v37 = vmul.f32 0.6931472, %v3107_v31 }
0x2b7c   :  { %v2391_v39 = vsub.f32 %v2384_v4, %v2390_v37 }
0x2b7e   :  { %2496 = vst [vmem:[%s4306_s8 + $0x38] sm:$0xff] %v2391_v39 }

</bundles_post_ra>
